<compile_context>
chip_gen: v7x
topology: tpu7x:2x2x1
jax: 0.10.0
libtpu: 0.0.40
codegen_flags: <defaults>
</compile_context>

<pallas_src>
import numpy as np
import jax
import jax.numpy as jnp
from jax.experimental import pallas as pl
from jax.experimental.pallas import tpu as pltpu

_GN_EPS = 1e-5          # torch.nn.GroupNorm default
_INV_SQRT2 = 0.7071067811865476


def _erf(x):
    # Abramowitz & Stegun 7.1.26 polynomial erf (|err| < 1.5e-7); the divide goes to the
    # EUP via an approximate reciprocal (perf review), everything else is exp/mul/add.
    p = 0.3275911
    a1, a2, a3, a4, a5 = (0.254829592, -0.284496736, 1.421413741,
                          -1.453152027, 1.061405429)
    s = jnp.where(x >= 0.0, 1.0, -1.0)
    ax = jnp.abs(x)
    t = pl.reciprocal(1.0 + p * ax, approx=True)
    poly = t * (a1 + t * (a2 + t * (a3 + t * (a4 + t * a5))))
    return s * (1.0 - poly * jnp.exp(-ax * ax))


def _gelu(x):
    # erf-based GELU, matching torch.nn.GELU() default (up to the erf/recip approx)
    return 0.5 * x * (1.0 + _erf(x * _INV_SQRT2))


def _full_mean(y):
    # (C, P) -> (1, 1): two single-axis reductions (robust Mosaic lowering)
    return jnp.mean(jnp.mean(y, axis=1, keepdims=True), axis=0, keepdims=True)


def _conv3x3_gn(x, w_ref, g_ref, b_ref, st_ref, *, apply_gelu):
    # x: (Cin, P) channel-major activations of ONE sample (P = H*W)
    # w_ref: (9, Cout, Cin) per-tap conv weights; st_ref: (9, P, P) shift matrices
    # g_ref / b_ref: (Cout, 1) GroupNorm(1, Cout) affine params
    co = w_ref.shape[1]
    p_dim = x.shape[1]
    acc = jnp.zeros((co, p_dim), jnp.float32)
    for t in range(9):                                    # unrolled: 9 taps of the 3x3 kernel
        wx = jnp.dot(w_ref[t], x, preferred_element_type=jnp.float32)        # (Co, P)
        acc = acc + jnp.dot(wx, st_ref[t], preferred_element_type=jnp.float32)
    # GroupNorm with a single group == normalization over (C, H, W) of this sample.
    mean = _full_mean(acc)
    var = _full_mean(jnp.square(acc - mean))
    y = (acc - mean) * jax.lax.rsqrt(var + _GN_EPS)
    y = y * g_ref[...] + b_ref[...]                       # per-channel affine
    if apply_gelu:
        y = _gelu(y)
    return y


def _make_fused_kernel(n_convs, in_ch):
    def kernel(*refs):
        x_ref, st_ref = refs[0], refs[1]
        pos = 2
        conv_refs = []
        for _ in range(n_convs):
            conv_refs.append(refs[pos:pos + 3])
            pos += 3
        l1w_ref, l1b_ref, l2w_ref, l2b_ref, l3w_ref, l3b_ref = refs[pos:pos + 6]
        o_ref = refs[pos + 6]

        x = x_ref[0]                                      # (C, P), NCHW-order sample
        y = x
        for idx, (w_ref, g_ref, b_ref) in enumerate(conv_refs):
            # DoubleConv (residual=False): conv->GN->GELU->conv->GN
            y = _conv3x3_gn(y, w_ref, g_ref, b_ref, st_ref,
                            apply_gelu=(idx % 2 == 0))
        mask = y[0:1, :]                                  # == x_masks[:, 0:1, :, :]
        masked = mask * x                                 # broadcast over input channels

        # head on the NCHW-flattened masked input: relu(l1) -> relu(l2) -> l3
        h1 = l1b_ref[...]                                 # (1, 100)
        for c in range(in_ch):
            h1 = h1 + jnp.dot(masked[c:c + 1, :], l1w_ref[c],
                              preferred_element_type=jnp.float32)
        h1 = jnp.maximum(h1, 0.0)
        h2 = jnp.sum(h1 * l2w_ref[...], axis=-1, keepdims=True) + l2b_ref[...]
        h2 = jnp.maximum(h2, 0.0)
        o_ref[0] = (h2 * l3w_ref[...] + l3b_ref[...]).astype(o_ref.dtype)
    return kernel


def encoder_cnn_norm_forward(x_nchw, params):
    # TODO(synk): `self.unet` is never defined in EncoderCNNnorm.__init__; interpreted
    # here as the sequential application of self.convs (DoubleConv blocks, no maxpool,
    # so the channel-0 mask keeps x's spatial size and the broadcast matches).
    B, C, H, W = x_nchw.shape
    P = H * W
    x_cp = x_nchw.reshape(B, C, P)        # free view of NCHW: per-channel spatial rows
    conv_params = params["convs"]
    kernel = _make_fused_kernel(len(conv_params), C)

    inputs = [x_cp, params["shift"]]
    in_specs = [pl.BlockSpec((1, C, P), lambda b: (b, 0, 0)),
                pl.BlockSpec(params["shift"].shape, lambda b: (0, 0, 0))]
    for (w_t, g, bt) in conv_params:
        inputs += [w_t, g, bt]
        in_specs += [pl.BlockSpec(w_t.shape, lambda b: (0, 0, 0)),
                     pl.BlockSpec(g.shape, lambda b: (0, 0)),
                     pl.BlockSpec(bt.shape, lambda b: (0, 0))]
    for name in ("l1_w", "l1_b", "l2_w", "l2_b", "l3_w", "l3_b"):
        arr = params[name]
        inputs.append(arr)
        in_specs.append(pl.BlockSpec(arr.shape, lambda b, nd=arr.ndim: (0,) * nd))

    out = pl.pallas_call(
        kernel,
        out_shape=jax.ShapeDtypeStruct((B, 1, 1), jnp.float32),
        grid=(B,),
        in_specs=in_specs,
        out_specs=pl.BlockSpec((1, 1, 1), lambda b: (b, 0, 0)),
        compiler_params=pltpu.CompilerParams(dimension_semantics=("parallel",)),
    )(*inputs)
    return out.reshape(B, 1)


def _build_shift_mats(H, W):
    # S_t[p_src, p_dst] = 1  iff  src = dst shifted by tap t (with zero "same" padding).
    P = H * W
    st = np.zeros((9, P, P), np.float32)
    for kh in range(3):
        for kw in range(3):
            t = kh * 3 + kw
            dh, dw = kh - 1, kw - 1
            for h in range(H):
                for w in range(W):
                    hs, ws = h + dh, w + dw
                    if 0 <= hs < H and 0 <= ws < W:
                        st[t, hs * W + ws, h * W + w] = 1.0
    return jnp.asarray(st)


def _torch_conv_to_taps(w):
    # torch conv weight (Cout, Cin, 3, 3) -> (9, Cout, Cin), tap index t = kh*3 + kw
    co, ci = w.shape[0], w.shape[1]
    return jnp.transpose(w, (2, 3, 0, 1)).reshape(9, co, ci)


def init_params(key, in_channels, n_iter, H, W):
    # channel plan exactly as EncoderCNNnorm.__init__ builds self.convs
    specs = [(in_channels, 2 * in_channels)]
    for i in range(1, n_iter):
        specs.append((in_channels * (2 * i), 2 * (i + 1) * in_channels))

    params = {"convs": [], "shift": _build_shift_mats(H, W)}
    for (cin, cout) in specs:
        cmid = cout                       # DoubleConv: mid_channels defaults to out_channels
        for (ci, co) in ((cin, cmid), (cmid, cout)):
            key, kw_, kg, kb = jax.random.split(key, 4)
            w = jax.random.normal(kw_, (co, ci, 3, 3), jnp.float32) * (2.0 / (9 * ci)) ** 0.5
            gamma = 1.0 + 0.1 * jax.random.normal(kg, (co, 1), jnp.float32)
            beta = 0.1 * jax.random.normal(kb, (co, 1), jnp.float32)
            params["convs"].append((_torch_conv_to_taps(w), gamma, beta))

    feat = in_channels * H * W            # 486, matching nn.Linear(486, 100)
    key, k1, k2, k3, k4, k5, k6 = jax.random.split(key, 7)
    l1_w = jax.random.normal(k1, (100, feat), jnp.float32) / feat ** 0.5     # torch layout
    params["l1_w"] = l1_w.T.reshape(in_channels, H * W, 100)   # row index = c*P + p (NCHW flat)
    params["l1_b"] = 0.01 * jax.random.normal(k2, (1, 100), jnp.float32)
    params["l2_w"] = jax.random.normal(k3, (1, 100), jnp.float32) / 100 ** 0.5
    params["l2_b"] = 0.01 * jax.random.normal(k4, (1, 1), jnp.float32)
    # TODO(synk): self.l3 is used in forward but never created in __init__; synthesized
    # here as nn.Linear(1, 1) so the forward pass is well-defined.
    params["l3_w"] = jax.random.normal(k5, (1, 1), jnp.float32)
    params["l3_b"] = 0.01 * jax.random.normal(k6, (1, 1), jnp.float32)
    return params


if __name__ == "__main__":
    in_channels, n_iter = 6, 2
    B, H, W = 2, 9, 9                     # in_channels * H * W == 486 == nn.Linear(486, 100)
    key = jax.random.PRNGKey(0)
    kx, kp = jax.random.split(key)
    x = jax.random.normal(kx, (B, in_channels, H, W), jnp.float32)
    params = init_params(kp, in_channels, n_iter, H, W)

    out = jax.jit(lambda xx: encoder_cnn_norm_forward(xx, params))(x)
    jax.block_until_ready(out)
    assert out.shape == (B, 1) and out.dtype == jnp.float32
    print("KERNEL_OK")
</pallas_src>

<mosaic_0001>
module attributes {stable_mosaic.version = 11 : i64} {
  func.func @kernel(%arg0: i32, %arg1: memref<1x6x81xf32, #tpu.memory_space<vmem>>, %arg2: memref<9x81x81xf32, #tpu.memory_space<vmem>>, %arg3: memref<9x12x6xf32, #tpu.memory_space<vmem>>, %arg4: memref<12x1xf32, #tpu.memory_space<vmem>>, %arg5: memref<12x1xf32, #tpu.memory_space<vmem>>, %arg6: memref<9x12x12xf32, #tpu.memory_space<vmem>>, %arg7: memref<12x1xf32, #tpu.memory_space<vmem>>, %arg8: memref<12x1xf32, #tpu.memory_space<vmem>>, %arg9: memref<9x24x12xf32, #tpu.memory_space<vmem>>, %arg10: memref<24x1xf32, #tpu.memory_space<vmem>>, %arg11: memref<24x1xf32, #tpu.memory_space<vmem>>, %arg12: memref<9x24x24xf32, #tpu.memory_space<vmem>>, %arg13: memref<24x1xf32, #tpu.memory_space<vmem>>, %arg14: memref<24x1xf32, #tpu.memory_space<vmem>>, %arg15: memref<6x81x100xf32, #tpu.memory_space<vmem>>, %arg16: memref<1x100xf32, #tpu.memory_space<vmem>>, %arg17: memref<1x100xf32, #tpu.memory_space<vmem>>, %arg18: memref<1x1xf32, #tpu.memory_space<vmem>>, %arg19: memref<1x1xf32, #tpu.memory_space<vmem>>, %arg20: memref<1x1xf32, #tpu.memory_space<vmem>>, %arg21: memref<1x1x1xf32, #tpu.memory_space<vmem>>) attributes {dimension_semantics = [#tpu.dimension_semantics<parallel>], iteration_bounds = array<i64: 2>, scalar_prefetch = 0 : i64, scratch_operands = 0 : i64, tpu.core_type = #tpu.core_type<tc>, window_params = [{transform_indices = @transform_0, window_bounds = array<i64: 1, 6, 81>}, {pipeline_mode = #tpu.pipeline_mode<synchronous>, transform_indices = @transform_1, window_bounds = array<i64: 9, 81, 81>}, {pipeline_mode = #tpu.pipeline_mode<synchronous>, transform_indices = @transform_2, window_bounds = array<i64: 9, 12, 6>}, {pipeline_mode = #tpu.pipeline_mode<synchronous>, transform_indices = @transform_3, window_bounds = array<i64: 12, 1>}, {pipeline_mode = #tpu.pipeline_mode<synchronous>, transform_indices = @transform_4, window_bounds = array<i64: 12, 1>}, {pipeline_mode = #tpu.pipeline_mode<synchronous>, transform_indices = @transform_5, window_bounds = array<i64: 9, 12, 12>}, {pipeline_mode = #tpu.pipeline_mode<synchronous>, transform_indices = @transform_6, window_bounds = array<i64: 12, 1>}, {pipeline_mode = #tpu.pipeline_mode<synchronous>, transform_indices = @transform_7, window_bounds = array<i64: 12, 1>}, {pipeline_mode = #tpu.pipeline_mode<synchronous>, transform_indices = @transform_8, window_bounds = array<i64: 9, 24, 12>}, {pipeline_mode = #tpu.pipeline_mode<synchronous>, transform_indices = @transform_9, window_bounds = array<i64: 24, 1>}, {pipeline_mode = #tpu.pipeline_mode<synchronous>, transform_indices = @transform_10, window_bounds = array<i64: 24, 1>}, {pipeline_mode = #tpu.pipeline_mode<synchronous>, transform_indices = @transform_11, window_bounds = array<i64: 9, 24, 24>}, {pipeline_mode = #tpu.pipeline_mode<synchronous>, transform_indices = @transform_12, window_bounds = array<i64: 24, 1>}, {pipeline_mode = #tpu.pipeline_mode<synchronous>, transform_indices = @transform_13, window_bounds = array<i64: 24, 1>}, {pipeline_mode = #tpu.pipeline_mode<synchronous>, transform_indices = @transform_14, window_bounds = array<i64: 6, 81, 100>}, {pipeline_mode = #tpu.pipeline_mode<synchronous>, transform_indices = @transform_15, window_bounds = array<i64: 1, 100>}, {pipeline_mode = #tpu.pipeline_mode<synchronous>, transform_indices = @transform_16, window_bounds = array<i64: 1, 100>}, {pipeline_mode = #tpu.pipeline_mode<synchronous>, transform_indices = @transform_17, window_bounds = array<i64: 1, 1>}, {pipeline_mode = #tpu.pipeline_mode<synchronous>, transform_indices = @transform_18, window_bounds = array<i64: 1, 1>}, {pipeline_mode = #tpu.pipeline_mode<synchronous>, transform_indices = @transform_19, window_bounds = array<i64: 1, 1>}, {transform_indices = @transform_20, window_bounds = array<i64: 1, 1, 1>}]} {
    %c0 = arith.constant 0 : index
    %c0_0 = arith.constant 0 : index
    %c0_1 = arith.constant 0 : index
    %0 = vector.load %arg1[%c0, %c0_0, %c0_1] : memref<1x6x81xf32, #tpu.memory_space<vmem>>, vector<1x6x81xf32>
    %1 = vector.shape_cast %0 : vector<1x6x81xf32> to vector<6x81xf32>
    %cst = arith.constant 0.000000e+00 : f32
    %2 = vector.broadcast %cst : f32 to vector<12x81xf32>
    %c0_2 = arith.constant 0 : index
    %c0_3 = arith.constant 0 : index
    %c0_4 = arith.constant 0 : index
    %3 = vector.load %arg3[%c0_2, %c0_3, %c0_4] : memref<9x12x6xf32, #tpu.memory_space<vmem>>, vector<1x12x6xf32>
    %4 = vector.shape_cast %3 : vector<1x12x6xf32> to vector<12x6xf32>
    %cst_5 = arith.constant dense<0.000000e+00> : vector<12x81xf32>
    %5 = tpu.matmul %4, %1, %cst_5 {dimension_numbers = #tpu.dot_dimension_numbers<[1], [0], [0], [1], [0, 0, 1, 1], [], []>} : vector<12x6xf32>, vector<6x81xf32>, vector<12x81xf32> -> vector<12x81xf32>
    %c0_6 = arith.constant 0 : index
    %c0_7 = arith.constant 0 : index
    %c0_8 = arith.constant 0 : index
    %6 = vector.load %arg2[%c0_6, %c0_7, %c0_8] : memref<9x81x81xf32, #tpu.memory_space<vmem>>, vector<1x81x81xf32>
    %7 = vector.shape_cast %6 : vector<1x81x81xf32> to vector<81x81xf32>
    %cst_9 = arith.constant dense<0.000000e+00> : vector<12x81xf32>
    %8 = tpu.matmul %5, %7, %cst_9 {dimension_numbers = #tpu.dot_dimension_numbers<[1], [0], [0], [1], [0, 0, 1, 1], [], []>} : vector<12x81xf32>, vector<81x81xf32>, vector<12x81xf32> -> vector<12x81xf32>
    %9 = arith.addf %2, %8 : vector<12x81xf32>
    %c1 = arith.constant 1 : index
    %c0_10 = arith.constant 0 : index
    %c0_11 = arith.constant 0 : index
    %10 = vector.load %arg3[%c1, %c0_10, %c0_11] : memref<9x12x6xf32, #tpu.memory_space<vmem>>, vector<1x12x6xf32>
    %11 = vector.shape_cast %10 : vector<1x12x6xf32> to vector<12x6xf32>
    %cst_12 = arith.constant dense<0.000000e+00> : vector<12x81xf32>
    %12 = tpu.matmul %11, %1, %cst_12 {dimension_numbers = #tpu.dot_dimension_numbers<[1], [0], [0], [1], [0, 0, 1, 1], [], []>} : vector<12x6xf32>, vector<6x81xf32>, vector<12x81xf32> -> vector<12x81xf32>
    %c1_13 = arith.constant 1 : index
    %c0_14 = arith.constant 0 : index
    %c0_15 = arith.constant 0 : index
    %13 = vector.load %arg2[%c1_13, %c0_14, %c0_15] : memref<9x81x81xf32, #tpu.memory_space<vmem>>, vector<1x81x81xf32>
    %14 = vector.shape_cast %13 : vector<1x81x81xf32> to vector<81x81xf32>
    %cst_16 = arith.constant dense<0.000000e+00> : vector<12x81xf32>
    %15 = tpu.matmul %12, %14, %cst_16 {dimension_numbers = #tpu.dot_dimension_numbers<[1], [0], [0], [1], [0, 0, 1, 1], [], []>} : vector<12x81xf32>, vector<81x81xf32>, vector<12x81xf32> -> vector<12x81xf32>
    %16 = arith.addf %9, %15 : vector<12x81xf32>
    %c2 = arith.constant 2 : index
    %c0_17 = arith.constant 0 : index
    %c0_18 = arith.constant 0 : index
    %17 = vector.load %arg3[%c2, %c0_17, %c0_18] : memref<9x12x6xf32, #tpu.memory_space<vmem>>, vector<1x12x6xf32>
    %18 = vector.shape_cast %17 : vector<1x12x6xf32> to vector<12x6xf32>
    %cst_19 = arith.constant dense<0.000000e+00> : vector<12x81xf32>
    %19 = tpu.matmul %18, %1, %cst_19 {dimension_numbers = #tpu.dot_dimension_numbers<[1], [0], [0], [1], [0, 0, 1, 1], [], []>} : vector<12x6xf32>, vector<6x81xf32>, vector<12x81xf32> -> vector<12x81xf32>
    %c2_20 = arith.constant 2 : index
    %c0_21 = arith.constant 0 : index
    %c0_22 = arith.constant 0 : index
    %20 = vector.load %arg2[%c2_20, %c0_21, %c0_22] : memref<9x81x81xf32, #tpu.memory_space<vmem>>, vector<1x81x81xf32>
    %21 = vector.shape_cast %20 : vector<1x81x81xf32> to vector<81x81xf32>
    %cst_23 = arith.constant dense<0.000000e+00> : vector<12x81xf32>
    %22 = tpu.matmul %19, %21, %cst_23 {dimension_numbers = #tpu.dot_dimension_numbers<[1], [0], [0], [1], [0, 0, 1, 1], [], []>} : vector<12x81xf32>, vector<81x81xf32>, vector<12x81xf32> -> vector<12x81xf32>
    %23 = arith.addf %16, %22 : vector<12x81xf32>
    %c3 = arith.constant 3 : index
    %c0_24 = arith.constant 0 : index
    %c0_25 = arith.constant 0 : index
    %24 = vector.load %arg3[%c3, %c0_24, %c0_25] : memref<9x12x6xf32, #tpu.memory_space<vmem>>, vector<1x12x6xf32>
    %25 = vector.shape_cast %24 : vector<1x12x6xf32> to vector<12x6xf32>
    %cst_26 = arith.constant dense<0.000000e+00> : vector<12x81xf32>
    %26 = tpu.matmul %25, %1, %cst_26 {dimension_numbers = #tpu.dot_dimension_numbers<[1], [0], [0], [1], [0, 0, 1, 1], [], []>} : vector<12x6xf32>, vector<6x81xf32>, vector<12x81xf32> -> vector<12x81xf32>
    %c3_27 = arith.constant 3 : index
    %c0_28 = arith.constant 0 : index
    %c0_29 = arith.constant 0 : index
    %27 = vector.load %arg2[%c3_27, %c0_28, %c0_29] : memref<9x81x81xf32, #tpu.memory_space<vmem>>, vector<1x81x81xf32>
    %28 = vector.shape_cast %27 : vector<1x81x81xf32> to vector<81x81xf32>
    %cst_30 = arith.constant dense<0.000000e+00> : vector<12x81xf32>
    %29 = tpu.matmul %26, %28, %cst_30 {dimension_numbers = #tpu.dot_dimension_numbers<[1], [0], [0], [1], [0, 0, 1, 1], [], []>} : vector<12x81xf32>, vector<81x81xf32>, vector<12x81xf32> -> vector<12x81xf32>
    %30 = arith.addf %23, %29 : vector<12x81xf32>
    %c4 = arith.constant 4 : index
    %c0_31 = arith.constant 0 : index
    %c0_32 = arith.constant 0 : index
    %31 = vector.load %arg3[%c4, %c0_31, %c0_32] : memref<9x12x6xf32, #tpu.memory_space<vmem>>, vector<1x12x6xf32>
    %32 = vector.shape_cast %31 : vector<1x12x6xf32> to vector<12x6xf32>
    %cst_33 = arith.constant dense<0.000000e+00> : vector<12x81xf32>
    %33 = tpu.matmul %32, %1, %cst_33 {dimension_numbers = #tpu.dot_dimension_numbers<[1], [0], [0], [1], [0, 0, 1, 1], [], []>} : vector<12x6xf32>, vector<6x81xf32>, vector<12x81xf32> -> vector<12x81xf32>
    %c4_34 = arith.constant 4 : index
    %c0_35 = arith.constant 0 : index
    %c0_36 = arith.constant 0 : index
    %34 = vector.load %arg2[%c4_34, %c0_35, %c0_36] : memref<9x81x81xf32, #tpu.memory_space<vmem>>, vector<1x81x81xf32>
    %35 = vector.shape_cast %34 : vector<1x81x81xf32> to vector<81x81xf32>
    %cst_37 = arith.constant dense<0.000000e+00> : vector<12x81xf32>
    %36 = tpu.matmul %33, %35, %cst_37 {dimension_numbers = #tpu.dot_dimension_numbers<[1], [0], [0], [1], [0, 0, 1, 1], [], []>} : vector<12x81xf32>, vector<81x81xf32>, vector<12x81xf32> -> vector<12x81xf32>
    %37 = arith.addf %30, %36 : vector<12x81xf32>
    %c5 = arith.constant 5 : index
    %c0_38 = arith.constant 0 : index
    %c0_39 = arith.constant 0 : index
    %38 = vector.load %arg3[%c5, %c0_38, %c0_39] : memref<9x12x6xf32, #tpu.memory_space<vmem>>, vector<1x12x6xf32>
    %39 = vector.shape_cast %38 : vector<1x12x6xf32> to vector<12x6xf32>
    %cst_40 = arith.constant dense<0.000000e+00> : vector<12x81xf32>
    %40 = tpu.matmul %39, %1, %cst_40 {dimension_numbers = #tpu.dot_dimension_numbers<[1], [0], [0], [1], [0, 0, 1, 1], [], []>} : vector<12x6xf32>, vector<6x81xf32>, vector<12x81xf32> -> vector<12x81xf32>
    %c5_41 = arith.constant 5 : index
    %c0_42 = arith.constant 0 : index
    %c0_43 = arith.constant 0 : index
    %41 = vector.load %arg2[%c5_41, %c0_42, %c0_43] : memref<9x81x81xf32, #tpu.memory_space<vmem>>, vector<1x81x81xf32>
    %42 = vector.shape_cast %41 : vector<1x81x81xf32> to vector<81x81xf32>
    %cst_44 = arith.constant dense<0.000000e+00> : vector<12x81xf32>
    %43 = tpu.matmul %40, %42, %cst_44 {dimension_numbers = #tpu.dot_dimension_numbers<[1], [0], [0], [1], [0, 0, 1, 1], [], []>} : vector<12x81xf32>, vector<81x81xf32>, vector<12x81xf32> -> vector<12x81xf32>
    %44 = arith.addf %37, %43 : vector<12x81xf32>
    %c6 = arith.constant 6 : index
    %c0_45 = arith.constant 0 : index
    %c0_46 = arith.constant 0 : index
    %45 = vector.load %arg3[%c6, %c0_45, %c0_46] : memref<9x12x6xf32, #tpu.memory_space<vmem>>, vector<1x12x6xf32>
    %46 = vector.shape_cast %45 : vector<1x12x6xf32> to vector<12x6xf32>
    %cst_47 = arith.constant dense<0.000000e+00> : vector<12x81xf32>
    %47 = tpu.matmul %46, %1, %cst_47 {dimension_numbers = #tpu.dot_dimension_numbers<[1], [0], [0], [1], [0, 0, 1, 1], [], []>} : vector<12x6xf32>, vector<6x81xf32>, vector<12x81xf32> -> vector<12x81xf32>
    %c6_48 = arith.constant 6 : index
    %c0_49 = arith.constant 0 : index
    %c0_50 = arith.constant 0 : index
    %48 = vector.load %arg2[%c6_48, %c0_49, %c0_50] : memref<9x81x81xf32, #tpu.memory_space<vmem>>, vector<1x81x81xf32>
    %49 = vector.shape_cast %48 : vector<1x81x81xf32> to vector<81x81xf32>
    %cst_51 = arith.constant dense<0.000000e+00> : vector<12x81xf32>
    %50 = tpu.matmul %47, %49, %cst_51 {dimension_numbers = #tpu.dot_dimension_numbers<[1], [0], [0], [1], [0, 0, 1, 1], [], []>} : vector<12x81xf32>, vector<81x81xf32>, vector<12x81xf32> -> vector<12x81xf32>
    %51 = arith.addf %44, %50 : vector<12x81xf32>
    %c7 = arith.constant 7 : index
    %c0_52 = arith.constant 0 : index
    %c0_53 = arith.constant 0 : index
    %52 = vector.load %arg3[%c7, %c0_52, %c0_53] : memref<9x12x6xf32, #tpu.memory_space<vmem>>, vector<1x12x6xf32>
    %53 = vector.shape_cast %52 : vector<1x12x6xf32> to vector<12x6xf32>
    %cst_54 = arith.constant dense<0.000000e+00> : vector<12x81xf32>
    %54 = tpu.matmul %53, %1, %cst_54 {dimension_numbers = #tpu.dot_dimension_numbers<[1], [0], [0], [1], [0, 0, 1, 1], [], []>} : vector<12x6xf32>, vector<6x81xf32>, vector<12x81xf32> -> vector<12x81xf32>
    %c7_55 = arith.constant 7 : index
    %c0_56 = arith.constant 0 : index
    %c0_57 = arith.constant 0 : index
    %55 = vector.load %arg2[%c7_55, %c0_56, %c0_57] : memref<9x81x81xf32, #tpu.memory_space<vmem>>, vector<1x81x81xf32>
    %56 = vector.shape_cast %55 : vector<1x81x81xf32> to vector<81x81xf32>
    %cst_58 = arith.constant dense<0.000000e+00> : vector<12x81xf32>
    %57 = tpu.matmul %54, %56, %cst_58 {dimension_numbers = #tpu.dot_dimension_numbers<[1], [0], [0], [1], [0, 0, 1, 1], [], []>} : vector<12x81xf32>, vector<81x81xf32>, vector<12x81xf32> -> vector<12x81xf32>
    %58 = arith.addf %51, %57 : vector<12x81xf32>
    %c8 = arith.constant 8 : index
    %c0_59 = arith.constant 0 : index
    %c0_60 = arith.constant 0 : index
    %59 = vector.load %arg3[%c8, %c0_59, %c0_60] : memref<9x12x6xf32, #tpu.memory_space<vmem>>, vector<1x12x6xf32>
    %60 = vector.shape_cast %59 : vector<1x12x6xf32> to vector<12x6xf32>
    %cst_61 = arith.constant dense<0.000000e+00> : vector<12x81xf32>
    %61 = tpu.matmul %60, %1, %cst_61 {dimension_numbers = #tpu.dot_dimension_numbers<[1], [0], [0], [1], [0, 0, 1, 1], [], []>} : vector<12x6xf32>, vector<6x81xf32>, vector<12x81xf32> -> vector<12x81xf32>
    %c8_62 = arith.constant 8 : index
    %c0_63 = arith.constant 0 : index
    %c0_64 = arith.constant 0 : index
    %62 = vector.load %arg2[%c8_62, %c0_63, %c0_64] : memref<9x81x81xf32, #tpu.memory_space<vmem>>, vector<1x81x81xf32>
    %63 = vector.shape_cast %62 : vector<1x81x81xf32> to vector<81x81xf32>
    %cst_65 = arith.constant dense<0.000000e+00> : vector<12x81xf32>
    %64 = tpu.matmul %61, %63, %cst_65 {dimension_numbers = #tpu.dot_dimension_numbers<[1], [0], [0], [1], [0, 0, 1, 1], [], []>} : vector<12x81xf32>, vector<81x81xf32>, vector<12x81xf32> -> vector<12x81xf32>
    %65 = arith.addf %58, %64 : vector<12x81xf32>
    %cst_66 = arith.constant dense<0.000000e+00> : vector<12xf32>
    %66 = vector.multi_reduction <add>, %65, %cst_66 [1] : vector<12x81xf32> to vector<12xf32>
    %67 = vector.shape_cast %66 : vector<12xf32> to vector<12x1xf32>
    %cst_67 = arith.constant 8.100000e+01 : f32
    %68 = vector.broadcast %cst_67 : f32 to vector<12x1xf32>
    %69 = arith.divf %67, %68 : vector<12x1xf32>
    %cst_68 = arith.constant dense<0.000000e+00> : vector<1xf32>
    %70 = vector.multi_reduction <add>, %69, %cst_68 [0] : vector<12x1xf32> to vector<1xf32>
    %71 = vector.shape_cast %70 : vector<1xf32> to vector<1x1xf32>
    %cst_69 = arith.constant 1.200000e+01 : f32
    %72 = vector.broadcast %cst_69 : f32 to vector<1x1xf32>
    %73 = arith.divf %71, %72 : vector<1x1xf32>
    %74 = vector.broadcast %73 : vector<1x1xf32> to vector<12x81xf32>
    %75 = arith.subf %65, %74 : vector<12x81xf32>
    %76 = arith.mulf %75, %75 : vector<12x81xf32>
    %cst_70 = arith.constant dense<0.000000e+00> : vector<12xf32>
    %77 = vector.multi_reduction <add>, %76, %cst_70 [1] : vector<12x81xf32> to vector<12xf32>
    %78 = vector.shape_cast %77 : vector<12xf32> to vector<12x1xf32>
    %cst_71 = arith.constant 8.100000e+01 : f32
    %79 = vector.broadcast %cst_71 : f32 to vector<12x1xf32>
    %80 = arith.divf %78, %79 : vector<12x1xf32>
    %cst_72 = arith.constant dense<0.000000e+00> : vector<1xf32>
    %81 = vector.multi_reduction <add>, %80, %cst_72 [0] : vector<12x1xf32> to vector<1xf32>
    %82 = vector.shape_cast %81 : vector<1xf32> to vector<1x1xf32>
    %cst_73 = arith.constant 1.200000e+01 : f32
    %83 = vector.broadcast %cst_73 : f32 to vector<1x1xf32>
    %84 = arith.divf %82, %83 : vector<1x1xf32>
    %85 = vector.broadcast %73 : vector<1x1xf32> to vector<12x81xf32>
    %86 = arith.subf %65, %85 : vector<12x81xf32>
    %cst_74 = arith.constant 9.99999974E-6 : f32
    %87 = vector.broadcast %cst_74 : f32 to vector<1x1xf32>
    %88 = arith.addf %84, %87 : vector<1x1xf32>
    %89 = math.rsqrt %88 : vector<1x1xf32>
    %90 = vector.broadcast %89 : vector<1x1xf32> to vector<12x81xf32>
    %91 = arith.mulf %86, %90 : vector<12x81xf32>
    %c0_75 = arith.constant 0 : index
    %c0_76 = arith.constant 0 : index
    %92 = vector.load %arg4[%c0_75, %c0_76] : memref<12x1xf32, #tpu.memory_space<vmem>>, vector<12x1xf32>
    %93 = vector.broadcast %92 : vector<12x1xf32> to vector<12x81xf32>
    %94 = arith.mulf %91, %93 : vector<12x81xf32>
    %c0_77 = arith.constant 0 : index
    %c0_78 = arith.constant 0 : index
    %95 = vector.load %arg5[%c0_77, %c0_78] : memref<12x1xf32, #tpu.memory_space<vmem>>, vector<12x1xf32>
    %96 = vector.broadcast %95 : vector<12x1xf32> to vector<12x81xf32>
    %97 = arith.addf %94, %96 : vector<12x81xf32>
    %cst_79 = arith.constant 5.000000e-01 : f32
    %98 = vector.broadcast %cst_79 : f32 to vector<12x81xf32>
    %99 = arith.mulf %98, %97 : vector<12x81xf32>
    %cst_80 = arith.constant 0.707106769 : f32
    %100 = vector.broadcast %cst_80 : f32 to vector<12x81xf32>
    %101 = arith.mulf %97, %100 : vector<12x81xf32>
    %cst_81 = arith.constant 0.000000e+00 : f32
    %102 = vector.broadcast %cst_81 : f32 to vector<12x81xf32>
    %103 = arith.cmpf oge, %101, %102 : vector<12x81xf32>
    %cst_82 = arith.constant 1.000000e+00 : f32
    %cst_83 = arith.constant -1.000000e+00 : f32
    %104 = vector.broadcast %cst_82 : f32 to vector<12x81xf32>
    %105 = vector.broadcast %cst_83 : f32 to vector<12x81xf32>
    %106 = arith.select %103, %104, %105 : vector<12x81xi1>, vector<12x81xf32>
    %107 = math.absf %101 : vector<12x81xf32>
    %cst_84 = arith.constant 0.327591091 : f32
    %108 = vector.broadcast %cst_84 : f32 to vector<12x81xf32>
    %109 = arith.mulf %108, %107 : vector<12x81xf32>
    %cst_85 = arith.constant 1.000000e+00 : f32
    %110 = vector.broadcast %cst_85 : f32 to vector<12x81xf32>
    %111 = arith.addf %110, %109 : vector<12x81xf32>
    %112 = tpu.reciprocal %111 {approx = true} : vector<12x81xf32> -> vector<12x81xf32>
    %cst_86 = arith.constant 1.06140542 : f32
    %113 = vector.broadcast %cst_86 : f32 to vector<12x81xf32>
    %114 = arith.mulf %112, %113 : vector<12x81xf32>
    %cst_87 = arith.constant -1.45315206 : f32
    %115 = vector.broadcast %cst_87 : f32 to vector<12x81xf32>
    %116 = arith.addf %115, %114 : vector<12x81xf32>
    %117 = arith.mulf %112, %116 : vector<12x81xf32>
    %cst_88 = arith.constant 1.42141378 : f32
    %118 = vector.broadcast %cst_88 : f32 to vector<12x81xf32>
    %119 = arith.addf %118, %117 : vector<12x81xf32>
    %120 = arith.mulf %112, %119 : vector<12x81xf32>
    %cst_89 = arith.constant -0.284496725 : f32
    %121 = vector.broadcast %cst_89 : f32 to vector<12x81xf32>
    %122 = arith.addf %121, %120 : vector<12x81xf32>
    %123 = arith.mulf %112, %122 : vector<12x81xf32>
    %cst_90 = arith.constant 0.254829586 : f32
    %124 = vector.broadcast %cst_90 : f32 to vector<12x81xf32>
    %125 = arith.addf %124, %123 : vector<12x81xf32>
    %126 = arith.mulf %112, %125 : vector<12x81xf32>
    %cst_91 = arith.constant 0.000000e+00 : f32
    %127 = vector.broadcast %cst_91 : f32 to vector<12x81xf32>
    %128 = arith.subf %127, %107 : vector<12x81xf32>
    %129 = arith.mulf %128, %107 : vector<12x81xf32>
    %130 = math.exp %129 : vector<12x81xf32>
    %131 = arith.mulf %126, %130 : vector<12x81xf32>
    %cst_92 = arith.constant 1.000000e+00 : f32
    %132 = vector.broadcast %cst_92 : f32 to vector<12x81xf32>
    %133 = arith.subf %132, %131 : vector<12x81xf32>
    %134 = arith.mulf %106, %133 : vector<12x81xf32>
    %cst_93 = arith.constant 1.000000e+00 : f32
    %135 = vector.broadcast %cst_93 : f32 to vector<12x81xf32>
    %136 = arith.addf %135, %134 : vector<12x81xf32>
    %137 = arith.mulf %99, %136 : vector<12x81xf32>
    %cst_94 = arith.constant 0.000000e+00 : f32
    %138 = vector.broadcast %cst_94 : f32 to vector<12x81xf32>
    %c0_95 = arith.constant 0 : index
    %c0_96 = arith.constant 0 : index
    %c0_97 = arith.constant 0 : index
    %139 = vector.load %arg6[%c0_95, %c0_96, %c0_97] : memref<9x12x12xf32, #tpu.memory_space<vmem>>, vector<1x12x12xf32>
    %140 = vector.shape_cast %139 : vector<1x12x12xf32> to vector<12x12xf32>
    %cst_98 = arith.constant dense<0.000000e+00> : vector<12x81xf32>
    %141 = tpu.matmul %140, %137, %cst_98 {dimension_numbers = #tpu.dot_dimension_numbers<[1], [0], [0], [1], [0, 0, 1, 1], [], []>} : vector<12x12xf32>, vector<12x81xf32>, vector<12x81xf32> -> vector<12x81xf32>
    %c0_99 = arith.constant 0 : index
    %c0_100 = arith.constant 0 : index
    %c0_101 = arith.constant 0 : index
    %142 = vector.load %arg2[%c0_99, %c0_100, %c0_101] : memref<9x81x81xf32, #tpu.memory_space<vmem>>, vector<1x81x81xf32>
    %143 = vector.shape_cast %142 : vector<1x81x81xf32> to vector<81x81xf32>
    %cst_102 = arith.constant dense<0.000000e+00> : vector<12x81xf32>
    %144 = tpu.matmul %141, %143, %cst_102 {dimension_numbers = #tpu.dot_dimension_numbers<[1], [0], [0], [1], [0, 0, 1, 1], [], []>} : vector<12x81xf32>, vector<81x81xf32>, vector<12x81xf32> -> vector<12x81xf32>
    %145 = arith.addf %138, %144 : vector<12x81xf32>
    %c1_103 = arith.constant 1 : index
    %c0_104 = arith.constant 0 : index
    %c0_105 = arith.constant 0 : index
    %146 = vector.load %arg6[%c1_103, %c0_104, %c0_105] : memref<9x12x12xf32, #tpu.memory_space<vmem>>, vector<1x12x12xf32>
    %147 = vector.shape_cast %146 : vector<1x12x12xf32> to vector<12x12xf32>
    %cst_106 = arith.constant dense<0.000000e+00> : vector<12x81xf32>
    %148 = tpu.matmul %147, %137, %cst_106 {dimension_numbers = #tpu.dot_dimension_numbers<[1], [0], [0], [1], [0, 0, 1, 1], [], []>} : vector<12x12xf32>, vector<12x81xf32>, vector<12x81xf32> -> vector<12x81xf32>
    %c1_107 = arith.constant 1 : index
    %c0_108 = arith.constant 0 : index
    %c0_109 = arith.constant 0 : index
    %149 = vector.load %arg2[%c1_107, %c0_108, %c0_109] : memref<9x81x81xf32, #tpu.memory_space<vmem>>, vector<1x81x81xf32>
    %150 = vector.shape_cast %149 : vector<1x81x81xf32> to vector<81x81xf32>
    %cst_110 = arith.constant dense<0.000000e+00> : vector<12x81xf32>
    %151 = tpu.matmul %148, %150, %cst_110 {dimension_numbers = #tpu.dot_dimension_numbers<[1], [0], [0], [1], [0, 0, 1, 1], [], []>} : vector<12x81xf32>, vector<81x81xf32>, vector<12x81xf32> -> vector<12x81xf32>
    %152 = arith.addf %145, %151 : vector<12x81xf32>
    %c2_111 = arith.constant 2 : index
    %c0_112 = arith.constant 0 : index
    %c0_113 = arith.constant 0 : index
    %153 = vector.load %arg6[%c2_111, %c0_112, %c0_113] : memref<9x12x12xf32, #tpu.memory_space<vmem>>, vector<1x12x12xf32>
    %154 = vector.shape_cast %153 : vector<1x12x12xf32> to vector<12x12xf32>
    %cst_114 = arith.constant dense<0.000000e+00> : vector<12x81xf32>
    %155 = tpu.matmul %154, %137, %cst_114 {dimension_numbers = #tpu.dot_dimension_numbers<[1], [0], [0], [1], [0, 0, 1, 1], [], []>} : vector<12x12xf32>, vector<12x81xf32>, vector<12x81xf32> -> vector<12x81xf32>
    %c2_115 = arith.constant 2 : index
    %c0_116 = arith.constant 0 : index
    %c0_117 = arith.constant 0 : index
    %156 = vector.load %arg2[%c2_115, %c0_116, %c0_117] : memref<9x81x81xf32, #tpu.memory_space<vmem>>, vector<1x81x81xf32>
    %157 = vector.shape_cast %156 : vector<1x81x81xf32> to vector<81x81xf32>
    %cst_118 = arith.constant dense<0.000000e+00> : vector<12x81xf32>
    %158 = tpu.matmul %155, %157, %cst_118 {dimension_numbers = #tpu.dot_dimension_numbers<[1], [0], [0], [1], [0, 0, 1, 1], [], []>} : vector<12x81xf32>, vector<81x81xf32>, vector<12x81xf32> -> vector<12x81xf32>
    %159 = arith.addf %152, %158 : vector<12x81xf32>
    %c3_119 = arith.constant 3 : index
    %c0_120 = arith.constant 0 : index
    %c0_121 = arith.constant 0 : index
    %160 = vector.load %arg6[%c3_119, %c0_120, %c0_121] : memref<9x12x12xf32, #tpu.memory_space<vmem>>, vector<1x12x12xf32>
    %161 = vector.shape_cast %160 : vector<1x12x12xf32> to vector<12x12xf32>
    %cst_122 = arith.constant dense<0.000000e+00> : vector<12x81xf32>
    %162 = tpu.matmul %161, %137, %cst_122 {dimension_numbers = #tpu.dot_dimension_numbers<[1], [0], [0], [1], [0, 0, 1, 1], [], []>} : vector<12x12xf32>, vector<12x81xf32>, vector<12x81xf32> -> vector<12x81xf32>
    %c3_123 = arith.constant 3 : index
    %c0_124 = arith.constant 0 : index
    %c0_125 = arith.constant 0 : index
    %163 = vector.load %arg2[%c3_123, %c0_124, %c0_125] : memref<9x81x81xf32, #tpu.memory_space<vmem>>, vector<1x81x81xf32>
    %164 = vector.shape_cast %163 : vector<1x81x81xf32> to vector<81x81xf32>
    %cst_126 = arith.constant dense<0.000000e+00> : vector<12x81xf32>
    %165 = tpu.matmul %162, %164, %cst_126 {dimension_numbers = #tpu.dot_dimension_numbers<[1], [0], [0], [1], [0, 0, 1, 1], [], []>} : vector<12x81xf32>, vector<81x81xf32>, vector<12x81xf32> -> vector<12x81xf32>
    %166 = arith.addf %159, %165 : vector<12x81xf32>
    %c4_127 = arith.constant 4 : index
    %c0_128 = arith.constant 0 : index
    %c0_129 = arith.constant 0 : index
    %167 = vector.load %arg6[%c4_127, %c0_128, %c0_129] : memref<9x12x12xf32, #tpu.memory_space<vmem>>, vector<1x12x12xf32>
    %168 = vector.shape_cast %167 : vector<1x12x12xf32> to vector<12x12xf32>
    %cst_130 = arith.constant dense<0.000000e+00> : vector<12x81xf32>
    %169 = tpu.matmul %168, %137, %cst_130 {dimension_numbers = #tpu.dot_dimension_numbers<[1], [0], [0], [1], [0, 0, 1, 1], [], []>} : vector<12x12xf32>, vector<12x81xf32>, vector<12x81xf32> -> vector<12x81xf32>
    %c4_131 = arith.constant 4 : index
    %c0_132 = arith.constant 0 : index
    %c0_133 = arith.constant 0 : index
    %170 = vector.load %arg2[%c4_131, %c0_132, %c0_133] : memref<9x81x81xf32, #tpu.memory_space<vmem>>, vector<1x81x81xf32>
    %171 = vector.shape_cast %170 : vector<1x81x81xf32> to vector<81x81xf32>
    %cst_134 = arith.constant dense<0.000000e+00> : vector<12x81xf32>
    %172 = tpu.matmul %169, %171, %cst_134 {dimension_numbers = #tpu.dot_dimension_numbers<[1], [0], [0], [1], [0, 0, 1, 1], [], []>} : vector<12x81xf32>, vector<81x81xf32>, vector<12x81xf32> -> vector<12x81xf32>
    %173 = arith.addf %166, %172 : vector<12x81xf32>
    %c5_135 = arith.constant 5 : index
    %c0_136 = arith.constant 0 : index
    %c0_137 = arith.constant 0 : index
    %174 = vector.load %arg6[%c5_135, %c0_136, %c0_137] : memref<9x12x12xf32, #tpu.memory_space<vmem>>, vector<1x12x12xf32>
    %175 = vector.shape_cast %174 : vector<1x12x12xf32> to vector<12x12xf32>
    %cst_138 = arith.constant dense<0.000000e+00> : vector<12x81xf32>
    %176 = tpu.matmul %175, %137, %cst_138 {dimension_numbers = #tpu.dot_dimension_numbers<[1], [0], [0], [1], [0, 0, 1, 1], [], []>} : vector<12x12xf32>, vector<12x81xf32>, vector<12x81xf32> -> vector<12x81xf32>
    %c5_139 = arith.constant 5 : index
    %c0_140 = arith.constant 0 : index
    %c0_141 = arith.constant 0 : index
    %177 = vector.load %arg2[%c5_139, %c0_140, %c0_141] : memref<9x81x81xf32, #tpu.memory_space<vmem>>, vector<1x81x81xf32>
    %178 = vector.shape_cast %177 : vector<1x81x81xf32> to vector<81x81xf32>
    %cst_142 = arith.constant dense<0.000000e+00> : vector<12x81xf32>
    %179 = tpu.matmul %176, %178, %cst_142 {dimension_numbers = #tpu.dot_dimension_numbers<[1], [0], [0], [1], [0, 0, 1, 1], [], []>} : vector<12x81xf32>, vector<81x81xf32>, vector<12x81xf32> -> vector<12x81xf32>
    %180 = arith.addf %173, %179 : vector<12x81xf32>
    %c6_143 = arith.constant 6 : index
    %c0_144 = arith.constant 0 : index
    %c0_145 = arith.constant 0 : index
    %181 = vector.load %arg6[%c6_143, %c0_144, %c0_145] : memref<9x12x12xf32, #tpu.memory_space<vmem>>, vector<1x12x12xf32>
    %182 = vector.shape_cast %181 : vector<1x12x12xf32> to vector<12x12xf32>
    %cst_146 = arith.constant dense<0.000000e+00> : vector<12x81xf32>
    %183 = tpu.matmul %182, %137, %cst_146 {dimension_numbers = #tpu.dot_dimension_numbers<[1], [0], [0], [1], [0, 0, 1, 1], [], []>} : vector<12x12xf32>, vector<12x81xf32>, vector<12x81xf32> -> vector<12x81xf32>
    %c6_147 = arith.constant 6 : index
    %c0_148 = arith.constant 0 : index
    %c0_149 = arith.constant 0 : index
    %184 = vector.load %arg2[%c6_147, %c0_148, %c0_149] : memref<9x81x81xf32, #tpu.memory_space<vmem>>, vector<1x81x81xf32>
    %185 = vector.shape_cast %184 : vector<1x81x81xf32> to vector<81x81xf32>
    %cst_150 = arith.constant dense<0.000000e+00> : vector<12x81xf32>
    %186 = tpu.matmul %183, %185, %cst_150 {dimension_numbers = #tpu.dot_dimension_numbers<[1], [0], [0], [1], [0, 0, 1, 1], [], []>} : vector<12x81xf32>, vector<81x81xf32>, vector<12x81xf32> -> vector<12x81xf32>
    %187 = arith.addf %180, %186 : vector<12x81xf32>
    %c7_151 = arith.constant 7 : index
    %c0_152 = arith.constant 0 : index
    %c0_153 = arith.constant 0 : index
    %188 = vector.load %arg6[%c7_151, %c0_152, %c0_153] : memref<9x12x12xf32, #tpu.memory_space<vmem>>, vector<1x12x12xf32>
    %189 = vector.shape_cast %188 : vector<1x12x12xf32> to vector<12x12xf32>
    %cst_154 = arith.constant dense<0.000000e+00> : vector<12x81xf32>
    %190 = tpu.matmul %189, %137, %cst_154 {dimension_numbers = #tpu.dot_dimension_numbers<[1], [0], [0], [1], [0, 0, 1, 1], [], []>} : vector<12x12xf32>, vector<12x81xf32>, vector<12x81xf32> -> vector<12x81xf32>
    %c7_155 = arith.constant 7 : index
    %c0_156 = arith.constant 0 : index
    %c0_157 = arith.constant 0 : index
    %191 = vector.load %arg2[%c7_155, %c0_156, %c0_157] : memref<9x81x81xf32, #tpu.memory_space<vmem>>, vector<1x81x81xf32>
    %192 = vector.shape_cast %191 : vector<1x81x81xf32> to vector<81x81xf32>
    %cst_158 = arith.constant dense<0.000000e+00> : vector<12x81xf32>
    %193 = tpu.matmul %190, %192, %cst_158 {dimension_numbers = #tpu.dot_dimension_numbers<[1], [0], [0], [1], [0, 0, 1, 1], [], []>} : vector<12x81xf32>, vector<81x81xf32>, vector<12x81xf32> -> vector<12x81xf32>
    %194 = arith.addf %187, %193 : vector<12x81xf32>
    %c8_159 = arith.constant 8 : index
    %c0_160 = arith.constant 0 : index
    %c0_161 = arith.constant 0 : index
    %195 = vector.load %arg6[%c8_159, %c0_160, %c0_161] : memref<9x12x12xf32, #tpu.memory_space<vmem>>, vector<1x12x12xf32>
    %196 = vector.shape_cast %195 : vector<1x12x12xf32> to vector<12x12xf32>
    %cst_162 = arith.constant dense<0.000000e+00> : vector<12x81xf32>
    %197 = tpu.matmul %196, %137, %cst_162 {dimension_numbers = #tpu.dot_dimension_numbers<[1], [0], [0], [1], [0, 0, 1, 1], [], []>} : vector<12x12xf32>, vector<12x81xf32>, vector<12x81xf32> -> vector<12x81xf32>
    %c8_163 = arith.constant 8 : index
    %c0_164 = arith.constant 0 : index
    %c0_165 = arith.constant 0 : index
    %198 = vector.load %arg2[%c8_163, %c0_164, %c0_165] : memref<9x81x81xf32, #tpu.memory_space<vmem>>, vector<1x81x81xf32>
    %199 = vector.shape_cast %198 : vector<1x81x81xf32> to vector<81x81xf32>
    %cst_166 = arith.constant dense<0.000000e+00> : vector<12x81xf32>
    %200 = tpu.matmul %197, %199, %cst_166 {dimension_numbers = #tpu.dot_dimension_numbers<[1], [0], [0], [1], [0, 0, 1, 1], [], []>} : vector<12x81xf32>, vector<81x81xf32>, vector<12x81xf32> -> vector<12x81xf32>
    %201 = arith.addf %194, %200 : vector<12x81xf32>
    %cst_167 = arith.constant dense<0.000000e+00> : vector<12xf32>
    %202 = vector.multi_reduction <add>, %201, %cst_167 [1] : vector<12x81xf32> to vector<12xf32>
    %203 = vector.shape_cast %202 : vector<12xf32> to vector<12x1xf32>
    %cst_168 = arith.constant 8.100000e+01 : f32
    %204 = vector.broadcast %cst_168 : f32 to vector<12x1xf32>
    %205 = arith.divf %203, %204 : vector<12x1xf32>
    %cst_169 = arith.constant dense<0.000000e+00> : vector<1xf32>
    %206 = vector.multi_reduction <add>, %205, %cst_169 [0] : vector<12x1xf32> to vector<1xf32>
    %207 = vector.shape_cast %206 : vector<1xf32> to vector<1x1xf32>
    %cst_170 = arith.constant 1.200000e+01 : f32
    %208 = vector.broadcast %cst_170 : f32 to vector<1x1xf32>
    %209 = arith.divf %207, %208 : vector<1x1xf32>
    %210 = vector.broadcast %209 : vector<1x1xf32> to vector<12x81xf32>
    %211 = arith.subf %201, %210 : vector<12x81xf32>
    %212 = arith.mulf %211, %211 : vector<12x81xf32>
    %cst_171 = arith.constant dense<0.000000e+00> : vector<12xf32>
    %213 = vector.multi_reduction <add>, %212, %cst_171 [1] : vector<12x81xf32> to vector<12xf32>
    %214 = vector.shape_cast %213 : vector<12xf32> to vector<12x1xf32>
    %cst_172 = arith.constant 8.100000e+01 : f32
    %215 = vector.broadcast %cst_172 : f32 to vector<12x1xf32>
    %216 = arith.divf %214, %215 : vector<12x1xf32>
    %cst_173 = arith.constant dense<0.000000e+00> : vector<1xf32>
    %217 = vector.multi_reduction <add>, %216, %cst_173 [0] : vector<12x1xf32> to vector<1xf32>
    %218 = vector.shape_cast %217 : vector<1xf32> to vector<1x1xf32>
    %cst_174 = arith.constant 1.200000e+01 : f32
    %219 = vector.broadcast %cst_174 : f32 to vector<1x1xf32>
    %220 = arith.divf %218, %219 : vector<1x1xf32>
    %221 = vector.broadcast %209 : vector<1x1xf32> to vector<12x81xf32>
    %222 = arith.subf %201, %221 : vector<12x81xf32>
    %cst_175 = arith.constant 9.99999974E-6 : f32
    %223 = vector.broadcast %cst_175 : f32 to vector<1x1xf32>
    %224 = arith.addf %220, %223 : vector<1x1xf32>
    %225 = math.rsqrt %224 : vector<1x1xf32>
    %226 = vector.broadcast %225 : vector<1x1xf32> to vector<12x81xf32>
    %227 = arith.mulf %222, %226 : vector<12x81xf32>
    %c0_176 = arith.constant 0 : index
    %c0_177 = arith.constant 0 : index
    %228 = vector.load %arg7[%c0_176, %c0_177] : memref<12x1xf32, #tpu.memory_space<vmem>>, vector<12x1xf32>
    %229 = vector.broadcast %228 : vector<12x1xf32> to vector<12x81xf32>
    %230 = arith.mulf %227, %229 : vector<12x81xf32>
    %c0_178 = arith.constant 0 : index
    %c0_179 = arith.constant 0 : index
    %231 = vector.load %arg8[%c0_178, %c0_179] : memref<12x1xf32, #tpu.memory_space<vmem>>, vector<12x1xf32>
    %232 = vector.broadcast %231 : vector<12x1xf32> to vector<12x81xf32>
    %233 = arith.addf %230, %232 : vector<12x81xf32>
    %cst_180 = arith.constant 0.000000e+00 : f32
    %234 = vector.broadcast %cst_180 : f32 to vector<24x81xf32>
    %c0_181 = arith.constant 0 : index
    %c0_182 = arith.constant 0 : index
    %c0_183 = arith.constant 0 : index
    %235 = vector.load %arg9[%c0_181, %c0_182, %c0_183] : memref<9x24x12xf32, #tpu.memory_space<vmem>>, vector<1x24x12xf32>
    %236 = vector.shape_cast %235 : vector<1x24x12xf32> to vector<24x12xf32>
    %cst_184 = arith.constant dense<0.000000e+00> : vector<24x81xf32>
    %237 = tpu.matmul %236, %233, %cst_184 {dimension_numbers = #tpu.dot_dimension_numbers<[1], [0], [0], [1], [0, 0, 1, 1], [], []>} : vector<24x12xf32>, vector<12x81xf32>, vector<24x81xf32> -> vector<24x81xf32>
    %c0_185 = arith.constant 0 : index
    %c0_186 = arith.constant 0 : index
    %c0_187 = arith.constant 0 : index
    %238 = vector.load %arg2[%c0_185, %c0_186, %c0_187] : memref<9x81x81xf32, #tpu.memory_space<vmem>>, vector<1x81x81xf32>
    %239 = vector.shape_cast %238 : vector<1x81x81xf32> to vector<81x81xf32>
    %cst_188 = arith.constant dense<0.000000e+00> : vector<24x81xf32>
    %240 = tpu.matmul %237, %239, %cst_188 {dimension_numbers = #tpu.dot_dimension_numbers<[1], [0], [0], [1], [0, 0, 1, 1], [], []>} : vector<24x81xf32>, vector<81x81xf32>, vector<24x81xf32> -> vector<24x81xf32>
    %241 = arith.addf %234, %240 : vector<24x81xf32>
    %c1_189 = arith.constant 1 : index
    %c0_190 = arith.constant 0 : index
    %c0_191 = arith.constant 0 : index
    %242 = vector.load %arg9[%c1_189, %c0_190, %c0_191] : memref<9x24x12xf32, #tpu.memory_space<vmem>>, vector<1x24x12xf32>
    %243 = vector.shape_cast %242 : vector<1x24x12xf32> to vector<24x12xf32>
    %cst_192 = arith.constant dense<0.000000e+00> : vector<24x81xf32>
    %244 = tpu.matmul %243, %233, %cst_192 {dimension_numbers = #tpu.dot_dimension_numbers<[1], [0], [0], [1], [0, 0, 1, 1], [], []>} : vector<24x12xf32>, vector<12x81xf32>, vector<24x81xf32> -> vector<24x81xf32>
    %c1_193 = arith.constant 1 : index
    %c0_194 = arith.constant 0 : index
    %c0_195 = arith.constant 0 : index
    %245 = vector.load %arg2[%c1_193, %c0_194, %c0_195] : memref<9x81x81xf32, #tpu.memory_space<vmem>>, vector<1x81x81xf32>
    %246 = vector.shape_cast %245 : vector<1x81x81xf32> to vector<81x81xf32>
    %cst_196 = arith.constant dense<0.000000e+00> : vector<24x81xf32>
    %247 = tpu.matmul %244, %246, %cst_196 {dimension_numbers = #tpu.dot_dimension_numbers<[1], [0], [0], [1], [0, 0, 1, 1], [], []>} : vector<24x81xf32>, vector<81x81xf32>, vector<24x81xf32> -> vector<24x81xf32>
    %248 = arith.addf %241, %247 : vector<24x81xf32>
    %c2_197 = arith.constant 2 : index
    %c0_198 = arith.constant 0 : index
    %c0_199 = arith.constant 0 : index
    %249 = vector.load %arg9[%c2_197, %c0_198, %c0_199] : memref<9x24x12xf32, #tpu.memory_space<vmem>>, vector<1x24x12xf32>
    %250 = vector.shape_cast %249 : vector<1x24x12xf32> to vector<24x12xf32>
    %cst_200 = arith.constant dense<0.000000e+00> : vector<24x81xf32>
    %251 = tpu.matmul %250, %233, %cst_200 {dimension_numbers = #tpu.dot_dimension_numbers<[1], [0], [0], [1], [0, 0, 1, 1], [], []>} : vector<24x12xf32>, vector<12x81xf32>, vector<24x81xf32> -> vector<24x81xf32>
    %c2_201 = arith.constant 2 : index
    %c0_202 = arith.constant 0 : index
    %c0_203 = arith.constant 0 : index
    %252 = vector.load %arg2[%c2_201, %c0_202, %c0_203] : memref<9x81x81xf32, #tpu.memory_space<vmem>>, vector<1x81x81xf32>
    %253 = vector.shape_cast %252 : vector<1x81x81xf32> to vector<81x81xf32>
    %cst_204 = arith.constant dense<0.000000e+00> : vector<24x81xf32>
    %254 = tpu.matmul %251, %253, %cst_204 {dimension_numbers = #tpu.dot_dimension_numbers<[1], [0], [0], [1], [0, 0, 1, 1], [], []>} : vector<24x81xf32>, vector<81x81xf32>, vector<24x81xf32> -> vector<24x81xf32>
    %255 = arith.addf %248, %254 : vector<24x81xf32>
    %c3_205 = arith.constant 3 : index
    %c0_206 = arith.constant 0 : index
    %c0_207 = arith.constant 0 : index
    %256 = vector.load %arg9[%c3_205, %c0_206, %c0_207] : memref<9x24x12xf32, #tpu.memory_space<vmem>>, vector<1x24x12xf32>
    %257 = vector.shape_cast %256 : vector<1x24x12xf32> to vector<24x12xf32>
    %cst_208 = arith.constant dense<0.000000e+00> : vector<24x81xf32>
    %258 = tpu.matmul %257, %233, %cst_208 {dimension_numbers = #tpu.dot_dimension_numbers<[1], [0], [0], [1], [0, 0, 1, 1], [], []>} : vector<24x12xf32>, vector<12x81xf32>, vector<24x81xf32> -> vector<24x81xf32>
    %c3_209 = arith.constant 3 : index
    %c0_210 = arith.constant 0 : index
    %c0_211 = arith.constant 0 : index
    %259 = vector.load %arg2[%c3_209, %c0_210, %c0_211] : memref<9x81x81xf32, #tpu.memory_space<vmem>>, vector<1x81x81xf32>
    %260 = vector.shape_cast %259 : vector<1x81x81xf32> to vector<81x81xf32>
    %cst_212 = arith.constant dense<0.000000e+00> : vector<24x81xf32>
    %261 = tpu.matmul %258, %260, %cst_212 {dimension_numbers = #tpu.dot_dimension_numbers<[1], [0], [0], [1], [0, 0, 1, 1], [], []>} : vector<24x81xf32>, vector<81x81xf32>, vector<24x81xf32> -> vector<24x81xf32>
    %262 = arith.addf %255, %261 : vector<24x81xf32>
    %c4_213 = arith.constant 4 : index
    %c0_214 = arith.constant 0 : index
    %c0_215 = arith.constant 0 : index
    %263 = vector.load %arg9[%c4_213, %c0_214, %c0_215] : memref<9x24x12xf32, #tpu.memory_space<vmem>>, vector<1x24x12xf32>
    %264 = vector.shape_cast %263 : vector<1x24x12xf32> to vector<24x12xf32>
    %cst_216 = arith.constant dense<0.000000e+00> : vector<24x81xf32>
    %265 = tpu.matmul %264, %233, %cst_216 {dimension_numbers = #tpu.dot_dimension_numbers<[1], [0], [0], [1], [0, 0, 1, 1], [], []>} : vector<24x12xf32>, vector<12x81xf32>, vector<24x81xf32> -> vector<24x81xf32>
    %c4_217 = arith.constant 4 : index
    %c0_218 = arith.constant 0 : index
    %c0_219 = arith.constant 0 : index
    %266 = vector.load %arg2[%c4_217, %c0_218, %c0_219] : memref<9x81x81xf32, #tpu.memory_space<vmem>>, vector<1x81x81xf32>
    %267 = vector.shape_cast %266 : vector<1x81x81xf32> to vector<81x81xf32>
    %cst_220 = arith.constant dense<0.000000e+00> : vector<24x81xf32>
    %268 = tpu.matmul %265, %267, %cst_220 {dimension_numbers = #tpu.dot_dimension_numbers<[1], [0], [0], [1], [0, 0, 1, 1], [], []>} : vector<24x81xf32>, vector<81x81xf32>, vector<24x81xf32> -> vector<24x81xf32>
    %269 = arith.addf %262, %268 : vector<24x81xf32>
    %c5_221 = arith.constant 5 : index
    %c0_222 = arith.constant 0 : index
    %c0_223 = arith.constant 0 : index
    %270 = vector.load %arg9[%c5_221, %c0_222, %c0_223] : memref<9x24x12xf32, #tpu.memory_space<vmem>>, vector<1x24x12xf32>
    %271 = vector.shape_cast %270 : vector<1x24x12xf32> to vector<24x12xf32>
    %cst_224 = arith.constant dense<0.000000e+00> : vector<24x81xf32>
    %272 = tpu.matmul %271, %233, %cst_224 {dimension_numbers = #tpu.dot_dimension_numbers<[1], [0], [0], [1], [0, 0, 1, 1], [], []>} : vector<24x12xf32>, vector<12x81xf32>, vector<24x81xf32> -> vector<24x81xf32>
    %c5_225 = arith.constant 5 : index
    %c0_226 = arith.constant 0 : index
    %c0_227 = arith.constant 0 : index
    %273 = vector.load %arg2[%c5_225, %c0_226, %c0_227] : memref<9x81x81xf32, #tpu.memory_space<vmem>>, vector<1x81x81xf32>
    %274 = vector.shape_cast %273 : vector<1x81x81xf32> to vector<81x81xf32>
    %cst_228 = arith.constant dense<0.000000e+00> : vector<24x81xf32>
    %275 = tpu.matmul %272, %274, %cst_228 {dimension_numbers = #tpu.dot_dimension_numbers<[1], [0], [0], [1], [0, 0, 1, 1], [], []>} : vector<24x81xf32>, vector<81x81xf32>, vector<24x81xf32> -> vector<24x81xf32>
    %276 = arith.addf %269, %275 : vector<24x81xf32>
    %c6_229 = arith.constant 6 : index
    %c0_230 = arith.constant 0 : index
    %c0_231 = arith.constant 0 : index
    %277 = vector.load %arg9[%c6_229, %c0_230, %c0_231] : memref<9x24x12xf32, #tpu.memory_space<vmem>>, vector<1x24x12xf32>
    %278 = vector.shape_cast %277 : vector<1x24x12xf32> to vector<24x12xf32>
    %cst_232 = arith.constant dense<0.000000e+00> : vector<24x81xf32>
    %279 = tpu.matmul %278, %233, %cst_232 {dimension_numbers = #tpu.dot_dimension_numbers<[1], [0], [0], [1], [0, 0, 1, 1], [], []>} : vector<24x12xf32>, vector<12x81xf32>, vector<24x81xf32> -> vector<24x81xf32>
    %c6_233 = arith.constant 6 : index
    %c0_234 = arith.constant 0 : index
    %c0_235 = arith.constant 0 : index
    %280 = vector.load %arg2[%c6_233, %c0_234, %c0_235] : memref<9x81x81xf32, #tpu.memory_space<vmem>>, vector<1x81x81xf32>
    %281 = vector.shape_cast %280 : vector<1x81x81xf32> to vector<81x81xf32>
    %cst_236 = arith.constant dense<0.000000e+00> : vector<24x81xf32>
    %282 = tpu.matmul %279, %281, %cst_236 {dimension_numbers = #tpu.dot_dimension_numbers<[1], [0], [0], [1], [0, 0, 1, 1], [], []>} : vector<24x81xf32>, vector<81x81xf32>, vector<24x81xf32> -> vector<24x81xf32>
    %283 = arith.addf %276, %282 : vector<24x81xf32>
    %c7_237 = arith.constant 7 : index
    %c0_238 = arith.constant 0 : index
    %c0_239 = arith.constant 0 : index
    %284 = vector.load %arg9[%c7_237, %c0_238, %c0_239] : memref<9x24x12xf32, #tpu.memory_space<vmem>>, vector<1x24x12xf32>
    %285 = vector.shape_cast %284 : vector<1x24x12xf32> to vector<24x12xf32>
    %cst_240 = arith.constant dense<0.000000e+00> : vector<24x81xf32>
    %286 = tpu.matmul %285, %233, %cst_240 {dimension_numbers = #tpu.dot_dimension_numbers<[1], [0], [0], [1], [0, 0, 1, 1], [], []>} : vector<24x12xf32>, vector<12x81xf32>, vector<24x81xf32> -> vector<24x81xf32>
    %c7_241 = arith.constant 7 : index
    %c0_242 = arith.constant 0 : index
    %c0_243 = arith.constant 0 : index
    %287 = vector.load %arg2[%c7_241, %c0_242, %c0_243] : memref<9x81x81xf32, #tpu.memory_space<vmem>>, vector<1x81x81xf32>
    %288 = vector.shape_cast %287 : vector<1x81x81xf32> to vector<81x81xf32>
    %cst_244 = arith.constant dense<0.000000e+00> : vector<24x81xf32>
    %289 = tpu.matmul %286, %288, %cst_244 {dimension_numbers = #tpu.dot_dimension_numbers<[1], [0], [0], [1], [0, 0, 1, 1], [], []>} : vector<24x81xf32>, vector<81x81xf32>, vector<24x81xf32> -> vector<24x81xf32>
    %290 = arith.addf %283, %289 : vector<24x81xf32>
    %c8_245 = arith.constant 8 : index
    %c0_246 = arith.constant 0 : index
    %c0_247 = arith.constant 0 : index
    %291 = vector.load %arg9[%c8_245, %c0_246, %c0_247] : memref<9x24x12xf32, #tpu.memory_space<vmem>>, vector<1x24x12xf32>
    %292 = vector.shape_cast %291 : vector<1x24x12xf32> to vector<24x12xf32>
    %cst_248 = arith.constant dense<0.000000e+00> : vector<24x81xf32>
    %293 = tpu.matmul %292, %233, %cst_248 {dimension_numbers = #tpu.dot_dimension_numbers<[1], [0], [0], [1], [0, 0, 1, 1], [], []>} : vector<24x12xf32>, vector<12x81xf32>, vector<24x81xf32> -> vector<24x81xf32>
    %c8_249 = arith.constant 8 : index
    %c0_250 = arith.constant 0 : index
    %c0_251 = arith.constant 0 : index
    %294 = vector.load %arg2[%c8_249, %c0_250, %c0_251] : memref<9x81x81xf32, #tpu.memory_space<vmem>>, vector<1x81x81xf32>
    %295 = vector.shape_cast %294 : vector<1x81x81xf32> to vector<81x81xf32>
    %cst_252 = arith.constant dense<0.000000e+00> : vector<24x81xf32>
    %296 = tpu.matmul %293, %295, %cst_252 {dimension_numbers = #tpu.dot_dimension_numbers<[1], [0], [0], [1], [0, 0, 1, 1], [], []>} : vector<24x81xf32>, vector<81x81xf32>, vector<24x81xf32> -> vector<24x81xf32>
    %297 = arith.addf %290, %296 : vector<24x81xf32>
    %cst_253 = arith.constant dense<0.000000e+00> : vector<24xf32>
    %298 = vector.multi_reduction <add>, %297, %cst_253 [1] : vector<24x81xf32> to vector<24xf32>
    %299 = vector.shape_cast %298 : vector<24xf32> to vector<24x1xf32>
    %cst_254 = arith.constant 8.100000e+01 : f32
    %300 = vector.broadcast %cst_254 : f32 to vector<24x1xf32>
    %301 = arith.divf %299, %300 : vector<24x1xf32>
    %cst_255 = arith.constant dense<0.000000e+00> : vector<1xf32>
    %302 = vector.multi_reduction <add>, %301, %cst_255 [0] : vector<24x1xf32> to vector<1xf32>
    %303 = vector.shape_cast %302 : vector<1xf32> to vector<1x1xf32>
    %cst_256 = arith.constant 2.400000e+01 : f32
    %304 = vector.broadcast %cst_256 : f32 to vector<1x1xf32>
    %305 = arith.divf %303, %304 : vector<1x1xf32>
    %306 = vector.broadcast %305 : vector<1x1xf32> to vector<24x81xf32>
    %307 = arith.subf %297, %306 : vector<24x81xf32>
    %308 = arith.mulf %307, %307 : vector<24x81xf32>
    %cst_257 = arith.constant dense<0.000000e+00> : vector<24xf32>
    %309 = vector.multi_reduction <add>, %308, %cst_257 [1] : vector<24x81xf32> to vector<24xf32>
    %310 = vector.shape_cast %309 : vector<24xf32> to vector<24x1xf32>
    %cst_258 = arith.constant 8.100000e+01 : f32
    %311 = vector.broadcast %cst_258 : f32 to vector<24x1xf32>
    %312 = arith.divf %310, %311 : vector<24x1xf32>
    %cst_259 = arith.constant dense<0.000000e+00> : vector<1xf32>
    %313 = vector.multi_reduction <add>, %312, %cst_259 [0] : vector<24x1xf32> to vector<1xf32>
    %314 = vector.shape_cast %313 : vector<1xf32> to vector<1x1xf32>
    %cst_260 = arith.constant 2.400000e+01 : f32
    %315 = vector.broadcast %cst_260 : f32 to vector<1x1xf32>
    %316 = arith.divf %314, %315 : vector<1x1xf32>
    %317 = vector.broadcast %305 : vector<1x1xf32> to vector<24x81xf32>
    %318 = arith.subf %297, %317 : vector<24x81xf32>
    %cst_261 = arith.constant 9.99999974E-6 : f32
    %319 = vector.broadcast %cst_261 : f32 to vector<1x1xf32>
    %320 = arith.addf %316, %319 : vector<1x1xf32>
    %321 = math.rsqrt %320 : vector<1x1xf32>
    %322 = vector.broadcast %321 : vector<1x1xf32> to vector<24x81xf32>
    %323 = arith.mulf %318, %322 : vector<24x81xf32>
    %c0_262 = arith.constant 0 : index
    %c0_263 = arith.constant 0 : index
    %324 = vector.load %arg10[%c0_262, %c0_263] : memref<24x1xf32, #tpu.memory_space<vmem>>, vector<24x1xf32>
    %325 = vector.broadcast %324 : vector<24x1xf32> to vector<24x81xf32>
    %326 = arith.mulf %323, %325 : vector<24x81xf32>
    %c0_264 = arith.constant 0 : index
    %c0_265 = arith.constant 0 : index
    %327 = vector.load %arg11[%c0_264, %c0_265] : memref<24x1xf32, #tpu.memory_space<vmem>>, vector<24x1xf32>
    %328 = vector.broadcast %327 : vector<24x1xf32> to vector<24x81xf32>
    %329 = arith.addf %326, %328 : vector<24x81xf32>
    %cst_266 = arith.constant 5.000000e-01 : f32
    %330 = vector.broadcast %cst_266 : f32 to vector<24x81xf32>
    %331 = arith.mulf %330, %329 : vector<24x81xf32>
    %cst_267 = arith.constant 0.707106769 : f32
    %332 = vector.broadcast %cst_267 : f32 to vector<24x81xf32>
    %333 = arith.mulf %329, %332 : vector<24x81xf32>
    %cst_268 = arith.constant 0.000000e+00 : f32
    %334 = vector.broadcast %cst_268 : f32 to vector<24x81xf32>
    %335 = arith.cmpf oge, %333, %334 : vector<24x81xf32>
    %cst_269 = arith.constant 1.000000e+00 : f32
    %cst_270 = arith.constant -1.000000e+00 : f32
    %336 = vector.broadcast %cst_269 : f32 to vector<24x81xf32>
    %337 = vector.broadcast %cst_270 : f32 to vector<24x81xf32>
    %338 = arith.select %335, %336, %337 : vector<24x81xi1>, vector<24x81xf32>
    %339 = math.absf %333 : vector<24x81xf32>
    %cst_271 = arith.constant 0.327591091 : f32
    %340 = vector.broadcast %cst_271 : f32 to vector<24x81xf32>
    %341 = arith.mulf %340, %339 : vector<24x81xf32>
    %cst_272 = arith.constant 1.000000e+00 : f32
    %342 = vector.broadcast %cst_272 : f32 to vector<24x81xf32>
    %343 = arith.addf %342, %341 : vector<24x81xf32>
    %344 = tpu.reciprocal %343 {approx = true} : vector<24x81xf32> -> vector<24x81xf32>
    %cst_273 = arith.constant 1.06140542 : f32
    %345 = vector.broadcast %cst_273 : f32 to vector<24x81xf32>
    %346 = arith.mulf %344, %345 : vector<24x81xf32>
    %cst_274 = arith.constant -1.45315206 : f32
    %347 = vector.broadcast %cst_274 : f32 to vector<24x81xf32>
    %348 = arith.addf %347, %346 : vector<24x81xf32>
    %349 = arith.mulf %344, %348 : vector<24x81xf32>
    %cst_275 = arith.constant 1.42141378 : f32
    %350 = vector.broadcast %cst_275 : f32 to vector<24x81xf32>
    %351 = arith.addf %350, %349 : vector<24x81xf32>
    %352 = arith.mulf %344, %351 : vector<24x81xf32>
    %cst_276 = arith.constant -0.284496725 : f32
    %353 = vector.broadcast %cst_276 : f32 to vector<24x81xf32>
    %354 = arith.addf %353, %352 : vector<24x81xf32>
    %355 = arith.mulf %344, %354 : vector<24x81xf32>
    %cst_277 = arith.constant 0.254829586 : f32
    %356 = vector.broadcast %cst_277 : f32 to vector<24x81xf32>
    %357 = arith.addf %356, %355 : vector<24x81xf32>
    %358 = arith.mulf %344, %357 : vector<24x81xf32>
    %cst_278 = arith.constant 0.000000e+00 : f32
    %359 = vector.broadcast %cst_278 : f32 to vector<24x81xf32>
    %360 = arith.subf %359, %339 : vector<24x81xf32>
    %361 = arith.mulf %360, %339 : vector<24x81xf32>
    %362 = math.exp %361 : vector<24x81xf32>
    %363 = arith.mulf %358, %362 : vector<24x81xf32>
    %cst_279 = arith.constant 1.000000e+00 : f32
    %364 = vector.broadcast %cst_279 : f32 to vector<24x81xf32>
    %365 = arith.subf %364, %363 : vector<24x81xf32>
    %366 = arith.mulf %338, %365 : vector<24x81xf32>
    %cst_280 = arith.constant 1.000000e+00 : f32
    %367 = vector.broadcast %cst_280 : f32 to vector<24x81xf32>
    %368 = arith.addf %367, %366 : vector<24x81xf32>
    %369 = arith.mulf %331, %368 : vector<24x81xf32>
    %cst_281 = arith.constant 0.000000e+00 : f32
    %370 = vector.broadcast %cst_281 : f32 to vector<24x81xf32>
    %c0_282 = arith.constant 0 : index
    %c0_283 = arith.constant 0 : index
    %c0_284 = arith.constant 0 : index
    %371 = vector.load %arg12[%c0_282, %c0_283, %c0_284] : memref<9x24x24xf32, #tpu.memory_space<vmem>>, vector<1x24x24xf32>
    %372 = vector.shape_cast %371 : vector<1x24x24xf32> to vector<24x24xf32>
    %cst_285 = arith.constant dense<0.000000e+00> : vector<24x81xf32>
    %373 = tpu.matmul %372, %369, %cst_285 {dimension_numbers = #tpu.dot_dimension_numbers<[1], [0], [0], [1], [0, 0, 1, 1], [], []>} : vector<24x24xf32>, vector<24x81xf32>, vector<24x81xf32> -> vector<24x81xf32>
    %c0_286 = arith.constant 0 : index
    %c0_287 = arith.constant 0 : index
    %c0_288 = arith.constant 0 : index
    %374 = vector.load %arg2[%c0_286, %c0_287, %c0_288] : memref<9x81x81xf32, #tpu.memory_space<vmem>>, vector<1x81x81xf32>
    %375 = vector.shape_cast %374 : vector<1x81x81xf32> to vector<81x81xf32>
    %cst_289 = arith.constant dense<0.000000e+00> : vector<24x81xf32>
    %376 = tpu.matmul %373, %375, %cst_289 {dimension_numbers = #tpu.dot_dimension_numbers<[1], [0], [0], [1], [0, 0, 1, 1], [], []>} : vector<24x81xf32>, vector<81x81xf32>, vector<24x81xf32> -> vector<24x81xf32>
    %377 = arith.addf %370, %376 : vector<24x81xf32>
    %c1_290 = arith.constant 1 : index
    %c0_291 = arith.constant 0 : index
    %c0_292 = arith.constant 0 : index
    %378 = vector.load %arg12[%c1_290, %c0_291, %c0_292] : memref<9x24x24xf32, #tpu.memory_space<vmem>>, vector<1x24x24xf32>
    %379 = vector.shape_cast %378 : vector<1x24x24xf32> to vector<24x24xf32>
    %cst_293 = arith.constant dense<0.000000e+00> : vector<24x81xf32>
    %380 = tpu.matmul %379, %369, %cst_293 {dimension_numbers = #tpu.dot_dimension_numbers<[1], [0], [0], [1], [0, 0, 1, 1], [], []>} : vector<24x24xf32>, vector<24x81xf32>, vector<24x81xf32> -> vector<24x81xf32>
    %c1_294 = arith.constant 1 : index
    %c0_295 = arith.constant 0 : index
    %c0_296 = arith.constant 0 : index
    %381 = vector.load %arg2[%c1_294, %c0_295, %c0_296] : memref<9x81x81xf32, #tpu.memory_space<vmem>>, vector<1x81x81xf32>
    %382 = vector.shape_cast %381 : vector<1x81x81xf32> to vector<81x81xf32>
    %cst_297 = arith.constant dense<0.000000e+00> : vector<24x81xf32>
    %383 = tpu.matmul %380, %382, %cst_297 {dimension_numbers = #tpu.dot_dimension_numbers<[1], [0], [0], [1], [0, 0, 1, 1], [], []>} : vector<24x81xf32>, vector<81x81xf32>, vector<24x81xf32> -> vector<24x81xf32>
    %384 = arith.addf %377, %383 : vector<24x81xf32>
    %c2_298 = arith.constant 2 : index
    %c0_299 = arith.constant 0 : index
    %c0_300 = arith.constant 0 : index
    %385 = vector.load %arg12[%c2_298, %c0_299, %c0_300] : memref<9x24x24xf32, #tpu.memory_space<vmem>>, vector<1x24x24xf32>
    %386 = vector.shape_cast %385 : vector<1x24x24xf32> to vector<24x24xf32>
    %cst_301 = arith.constant dense<0.000000e+00> : vector<24x81xf32>
    %387 = tpu.matmul %386, %369, %cst_301 {dimension_numbers = #tpu.dot_dimension_numbers<[1], [0], [0], [1], [0, 0, 1, 1], [], []>} : vector<24x24xf32>, vector<24x81xf32>, vector<24x81xf32> -> vector<24x81xf32>
    %c2_302 = arith.constant 2 : index
    %c0_303 = arith.constant 0 : index
    %c0_304 = arith.constant 0 : index
    %388 = vector.load %arg2[%c2_302, %c0_303, %c0_304] : memref<9x81x81xf32, #tpu.memory_space<vmem>>, vector<1x81x81xf32>
    %389 = vector.shape_cast %388 : vector<1x81x81xf32> to vector<81x81xf32>
    %cst_305 = arith.constant dense<0.000000e+00> : vector<24x81xf32>
    %390 = tpu.matmul %387, %389, %cst_305 {dimension_numbers = #tpu.dot_dimension_numbers<[1], [0], [0], [1], [0, 0, 1, 1], [], []>} : vector<24x81xf32>, vector<81x81xf32>, vector<24x81xf32> -> vector<24x81xf32>
    %391 = arith.addf %384, %390 : vector<24x81xf32>
    %c3_306 = arith.constant 3 : index
    %c0_307 = arith.constant 0 : index
    %c0_308 = arith.constant 0 : index
    %392 = vector.load %arg12[%c3_306, %c0_307, %c0_308] : memref<9x24x24xf32, #tpu.memory_space<vmem>>, vector<1x24x24xf32>
    %393 = vector.shape_cast %392 : vector<1x24x24xf32> to vector<24x24xf32>
    %cst_309 = arith.constant dense<0.000000e+00> : vector<24x81xf32>
    %394 = tpu.matmul %393, %369, %cst_309 {dimension_numbers = #tpu.dot_dimension_numbers<[1], [0], [0], [1], [0, 0, 1, 1], [], []>} : vector<24x24xf32>, vector<24x81xf32>, vector<24x81xf32> -> vector<24x81xf32>
    %c3_310 = arith.constant 3 : index
    %c0_311 = arith.constant 0 : index
    %c0_312 = arith.constant 0 : index
    %395 = vector.load %arg2[%c3_310, %c0_311, %c0_312] : memref<9x81x81xf32, #tpu.memory_space<vmem>>, vector<1x81x81xf32>
    %396 = vector.shape_cast %395 : vector<1x81x81xf32> to vector<81x81xf32>
    %cst_313 = arith.constant dense<0.000000e+00> : vector<24x81xf32>
    %397 = tpu.matmul %394, %396, %cst_313 {dimension_numbers = #tpu.dot_dimension_numbers<[1], [0], [0], [1], [0, 0, 1, 1], [], []>} : vector<24x81xf32>, vector<81x81xf32>, vector<24x81xf32> -> vector<24x81xf32>
    %398 = arith.addf %391, %397 : vector<24x81xf32>
    %c4_314 = arith.constant 4 : index
    %c0_315 = arith.constant 0 : index
    %c0_316 = arith.constant 0 : index
    %399 = vector.load %arg12[%c4_314, %c0_315, %c0_316] : memref<9x24x24xf32, #tpu.memory_space<vmem>>, vector<1x24x24xf32>
    %400 = vector.shape_cast %399 : vector<1x24x24xf32> to vector<24x24xf32>
    %cst_317 = arith.constant dense<0.000000e+00> : vector<24x81xf32>
    %401 = tpu.matmul %400, %369, %cst_317 {dimension_numbers = #tpu.dot_dimension_numbers<[1], [0], [0], [1], [0, 0, 1, 1], [], []>} : vector<24x24xf32>, vector<24x81xf32>, vector<24x81xf32> -> vector<24x81xf32>
    %c4_318 = arith.constant 4 : index
    %c0_319 = arith.constant 0 : index
    %c0_320 = arith.constant 0 : index
    %402 = vector.load %arg2[%c4_318, %c0_319, %c0_320] : memref<9x81x81xf32, #tpu.memory_space<vmem>>, vector<1x81x81xf32>
    %403 = vector.shape_cast %402 : vector<1x81x81xf32> to vector<81x81xf32>
    %cst_321 = arith.constant dense<0.000000e+00> : vector<24x81xf32>
    %404 = tpu.matmul %401, %403, %cst_321 {dimension_numbers = #tpu.dot_dimension_numbers<[1], [0], [0], [1], [0, 0, 1, 1], [], []>} : vector<24x81xf32>, vector<81x81xf32>, vector<24x81xf32> -> vector<24x81xf32>
    %405 = arith.addf %398, %404 : vector<24x81xf32>
    %c5_322 = arith.constant 5 : index
    %c0_323 = arith.constant 0 : index
    %c0_324 = arith.constant 0 : index
    %406 = vector.load %arg12[%c5_322, %c0_323, %c0_324] : memref<9x24x24xf32, #tpu.memory_space<vmem>>, vector<1x24x24xf32>
    %407 = vector.shape_cast %406 : vector<1x24x24xf32> to vector<24x24xf32>
    %cst_325 = arith.constant dense<0.000000e+00> : vector<24x81xf32>
    %408 = tpu.matmul %407, %369, %cst_325 {dimension_numbers = #tpu.dot_dimension_numbers<[1], [0], [0], [1], [0, 0, 1, 1], [], []>} : vector<24x24xf32>, vector<24x81xf32>, vector<24x81xf32> -> vector<24x81xf32>
    %c5_326 = arith.constant 5 : index
    %c0_327 = arith.constant 0 : index
    %c0_328 = arith.constant 0 : index
    %409 = vector.load %arg2[%c5_326, %c0_327, %c0_328] : memref<9x81x81xf32, #tpu.memory_space<vmem>>, vector<1x81x81xf32>
    %410 = vector.shape_cast %409 : vector<1x81x81xf32> to vector<81x81xf32>
    %cst_329 = arith.constant dense<0.000000e+00> : vector<24x81xf32>
    %411 = tpu.matmul %408, %410, %cst_329 {dimension_numbers = #tpu.dot_dimension_numbers<[1], [0], [0], [1], [0, 0, 1, 1], [], []>} : vector<24x81xf32>, vector<81x81xf32>, vector<24x81xf32> -> vector<24x81xf32>
    %412 = arith.addf %405, %411 : vector<24x81xf32>
    %c6_330 = arith.constant 6 : index
    %c0_331 = arith.constant 0 : index
    %c0_332 = arith.constant 0 : index
    %413 = vector.load %arg12[%c6_330, %c0_331, %c0_332] : memref<9x24x24xf32, #tpu.memory_space<vmem>>, vector<1x24x24xf32>
    %414 = vector.shape_cast %413 : vector<1x24x24xf32> to vector<24x24xf32>
    %cst_333 = arith.constant dense<0.000000e+00> : vector<24x81xf32>
    %415 = tpu.matmul %414, %369, %cst_333 {dimension_numbers = #tpu.dot_dimension_numbers<[1], [0], [0], [1], [0, 0, 1, 1], [], []>} : vector<24x24xf32>, vector<24x81xf32>, vector<24x81xf32> -> vector<24x81xf32>
    %c6_334 = arith.constant 6 : index
    %c0_335 = arith.constant 0 : index
    %c0_336 = arith.constant 0 : index
    %416 = vector.load %arg2[%c6_334, %c0_335, %c0_336] : memref<9x81x81xf32, #tpu.memory_space<vmem>>, vector<1x81x81xf32>
    %417 = vector.shape_cast %416 : vector<1x81x81xf32> to vector<81x81xf32>
    %cst_337 = arith.constant dense<0.000000e+00> : vector<24x81xf32>
    %418 = tpu.matmul %415, %417, %cst_337 {dimension_numbers = #tpu.dot_dimension_numbers<[1], [0], [0], [1], [0, 0, 1, 1], [], []>} : vector<24x81xf32>, vector<81x81xf32>, vector<24x81xf32> -> vector<24x81xf32>
    %419 = arith.addf %412, %418 : vector<24x81xf32>
    %c7_338 = arith.constant 7 : index
    %c0_339 = arith.constant 0 : index
    %c0_340 = arith.constant 0 : index
    %420 = vector.load %arg12[%c7_338, %c0_339, %c0_340] : memref<9x24x24xf32, #tpu.memory_space<vmem>>, vector<1x24x24xf32>
    %421 = vector.shape_cast %420 : vector<1x24x24xf32> to vector<24x24xf32>
    %cst_341 = arith.constant dense<0.000000e+00> : vector<24x81xf32>
    %422 = tpu.matmul %421, %369, %cst_341 {dimension_numbers = #tpu.dot_dimension_numbers<[1], [0], [0], [1], [0, 0, 1, 1], [], []>} : vector<24x24xf32>, vector<24x81xf32>, vector<24x81xf32> -> vector<24x81xf32>
    %c7_342 = arith.constant 7 : index
    %c0_343 = arith.constant 0 : index
    %c0_344 = arith.constant 0 : index
    %423 = vector.load %arg2[%c7_342, %c0_343, %c0_344] : memref<9x81x81xf32, #tpu.memory_space<vmem>>, vector<1x81x81xf32>
    %424 = vector.shape_cast %423 : vector<1x81x81xf32> to vector<81x81xf32>
    %cst_345 = arith.constant dense<0.000000e+00> : vector<24x81xf32>
    %425 = tpu.matmul %422, %424, %cst_345 {dimension_numbers = #tpu.dot_dimension_numbers<[1], [0], [0], [1], [0, 0, 1, 1], [], []>} : vector<24x81xf32>, vector<81x81xf32>, vector<24x81xf32> -> vector<24x81xf32>
    %426 = arith.addf %419, %425 : vector<24x81xf32>
    %c8_346 = arith.constant 8 : index
    %c0_347 = arith.constant 0 : index
    %c0_348 = arith.constant 0 : index
    %427 = vector.load %arg12[%c8_346, %c0_347, %c0_348] : memref<9x24x24xf32, #tpu.memory_space<vmem>>, vector<1x24x24xf32>
    %428 = vector.shape_cast %427 : vector<1x24x24xf32> to vector<24x24xf32>
    %cst_349 = arith.constant dense<0.000000e+00> : vector<24x81xf32>
    %429 = tpu.matmul %428, %369, %cst_349 {dimension_numbers = #tpu.dot_dimension_numbers<[1], [0], [0], [1], [0, 0, 1, 1], [], []>} : vector<24x24xf32>, vector<24x81xf32>, vector<24x81xf32> -> vector<24x81xf32>
    %c8_350 = arith.constant 8 : index
    %c0_351 = arith.constant 0 : index
    %c0_352 = arith.constant 0 : index
    %430 = vector.load %arg2[%c8_350, %c0_351, %c0_352] : memref<9x81x81xf32, #tpu.memory_space<vmem>>, vector<1x81x81xf32>
    %431 = vector.shape_cast %430 : vector<1x81x81xf32> to vector<81x81xf32>
    %cst_353 = arith.constant dense<0.000000e+00> : vector<24x81xf32>
    %432 = tpu.matmul %429, %431, %cst_353 {dimension_numbers = #tpu.dot_dimension_numbers<[1], [0], [0], [1], [0, 0, 1, 1], [], []>} : vector<24x81xf32>, vector<81x81xf32>, vector<24x81xf32> -> vector<24x81xf32>
    %433 = arith.addf %426, %432 : vector<24x81xf32>
    %cst_354 = arith.constant dense<0.000000e+00> : vector<24xf32>
    %434 = vector.multi_reduction <add>, %433, %cst_354 [1] : vector<24x81xf32> to vector<24xf32>
    %435 = vector.shape_cast %434 : vector<24xf32> to vector<24x1xf32>
    %cst_355 = arith.constant 8.100000e+01 : f32
    %436 = vector.broadcast %cst_355 : f32 to vector<24x1xf32>
    %437 = arith.divf %435, %436 : vector<24x1xf32>
    %cst_356 = arith.constant dense<0.000000e+00> : vector<1xf32>
    %438 = vector.multi_reduction <add>, %437, %cst_356 [0] : vector<24x1xf32> to vector<1xf32>
    %439 = vector.shape_cast %438 : vector<1xf32> to vector<1x1xf32>
    %cst_357 = arith.constant 2.400000e+01 : f32
    %440 = vector.broadcast %cst_357 : f32 to vector<1x1xf32>
    %441 = arith.divf %439, %440 : vector<1x1xf32>
    %442 = vector.broadcast %441 : vector<1x1xf32> to vector<24x81xf32>
    %443 = arith.subf %433, %442 : vector<24x81xf32>
    %444 = arith.mulf %443, %443 : vector<24x81xf32>
    %cst_358 = arith.constant dense<0.000000e+00> : vector<24xf32>
    %445 = vector.multi_reduction <add>, %444, %cst_358 [1] : vector<24x81xf32> to vector<24xf32>
    %446 = vector.shape_cast %445 : vector<24xf32> to vector<24x1xf32>
    %cst_359 = arith.constant 8.100000e+01 : f32
    %447 = vector.broadcast %cst_359 : f32 to vector<24x1xf32>
    %448 = arith.divf %446, %447 : vector<24x1xf32>
    %cst_360 = arith.constant dense<0.000000e+00> : vector<1xf32>
    %449 = vector.multi_reduction <add>, %448, %cst_360 [0] : vector<24x1xf32> to vector<1xf32>
    %450 = vector.shape_cast %449 : vector<1xf32> to vector<1x1xf32>
    %cst_361 = arith.constant 2.400000e+01 : f32
    %451 = vector.broadcast %cst_361 : f32 to vector<1x1xf32>
    %452 = arith.divf %450, %451 : vector<1x1xf32>
    %453 = vector.broadcast %441 : vector<1x1xf32> to vector<24x81xf32>
    %454 = arith.subf %433, %453 : vector<24x81xf32>
    %cst_362 = arith.constant 9.99999974E-6 : f32
    %455 = vector.broadcast %cst_362 : f32 to vector<1x1xf32>
    %456 = arith.addf %452, %455 : vector<1x1xf32>
    %457 = math.rsqrt %456 : vector<1x1xf32>
    %458 = vector.broadcast %457 : vector<1x1xf32> to vector<24x81xf32>
    %459 = arith.mulf %454, %458 : vector<24x81xf32>
    %c0_363 = arith.constant 0 : index
    %c0_364 = arith.constant 0 : index
    %460 = vector.load %arg13[%c0_363, %c0_364] : memref<24x1xf32, #tpu.memory_space<vmem>>, vector<24x1xf32>
    %461 = vector.broadcast %460 : vector<24x1xf32> to vector<24x81xf32>
    %462 = arith.mulf %459, %461 : vector<24x81xf32>
    %c0_365 = arith.constant 0 : index
    %c0_366 = arith.constant 0 : index
    %463 = vector.load %arg14[%c0_365, %c0_366] : memref<24x1xf32, #tpu.memory_space<vmem>>, vector<24x1xf32>
    %464 = vector.broadcast %463 : vector<24x1xf32> to vector<24x81xf32>
    %465 = arith.addf %462, %464 : vector<24x81xf32>
    %466 = vector.extract_strided_slice %465 {offsets = [0, 0], sizes = [1, 81], strides = [1, 1]} : vector<24x81xf32> to vector<1x81xf32>
    %467 = vector.broadcast %466 : vector<1x81xf32> to vector<6x81xf32>
    %468 = arith.mulf %467, %1 : vector<6x81xf32>
    %c0_367 = arith.constant 0 : index
    %c0_368 = arith.constant 0 : index
    %469 = vector.load %arg16[%c0_367, %c0_368] : memref<1x100xf32, #tpu.memory_space<vmem>>, vector<1x100xf32>
    %470 = vector.extract_strided_slice %468 {offsets = [0, 0], sizes = [1, 81], strides = [1, 1]} : vector<6x81xf32> to vector<1x81xf32>
    %c0_369 = arith.constant 0 : index
    %c0_370 = arith.constant 0 : index
    %c0_371 = arith.constant 0 : index
    %471 = vector.load %arg15[%c0_369, %c0_370, %c0_371] : memref<6x81x100xf32, #tpu.memory_space<vmem>>, vector<1x81x100xf32>
    %472 = vector.shape_cast %471 : vector<1x81x100xf32> to vector<81x100xf32>
    %cst_372 = arith.constant dense<0.000000e+00> : vector<1x100xf32>
    %473 = tpu.matmul %470, %472, %cst_372 {dimension_numbers = #tpu.dot_dimension_numbers<[1], [0], [0], [1], [0, 0, 1, 1], [], []>} : vector<1x81xf32>, vector<81x100xf32>, vector<1x100xf32> -> vector<1x100xf32>
    %474 = arith.addf %469, %473 : vector<1x100xf32>
    %475 = vector.extract_strided_slice %468 {offsets = [1, 0], sizes = [1, 81], strides = [1, 1]} : vector<6x81xf32> to vector<1x81xf32>
    %c1_373 = arith.constant 1 : index
    %c0_374 = arith.constant 0 : index
    %c0_375 = arith.constant 0 : index
    %476 = vector.load %arg15[%c1_373, %c0_374, %c0_375] : memref<6x81x100xf32, #tpu.memory_space<vmem>>, vector<1x81x100xf32>
    %477 = vector.shape_cast %476 : vector<1x81x100xf32> to vector<81x100xf32>
    %cst_376 = arith.constant dense<0.000000e+00> : vector<1x100xf32>
    %478 = tpu.matmul %475, %477, %cst_376 {dimension_numbers = #tpu.dot_dimension_numbers<[1], [0], [0], [1], [0, 0, 1, 1], [], []>} : vector<1x81xf32>, vector<81x100xf32>, vector<1x100xf32> -> vector<1x100xf32>
    %479 = arith.addf %474, %478 : vector<1x100xf32>
    %480 = vector.extract_strided_slice %468 {offsets = [2, 0], sizes = [1, 81], strides = [1, 1]} : vector<6x81xf32> to vector<1x81xf32>
    %c2_377 = arith.constant 2 : index
    %c0_378 = arith.constant 0 : index
    %c0_379 = arith.constant 0 : index
    %481 = vector.load %arg15[%c2_377, %c0_378, %c0_379] : memref<6x81x100xf32, #tpu.memory_space<vmem>>, vector<1x81x100xf32>
    %482 = vector.shape_cast %481 : vector<1x81x100xf32> to vector<81x100xf32>
    %cst_380 = arith.constant dense<0.000000e+00> : vector<1x100xf32>
    %483 = tpu.matmul %480, %482, %cst_380 {dimension_numbers = #tpu.dot_dimension_numbers<[1], [0], [0], [1], [0, 0, 1, 1], [], []>} : vector<1x81xf32>, vector<81x100xf32>, vector<1x100xf32> -> vector<1x100xf32>
    %484 = arith.addf %479, %483 : vector<1x100xf32>
    %485 = vector.extract_strided_slice %468 {offsets = [3, 0], sizes = [1, 81], strides = [1, 1]} : vector<6x81xf32> to vector<1x81xf32>
    %c3_381 = arith.constant 3 : index
    %c0_382 = arith.constant 0 : index
    %c0_383 = arith.constant 0 : index
    %486 = vector.load %arg15[%c3_381, %c0_382, %c0_383] : memref<6x81x100xf32, #tpu.memory_space<vmem>>, vector<1x81x100xf32>
    %487 = vector.shape_cast %486 : vector<1x81x100xf32> to vector<81x100xf32>
    %cst_384 = arith.constant dense<0.000000e+00> : vector<1x100xf32>
    %488 = tpu.matmul %485, %487, %cst_384 {dimension_numbers = #tpu.dot_dimension_numbers<[1], [0], [0], [1], [0, 0, 1, 1], [], []>} : vector<1x81xf32>, vector<81x100xf32>, vector<1x100xf32> -> vector<1x100xf32>
    %489 = arith.addf %484, %488 : vector<1x100xf32>
    %490 = vector.extract_strided_slice %468 {offsets = [4, 0], sizes = [1, 81], strides = [1, 1]} : vector<6x81xf32> to vector<1x81xf32>
    %c4_385 = arith.constant 4 : index
    %c0_386 = arith.constant 0 : index
    %c0_387 = arith.constant 0 : index
    %491 = vector.load %arg15[%c4_385, %c0_386, %c0_387] : memref<6x81x100xf32, #tpu.memory_space<vmem>>, vector<1x81x100xf32>
    %492 = vector.shape_cast %491 : vector<1x81x100xf32> to vector<81x100xf32>
    %cst_388 = arith.constant dense<0.000000e+00> : vector<1x100xf32>
    %493 = tpu.matmul %490, %492, %cst_388 {dimension_numbers = #tpu.dot_dimension_numbers<[1], [0], [0], [1], [0, 0, 1, 1], [], []>} : vector<1x81xf32>, vector<81x100xf32>, vector<1x100xf32> -> vector<1x100xf32>
    %494 = arith.addf %489, %493 : vector<1x100xf32>
    %495 = vector.extract_strided_slice %468 {offsets = [5, 0], sizes = [1, 81], strides = [1, 1]} : vector<6x81xf32> to vector<1x81xf32>
    %c5_389 = arith.constant 5 : index
    %c0_390 = arith.constant 0 : index
    %c0_391 = arith.constant 0 : index
    %496 = vector.load %arg15[%c5_389, %c0_390, %c0_391] : memref<6x81x100xf32, #tpu.memory_space<vmem>>, vector<1x81x100xf32>
    %497 = vector.shape_cast %496 : vector<1x81x100xf32> to vector<81x100xf32>
    %cst_392 = arith.constant dense<0.000000e+00> : vector<1x100xf32>
    %498 = tpu.matmul %495, %497, %cst_392 {dimension_numbers = #tpu.dot_dimension_numbers<[1], [0], [0], [1], [0, 0, 1, 1], [], []>} : vector<1x81xf32>, vector<81x100xf32>, vector<1x100xf32> -> vector<1x100xf32>
    %499 = arith.addf %494, %498 : vector<1x100xf32>
    %cst_393 = arith.constant 0.000000e+00 : f32
    %500 = vector.broadcast %cst_393 : f32 to vector<1x100xf32>
    %501 = arith.maximumf %499, %500 : vector<1x100xf32>
    %c0_394 = arith.constant 0 : index
    %c0_395 = arith.constant 0 : index
    %502 = vector.load %arg17[%c0_394, %c0_395] : memref<1x100xf32, #tpu.memory_space<vmem>>, vector<1x100xf32>
    %503 = arith.mulf %501, %502 : vector<1x100xf32>
    %cst_396 = arith.constant dense<0.000000e+00> : vector<1xf32>
    %504 = vector.multi_reduction <add>, %503, %cst_396 [1] : vector<1x100xf32> to vector<1xf32>
    %505 = vector.shape_cast %504 : vector<1xf32> to vector<1x1xf32>
    %c0_397 = arith.constant 0 : index
    %c0_398 = arith.constant 0 : index
    %506 = vector.load %arg18[%c0_397, %c0_398] : memref<1x1xf32, #tpu.memory_space<vmem>>, vector<1x1xf32>
    %507 = arith.addf %505, %506 : vector<1x1xf32>
    %cst_399 = arith.constant 0.000000e+00 : f32
    %508 = vector.broadcast %cst_399 : f32 to vector<1x1xf32>
    %509 = arith.maximumf %507, %508 : vector<1x1xf32>
    %c0_400 = arith.constant 0 : index
    %c0_401 = arith.constant 0 : index
    %510 = vector.load %arg19[%c0_400, %c0_401] : memref<1x1xf32, #tpu.memory_space<vmem>>, vector<1x1xf32>
    %511 = arith.mulf %509, %510 : vector<1x1xf32>
    %c0_402 = arith.constant 0 : index
    %c0_403 = arith.constant 0 : index
    %512 = vector.load %arg20[%c0_402, %c0_403] : memref<1x1xf32, #tpu.memory_space<vmem>>, vector<1x1xf32>
    %513 = arith.addf %511, %512 : vector<1x1xf32>
    %c0_404 = arith.constant 0 : index
    %c0_405 = arith.constant 0 : index
    %c0_406 = arith.constant 0 : index
    %514 = vector.load %arg21[%c0_404, %c0_405, %c0_406] : memref<1x1x1xf32, #tpu.memory_space<vmem>>, vector<1x1x1xf32>
    %515 = vector.shape_cast %514 : vector<1x1x1xf32> to vector<1x1xf32>
    %516 = vector.shape_cast %513 : vector<1x1xf32> to vector<1x1x1xf32>
    tpu.vector_store %arg21[%c0_404, %c0_405, %c0_406], %516 {strides = array<i32>} : memref<1x1x1xf32, #tpu.memory_space<vmem>>, vector<1x1x1xf32>,
    return
  }
  func.func @transform_0(%arg0: i32) -> (i32, i32, i32) {
    %c0_i32 = arith.constant 0 : i32
    %c0_i32_0 = arith.constant 0 : i32
    %c0_i32_1 = arith.constant 0 : i32
    return %arg0, %c0_i32, %c0_i32_0 : i32, i32, i32
  }
  func.func @transform_1(%arg0: i32) -> (i32, i32, i32) {
    %c0_i32 = arith.constant 0 : i32
    %c0_i32_0 = arith.constant 0 : i32
    %c0_i32_1 = arith.constant 0 : i32
    %c0_i32_2 = arith.constant 0 : i32
    return %c0_i32, %c0_i32_0, %c0_i32_1 : i32, i32, i32
  }
  func.func @transform_2(%arg0: i32) -> (i32, i32, i32) {
    %c0_i32 = arith.constant 0 : i32
    %c0_i32_0 = arith.constant 0 : i32
    %c0_i32_1 = arith.constant 0 : i32
    %c0_i32_2 = arith.constant 0 : i32
    return %c0_i32, %c0_i32_0, %c0_i32_1 : i32, i32, i32
  }
  func.func @transform_3(%arg0: i32) -> (i32, i32) {
    %c0_i32 = arith.constant 0 : i32
    %c0_i32_0 = arith.constant 0 : i32
    %c0_i32_1 = arith.constant 0 : i32
    return %c0_i32, %c0_i32_0 : i32, i32
  }
  func.func @transform_4(%arg0: i32) -> (i32, i32) {
    %c0_i32 = arith.constant 0 : i32
    %c0_i32_0 = arith.constant 0 : i32
    %c0_i32_1 = arith.constant 0 : i32
    return %c0_i32, %c0_i32_0 : i32, i32
  }
  func.func @transform_5(%arg0: i32) -> (i32, i32, i32) {
    %c0_i32 = arith.constant 0 : i32
    %c0_i32_0 = arith.constant 0 : i32
    %c0_i32_1 = arith.constant 0 : i32
    %c0_i32_2 = arith.constant 0 : i32
    return %c0_i32, %c0_i32_0, %c0_i32_1 : i32, i32, i32
  }
  func.func @transform_6(%arg0: i32) -> (i32, i32) {
    %c0_i32 = arith.constant 0 : i32
    %c0_i32_0 = arith.constant 0 : i32
    %c0_i32_1 = arith.constant 0 : i32
    return %c0_i32, %c0_i32_0 : i32, i32
  }
  func.func @transform_7(%arg0: i32) -> (i32, i32) {
    %c0_i32 = arith.constant 0 : i32
    %c0_i32_0 = arith.constant 0 : i32
    %c0_i32_1 = arith.constant 0 : i32
    return %c0_i32, %c0_i32_0 : i32, i32
  }
  func.func @transform_8(%arg0: i32) -> (i32, i32, i32) {
    %c0_i32 = arith.constant 0 : i32
    %c0_i32_0 = arith.constant 0 : i32
    %c0_i32_1 = arith.constant 0 : i32
    %c0_i32_2 = arith.constant 0 : i32
    return %c0_i32, %c0_i32_0, %c0_i32_1 : i32, i32, i32
  }
  func.func @transform_9(%arg0: i32) -> (i32, i32) {
    %c0_i32 = arith.constant 0 : i32
    %c0_i32_0 = arith.constant 0 : i32
    %c0_i32_1 = arith.constant 0 : i32
    return %c0_i32, %c0_i32_0 : i32, i32
  }
  func.func @transform_10(%arg0: i32) -> (i32, i32) {
    %c0_i32 = arith.constant 0 : i32
    %c0_i32_0 = arith.constant 0 : i32
    %c0_i32_1 = arith.constant 0 : i32
    return %c0_i32, %c0_i32_0 : i32, i32
  }
  func.func @transform_11(%arg0: i32) -> (i32, i32, i32) {
    %c0_i32 = arith.constant 0 : i32
    %c0_i32_0 = arith.constant 0 : i32
    %c0_i32_1 = arith.constant 0 : i32
    %c0_i32_2 = arith.constant 0 : i32
    return %c0_i32, %c0_i32_0, %c0_i32_1 : i32, i32, i32
  }
  func.func @transform_12(%arg0: i32) -> (i32, i32) {
    %c0_i32 = arith.constant 0 : i32
    %c0_i32_0 = arith.constant 0 : i32
    %c0_i32_1 = arith.constant 0 : i32
    return %c0_i32, %c0_i32_0 : i32, i32
  }
  func.func @transform_13(%arg0: i32) -> (i32, i32) {
    %c0_i32 = arith.constant 0 : i32
    %c0_i32_0 = arith.constant 0 : i32
    %c0_i32_1 = arith.constant 0 : i32
    return %c0_i32, %c0_i32_0 : i32, i32
  }
  func.func @transform_14(%arg0: i32) -> (i32, i32, i32) {
    %c0_i32 = arith.constant 0 : i32
    %c0_i32_0 = arith.constant 0 : i32
    %c0_i32_1 = arith.constant 0 : i32
    %c0_i32_2 = arith.constant 0 : i32
    return %c0_i32, %c0_i32_0, %c0_i32_1 : i32, i32, i32
  }
  func.func @transform_15(%arg0: i32) -> (i32, i32) {
    %c0_i32 = arith.constant 0 : i32
    %c0_i32_0 = arith.constant 0 : i32
    %c0_i32_1 = arith.constant 0 : i32
    return %c0_i32, %c0_i32_0 : i32, i32
  }
  func.func @transform_16(%arg0: i32) -> (i32, i32) {
    %c0_i32 = arith.constant 0 : i32
    %c0_i32_0 = arith.constant 0 : i32
    %c0_i32_1 = arith.constant 0 : i32
    return %c0_i32, %c0_i32_0 : i32, i32
  }
  func.func @transform_17(%arg0: i32) -> (i32, i32) {
    %c0_i32 = arith.constant 0 : i32
    %c0_i32_0 = arith.constant 0 : i32
    %c0_i32_1 = arith.constant 0 : i32
    return %c0_i32, %c0_i32_0 : i32, i32
  }
  func.func @transform_18(%arg0: i32) -> (i32, i32) {
    %c0_i32 = arith.constant 0 : i32
    %c0_i32_0 = arith.constant 0 : i32
    %c0_i32_1 = arith.constant 0 : i32
    return %c0_i32, %c0_i32_0 : i32, i32
  }
  func.func @transform_19(%arg0: i32) -> (i32, i32) {
    %c0_i32 = arith.constant 0 : i32
    %c0_i32_0 = arith.constant 0 : i32
    %c0_i32_1 = arith.constant 0 : i32
    return %c0_i32, %c0_i32_0 : i32, i32
  }
  func.func @transform_20(%arg0: i32) -> (i32, i32, i32) {
    %c0_i32 = arith.constant 0 : i32
    %c0_i32_0 = arith.constant 0 : i32
    %c0_i32_1 = arith.constant 0 : i32
    return %arg0, %c0_i32, %c0_i32_0 : i32, i32, i32
  }
}

</mosaic_0001>

<bundles_post_ra>
// kernel: _lambda_.1
= control target key start
LH: loop header
LB: loop body
LE: loop exit
PB: predicated region body
PF: predicated region fallthrough
CT: control target
= control target key end

     0   :  { %s14669_s0 = inlined_call_operand.vmem [shape: f32[2,6,81], index: 0, kind: input, shape index: {}]   ;;  %s14670_s1 = inlined_call_operand.hbm [shape: f32[9,81,81], index: 1, kind: input, shape index: {}]   ;;  %s14671_s2 = inlined_call_operand.hbm [shape: f32[9,12,6], index: 2, kind: input, shape index: {}]   ;;  %s14672_s3 = inlined_call_operand.hbm [shape: f32[12,1], index: 3, kind: input, shape index: {}]   ;;  %s14673_s4 = inlined_call_operand.hbm [shape: f32[12,1], index: 4, kind: input, shape index: {}]   ;;  %s14674_s5 = inlined_call_operand.hbm [shape: f32[9,12,12], index: 5, kind: input, shape index: {}]   ;;  %s14675_s6 = inlined_call_operand.hbm [shape: f32[12,1], index: 6, kind: input, shape index: {}]   ;;  %s14676_s7 = inlined_call_operand.hbm [shape: f32[12,1], index: 7, kind: input, shape index: {}]   ;;  %s14677_s8 = inlined_call_operand.hbm [shape: f32[9,24,12], index: 8, kind: input, shape index: {}]   ;;  %s14678_s9 = inlined_call_operand.hbm [shape: f32[24,1], index: 9, kind: input, shape index: {}]   ;;  %s14679_s10 = inlined_call_operand.hbm [shape: f32[24,1], index: 10, kind: input, shape index: {}]   ;;  %s14680_s11 = inlined_call_operand.hbm [shape: f32[9,24,24], index: 11, kind: input, shape index: {}]   ;;  %s14681_s12 = inlined_call_operand.hbm [shape: f32[24,1], index: 12, kind: input, shape index: {}]   ;;  %s14682_s13 = inlined_call_operand.vmem [shape: f32[24,1], index: 13, kind: input, shape index: {}]   ;;  %s14683_s14 = inlined_call_operand.vmem [shape: f32[6,81,100], index: 14, kind: input, shape index: {}]   ;;  %s14684_s15 = inlined_call_operand.vmem [shape: f32[1,100], index: 15, kind: input, shape index: {}]   ;;  %s14685_s16 = inlined_call_operand.vmem [shape: f32[1,100], index: 16, kind: input, shape index: {}]   ;;  %s14686_s17 = inlined_call_operand.<no memory space> [shape: f32[1,1], index: 17, kind: input, shape index: {}]   ;;  %s14687_s20 = inlined_call_operand.vmem [shape: f32[2,1,1], index: 20, kind: output, shape index: {}]   ;;  %s14688_s18 = inlined_call_operand.<no memory space> [shape: f32[1,1], index: 18, kind: input, shape index: {}]   ;;  %s14689_s19 = inlined_call_operand.<no memory space> [shape: f32[1,1], index: 19, kind: input, shape index: {}]  }
   0x1   :  { %14763 = sst [smem:[#allocation56_spill]] %s14669_s0  ;;  %v25_v0 = vstv %s14686_s17  ;;  %v27_v1 = vstv %s14688_s18  ;;  %v29_v2 = vstv %s14689_s19 }
   0x2   :  { %14764 = sst [smem:[#allocation57_spill]] %s14670_s1  ;;  %26 = vst [vmem:[#allocation2] sm:$0x1] %v25_v0  ;;  %28 = vst [vmem:[#allocation3] sm:$0x1] %v27_v1 }
   0x3   :  { %14765 = sst [smem:[#allocation58_spill]] %s14671_s2  ;;  %30 = vst [vmem:[#allocation4] sm:$0x1] %v29_v2 }
   0x4   :  { %14766 = sst [smem:[#allocation59_spill]] %s14672_s3 }
   0x5   :  { %14767 = sst [smem:[#allocation60_spill]] %s14673_s4 }
   0x6   :  { %14768 = sst [smem:[#allocation61_spill]] %s14675_s6 }
   0x7   :  { %14769 = sst [smem:[#allocation62_spill]] %s14677_s8 }
   0x8   :  { %14770 = sst [smem:[#allocation63_spill]] %s14684_s15 }
   0x9   :  { %14771 = sst [smem:[#allocation64_spill]] %s14685_s16 }
   0xa   :  { %14772 = sst [smem:[#allocation65_spill]] %s14687_s20 }
   0xb   :  { %31 = vsyncpa [#allocation6], 0 }
   0xc   :  { %32 = vsyncpa [#allocation8], 0 }
   0xd   :  { %33 = vsyncpa [#allocation11], 0 }
   0xe   :  { %34 = vsyncpa [#allocation14], 0 }
   0xf   :  { %35 = vsyncpa [#allocation17], 0 }
  0x10   :  { %36 = vsyncpa [#allocation20], 0 }
  0x11   :  { %37 = vsyncpa [#allocation23], 0  ;;  %s12659_s3 = smov 0  }
  0x12 LB: > { %14773 = sst [smem:[#allocation31_spill]] %s12523_s3  ;;  %s12665_s17 = sadd.s32 4294967295, %s12523_s3   ;;  %s12523_s3 = sphi %s12659_s3, %s43_s3  }
  0x13   : > { %p8422_p0 = scmp.ge.s32.totalorder %s12523_s3, 1  ;;  %p499_p1 = scmp.lt.s32.totalorder %s12523_s3, 3 }
  0x14   : > { %p14695_p2 = scmp.eq.s32.totalorder %s12665_s17, 0  ;;  %s12525_s19 = smov [#allocation7]  }
  0x15   : > { %p12670_p3 = pnand %p8422_p0, %p499_p1  ;;  %s524_s26 = sshll.u32 %s12525_s19, 4  ;;  %s12674_s26 = int_to_ptr.vmem [resolvable:$true] %s524_s26 }
  0x16   : > { %s12526_s27 = smov [#allocation10]   ;;  %s12527_s29 = smov [#allocation13]  }
  0x17   : > { %s14774_s18 = scalar_select %p12670_p3, 1, 0 }
  0x18   : > { %p12024_p4 = pneg %p12670_p3  ;;  %s550_s28 = sshll.u32 %s12526_s27, 4  ;;  %s12678_s28 = int_to_ptr.vmem [resolvable:$true] %s550_s28 }
  0x19   : > { %s576_s30 = sshll.u32 %s12527_s29, 4  ;;  %s12528_s0 = smov [#allocation16]   ;;  %s12686_s30 = int_to_ptr.vmem [resolvable:$true] %s576_s30 }
  0x1a   : > { %p12682_p5 = pnand %p14695_p2, %p12024_p4  ;;  %s12688_s21 = sshll.u32 %s12528_s0, 4  ;;  %s603_s21 = int_to_ptr.vmem [resolvable:$true] %s12688_s21 }
  0x1b   : > { %s14776_s23 = sld [smem:[#allocation58_spill]] }
  0x1c   : > { %p12698_p7 = pneg %p12682_p5 }
  0x21   : > { %s12153_s24 = scalar_lea.hbm %s14776_s23, 2304 }
  0x22   : > { %p12154_p6 = scmp.ne.s32.totalorder %s14776_s23, %s12153_s24  ;;  %p12160_p10 = scmp.lt.u32.totalorder %s12153_s24, %s14776_s23 }
  0x24   : > { %p12156_p8 = pnand %p12698_p7, %p12154_p6 }
  0x26   : > { %p12157_p9 = pneg %p12156_p8 }
  0x28   : > { %p12162_p11 = pnand %p12160_p10, %p12157_p9 }
  0x2a   : > { %12165 = shalt.err (!%p12162_p11)
}
  0x2b   : > { %s12166_s0 = scalar_lea.vmem %s12674_s26, 2304  ;;  %p12174_p1 = scmp.lt.s32.totalorder %s12674_s26, %s12674_s26 }
  0x2c   : > { %p12167_p12 = scmp.ne.s32.totalorder %s12674_s26, %s12166_s0  ;;  %p12175_p4 = scmp.lt.s32.totalorder %s12166_s0, %s12166_s0 }
  0x2e   : > { %p12169_p13 = pnand %p12167_p12, %p12698_p7  ;;  %p12176_p6 = por %p12175_p4, %p12174_p1 }
  0x30   : > { %p12170_p0 = pneg %p12169_p13 }
  0x32   : > { %p12177_p8 = pnand %p12176_p6, %p12170_p0 }
  0x34   : > { %12180 = shalt.err (!%p12177_p8)
}
  0x35   : > { %s12529_s1 = smov 128   ;;  %s12530_s22 = smov 8  }
  0x36   : > { %12030 = dma.hbm_to_vmem [thread:$0]  (!%p12682_p5), %s14776_s23, 2304, %s12674_s26, [#allocation8], %s12529_s1, %s12529_s1, %s12530_s22  }
  0x37   : > { %s14778_s29 = sld [smem:[#allocation60_spill]] }
  0x3d   : > { %s12181_s0 = scalar_lea.hbm %s14778_s29, 256 }
  0x3e   : > { %p12182_p9 = scmp.ne.s32.totalorder %s14778_s29, %s12181_s0  ;;  %p12188_p12 = scmp.lt.u32.totalorder %s12181_s0, %s14778_s29 }
  0x40   : > { %p12184_p10 = pnand %p12182_p9, %p12698_p7 }
  0x42   : > { %p12185_p11 = pneg %p12184_p10 }
  0x44   : > { %p12190_p13 = pnand %p12188_p12, %p12185_p11 }
  0x46   : > { %12193 = shalt.err (!%p12190_p13)
}
  0x47   : > { %s12194_s26 = scalar_lea.vmem %s12678_s28, 256  ;;  %p12202_p6 = scmp.lt.s32.totalorder %s12678_s28, %s12678_s28 }
  0x48   : > { %p12195_p0 = scmp.ne.s32.totalorder %s12678_s28, %s12194_s26  ;;  %p12203_p8 = scmp.lt.s32.totalorder %s12194_s26, %s12194_s26 }
  0x4a   : > { %p12197_p1 = pnand %p12195_p0, %p12698_p7  ;;  %p12204_p9 = por %p12203_p8, %p12202_p6 }
  0x4c   : > { %p12198_p4 = pneg %p12197_p1 }
  0x4e   : > { %p12205_p10 = pnand %p12204_p9, %p12198_p4 }
  0x50   : > { %12208 = shalt.err (!%p12205_p10)
}
  0x51   : > { %12036 = dma.hbm_to_vmem [thread:$0]  (!%p12682_p5), %s14778_s29, 256, %s12678_s28, [#allocation11], %s12529_s1, %s12529_s1, %s12530_s22  }
  0x52   : > { %s14779_s6 = sld [smem:[#allocation61_spill]] }
  0x58   : > { %s12209_s24 = scalar_lea.hbm %s14779_s6, 256 }
  0x59   : > { %p12210_p11 = scmp.ne.s32.totalorder %s14779_s6, %s12209_s24  ;;  %p12216_p0 = scmp.lt.u32.totalorder %s12209_s24, %s14779_s6 }
  0x5b   : > { %p12212_p12 = pnand %p12210_p11, %p12698_p7 }
  0x5d   : > { %p12213_p13 = pneg %p12212_p12 }
  0x5f   : > { %p12218_p1 = pnand %p12216_p0, %p12213_p13 }
  0x61   : > { %12221 = shalt.err (!%p12218_p1)
}
  0x62   : > { %s12222_s28 = scalar_lea.vmem %s12686_s30, 256  ;;  %p12230_p9 = scmp.lt.s32.totalorder %s12686_s30, %s12686_s30 }
  0x63   : > { %p12223_p4 = scmp.ne.s32.totalorder %s12686_s30, %s12222_s28  ;;  %p12231_p10 = scmp.lt.s32.totalorder %s12222_s28, %s12222_s28 }
  0x65   : > { %p12225_p6 = pnand %p12223_p4, %p12698_p7  ;;  %p12232_p11 = por %p12231_p10, %p12230_p9 }
  0x67   : > { %p12226_p8 = pneg %p12225_p6 }
  0x69   : > { %p12233_p12 = pnand %p12232_p11, %p12226_p8 }
  0x6b   : > { %12236 = shalt.err (!%p12233_p12)
}
  0x6c   : > { %12042 = dma.hbm_to_vmem [thread:$0]  (!%p12682_p5), %s14779_s6, 256, %s12686_s30, [#allocation14], %s12529_s1, %s12529_s1, %s12530_s22  }
  0x6d   : > { %s14780_s8 = sld [smem:[#allocation62_spill]] }
  0x73   : > { %s12237_s3 = scalar_lea.hbm %s14780_s8, 3456 }
  0x74   : > { %p12238_p13 = scmp.ne.s32.totalorder %s14780_s8, %s12237_s3  ;;  %p12244_p4 = scmp.lt.u32.totalorder %s12237_s3, %s14780_s8 }
  0x76   : > { %p12240_p0 = pnand %p12238_p13, %p12698_p7 }
  0x78   : > { %p12241_p1 = pneg %p12240_p0 }
  0x7a   : > { %p12246_p6 = pnand %p12244_p4, %p12241_p1 }
  0x7c   : > { %12249 = shalt.err (!%p12246_p6)
}
  0x7d   : > { %s12250_s0 = scalar_lea.vmem %s603_s21, 3456  ;;  %p12258_p11 = scmp.lt.s32.totalorder %s603_s21, %s603_s21 }
  0x7e   : > { %p12251_p8 = scmp.ne.s32.totalorder %s603_s21, %s12250_s0  ;;  %p12259_p12 = scmp.lt.s32.totalorder %s12250_s0, %s12250_s0 }
  0x80   : > { %p12253_p9 = pnand %p12251_p8, %p12698_p7  ;;  %p12260_p2 = por %p12259_p12, %p12258_p11 }
  0x82   : > { %p12254_p10 = pneg %p12253_p9 }
  0x84   : > { %p12261_p3 = pnand %p12260_p2, %p12254_p10 }
  0x86   : > { %12264 = shalt.err (!%p12261_p3)
}
  0x87   : > { %12048 = dma.hbm_to_vmem [thread:$0]  (!%p12682_p5), %s14780_s8, 3456, %s603_s21, [#allocation17], %s12529_s1, %s12529_s1, %s12530_s22  }
  0x88   : > { %s12531_s26 = smov [#allocation19]   ;;  %s12532_s16 = smov [#allocation5]  }
  0x89   : > { %s628_s15 = sshll.u32 %s12531_s26, 4  ;;  %s511_s20 = sshll.u32 %s12532_s16, 4  ;;  %s629_s15 = int_to_ptr.vmem [resolvable:$true] %s628_s15  ;;  %s512_s20 = int_to_ptr.vmem [resolvable:$true] %s511_s20 }
  0x8a   : > { %s12265_s2 = scalar_lea.hbm %s14679_s10, 384 }
  0x8b   : > { %p12266_p2 = scmp.ne.s32.totalorder %s14679_s10, %s12265_s2  ;;  %p12272_p0 = scmp.lt.u32.totalorder %s12265_s2, %s14679_s10 }
  0x8d   : > { %p12268_p3 = pnand %p12266_p2, %p12698_p7 }
  0x8f   : > { %p12269_p13 = pneg %p12268_p3 }
  0x91   : > { %p12274_p1 = pnand %p12272_p0, %p12269_p13 }
  0x93   : > { %12277 = shalt.err (!%p12274_p1)
}
  0x94   : > { %s12278_s21 = scalar_lea.vmem %s629_s15, 384  ;;  %p12286_p9 = scmp.lt.s32.totalorder %s629_s15, %s629_s15 }
  0x95   : > { %p12279_p4 = scmp.ne.s32.totalorder %s629_s15, %s12278_s21  ;;  %p12287_p10 = scmp.lt.s32.totalorder %s12278_s21, %s12278_s21 }
  0x97   : > { %p12281_p6 = pnand %p12279_p4, %p12698_p7  ;;  %p12288_p11 = por %p12287_p10, %p12286_p9 }
  0x99   : > { %p12282_p8 = pneg %p12281_p6 }
  0x9b   : > { %p12289_p12 = pnand %p12288_p11, %p12282_p8 }
  0x9d   : > { %12292 = shalt.err (!%p12289_p12)
}
  0x9e   : > { %12054 = dma.hbm_to_vmem [thread:$0]  (!%p12682_p5), %s14679_s10, 384, %s629_s15, [#allocation20], %s12529_s1, %s12529_s1, %s12530_s22  }
  0x9f   : > { %s14781_s24 = sld [smem:[#allocation57_spill]] }
  0xa5   : > { %s12293_s2 = scalar_lea.hbm %s14781_s24, 12672 }
  0xa6   : > { %p12294_p2 = scmp.ne.s32.totalorder %s14781_s24, %s12293_s2  ;;  %p12300_p0 = scmp.lt.u32.totalorder %s12293_s2, %s14781_s24 }
  0xa8   : > { %p12296_p3 = pnand %p12294_p2, %p12698_p7 }
  0xaa   : > { %p12297_p13 = pneg %p12296_p3 }
  0xac   : > { %p12302_p1 = pnand %p12300_p0, %p12297_p13 }
  0xae   : > { %12305 = shalt.err (!%p12302_p1)
}
  0xaf   : > { %s12306_s21 = scalar_lea.vmem %s512_s20, 12672  ;;  %p12314_p9 = scmp.lt.s32.totalorder %s512_s20, %s512_s20 }
  0xb0   : > { %p12307_p4 = scmp.ne.s32.totalorder %s512_s20, %s12306_s21  ;;  %p12315_p10 = scmp.lt.s32.totalorder %s12306_s21, %s12306_s21 }
  0xb2   : > { %p12309_p6 = pnand %p12307_p4, %p12698_p7  ;;  %p12316_p11 = por %p12315_p10, %p12314_p9 }
  0xb4   : > { %p12310_p8 = pneg %p12309_p6 }
  0xb6   : > { %p12317_p12 = pnand %p12316_p11, %p12310_p8 }
  0xb8   : > { %12320 = shalt.err (!%p12317_p12)
}
  0xb9   : > { %12027 = dma.hbm_to_vmem [thread:$0]  (!%p12682_p5), %s14781_s24, 12672, %s512_s20, [#allocation6], %s12529_s1, %s12529_s1, %s12530_s22  }
  0xba   : > { %s12533_s26 = smov [#allocation9]   ;;  %s12534_s3 = smov [#allocation12]  }
  0xbb   : > { %s537_s16 = sshll.u32 %s12533_s26, 4  ;;  %s563_s2 = sshll.u32 %s12534_s3, 4  ;;  %s538_s16 = int_to_ptr.vmem [resolvable:$true] %s537_s16  ;;  %s564_s2 = int_to_ptr.vmem [resolvable:$true] %s563_s2 }
  0xbc   : > { %s14782_s0 = sld [smem:[#allocation59_spill]] }
  0xc2   : > { %s12321_s30 = scalar_lea.hbm %s14782_s0, 256 }
  0xc3   : > { %p12322_p2 = scmp.ne.s32.totalorder %s14782_s0, %s12321_s30  ;;  %p12328_p0 = scmp.lt.u32.totalorder %s12321_s30, %s14782_s0 }
  0xc5   : > { %p12324_p3 = pnand %p12322_p2, %p12698_p7 }
  0xc7   : > { %p12325_p13 = pneg %p12324_p3 }
  0xc9   : > { %p12330_p1 = pnand %p12328_p0, %p12325_p13 }
  0xcb   : > { %12333 = shalt.err (!%p12330_p1)
}
  0xcc   : > { %s12334_s20 = scalar_lea.vmem %s538_s16, 256  ;;  %p12342_p9 = scmp.lt.s32.totalorder %s538_s16, %s538_s16 }
  0xcd   : > { %p12335_p4 = scmp.ne.s32.totalorder %s538_s16, %s12334_s20  ;;  %p12343_p10 = scmp.lt.s32.totalorder %s12334_s20, %s12334_s20 }
  0xcf   : > { %p12337_p6 = pnand %p12335_p4, %p12698_p7  ;;  %p12344_p11 = por %p12343_p10, %p12342_p9 }
  0xd1   : > { %p12338_p8 = pneg %p12337_p6 }
  0xd3   : > { %p12345_p12 = pnand %p12344_p11, %p12338_p8 }
  0xd5   : > { %12348 = shalt.err (!%p12345_p12)
}
  0xd6   : > { %12033 = dma.hbm_to_vmem [thread:$0]  (!%p12682_p5), %s14782_s0, 256, %s538_s16, [#allocation8], %s12529_s1, %s12529_s1, %s12530_s22  }
  0xd7   : > { %s12349_s3 = scalar_lea.hbm %s14674_s5, 2304 }
  0xd8   : > { %p12350_p2 = scmp.ne.s32.totalorder %s14674_s5, %s12349_s3  ;;  %p12356_p0 = scmp.lt.u32.totalorder %s12349_s3, %s14674_s5 }
  0xda   : > { %p12352_p3 = pnand %p12350_p2, %p12698_p7 }
  0xdc   : > { %p12353_p13 = pneg %p12352_p3 }
  0xde   : > { %p12358_p1 = pnand %p12356_p0, %p12353_p13 }
  0xe0   : > { %12361 = shalt.err (!%p12358_p1)
}
  0xe1   : > { %s12362_s15 = scalar_lea.vmem %s564_s2, 2304  ;;  %p12370_p9 = scmp.lt.s32.totalorder %s564_s2, %s564_s2 }
  0xe2   : > { %p12363_p4 = scmp.ne.s32.totalorder %s564_s2, %s12362_s15  ;;  %p12371_p10 = scmp.lt.s32.totalorder %s12362_s15, %s12362_s15 }
  0xe4   : > { %p12365_p6 = pnand %p12363_p4, %p12698_p7  ;;  %p12372_p11 = por %p12371_p10, %p12370_p9 }
  0xe6   : > { %p12366_p8 = pneg %p12365_p6 }
  0xe8   : > { %p12373_p12 = pnand %p12372_p11, %p12366_p8 }
  0xea   : > { %12376 = shalt.err (!%p12373_p12)
}
  0xeb   : > { %12039 = dma.hbm_to_vmem [thread:$0]  (!%p12682_p5), %s14674_s5, 2304, %s564_s2, [#allocation11], %s12529_s1, %s12529_s1, %s12530_s22  }
  0xec   : > { %s12535_s6 = smov [#allocation15]   ;;  %s12536_s28 = smov [#allocation18]  }
  0xed   : > { %s589_s8 = sshll.u32 %s12535_s6, 4  ;;  %s615_s26 = sshll.u32 %s12536_s28, 4  ;;  %s590_s8 = int_to_ptr.vmem [resolvable:$true] %s589_s8  ;;  %s616_s26 = int_to_ptr.vmem [resolvable:$true] %s615_s26 }
  0xee   : > { %s12377_s27 = scalar_lea.hbm %s14676_s7, 256 }
  0xef   : > { %p12378_p2 = scmp.ne.s32.totalorder %s14676_s7, %s12377_s27  ;;  %p12384_p0 = scmp.lt.u32.totalorder %s12377_s27, %s14676_s7 }
  0xf1   : > { %p12380_p3 = pnand %p12378_p2, %p12698_p7 }
  0xf3   : > { %p12381_p13 = pneg %p12380_p3 }
  0xf5   : > { %p12386_p1 = pnand %p12384_p0, %p12381_p13 }
  0xf7   : > { %12389 = shalt.err (!%p12386_p1)
}
  0xf8   : > { %s12390_s2 = scalar_lea.vmem %s590_s8, 256  ;;  %p12398_p9 = scmp.lt.s32.totalorder %s590_s8, %s590_s8 }
  0xf9   : > { %p12391_p4 = scmp.ne.s32.totalorder %s590_s8, %s12390_s2  ;;  %p12399_p10 = scmp.lt.s32.totalorder %s12390_s2, %s12390_s2 }
  0xfb   : > { %p12393_p6 = pnand %p12391_p4, %p12698_p7  ;;  %p12400_p11 = por %p12399_p10, %p12398_p9 }
  0xfd   : > { %p12394_p8 = pneg %p12393_p6 }
  0xff   : > { %p12401_p12 = pnand %p12400_p11, %p12394_p8 }
 0x101   : > { %12404 = shalt.err (!%p12401_p12)
}
 0x102   : > { %12045 = dma.hbm_to_vmem [thread:$0]  (!%p12682_p5), %s14676_s7, 256, %s590_s8, [#allocation14], %s12529_s1, %s12529_s1, %s12530_s22  }
 0x103   : > { %s12405_s25 = scalar_lea.hbm %s14678_s9, 384 }
 0x104   : > { %p12406_p2 = scmp.ne.s32.totalorder %s14678_s9, %s12405_s25  ;;  %p12412_p0 = scmp.lt.u32.totalorder %s12405_s25, %s14678_s9 }
 0x106   : > { %p12408_p3 = pnand %p12406_p2, %p12698_p7 }
 0x108   : > { %p12409_p13 = pneg %p12408_p3 }
 0x10a   : > { %p12414_p1 = pnand %p12412_p0, %p12409_p13 }
 0x10c   : > { %12417 = shalt.err (!%p12414_p1)
}
 0x10d   : > { %s12418_s16 = scalar_lea.vmem %s616_s26, 384  ;;  %p12426_p9 = scmp.lt.s32.totalorder %s616_s26, %s616_s26 }
 0x10e   : > { %p12419_p4 = scmp.ne.s32.totalorder %s616_s26, %s12418_s16  ;;  %p12427_p10 = scmp.lt.s32.totalorder %s12418_s16, %s12418_s16 }
 0x110   : > { %p12421_p6 = pnand %p12419_p4, %p12698_p7  ;;  %p12428_p11 = por %p12427_p10, %p12426_p9 }
 0x112   : > { %p12422_p8 = pneg %p12421_p6 }
 0x114   : > { %p12429_p12 = pnand %p12428_p11, %p12422_p8 }
 0x116   : > { %12432 = shalt.err (!%p12429_p12)
}
 0x117   : > { %12051 = dma.hbm_to_vmem [thread:$0]  (!%p12682_p5), %s14678_s9, 384, %s616_s26, [#allocation17], %s12529_s1, %s12529_s1, %s12530_s22  }
 0x118   : > { %s12537_s20 = smov [#allocation21]   ;;  %s12538_s28 = smov [#allocation22]  }
 0x119   : > { %s641_s6 = sshll.u32 %s12537_s20, 4  ;;  %s654_s3 = sshll.u32 %s12538_s28, 4  ;;  %s642_s6 = int_to_ptr.vmem [resolvable:$true] %s641_s6  ;;  %s655_s3 = int_to_ptr.vmem [resolvable:$true] %s654_s3 }
 0x11a   : > { %s12433_s30 = scalar_lea.hbm %s14680_s11, 3456 }
 0x11b   : > { %p12434_p2 = scmp.ne.s32.totalorder %s14680_s11, %s12433_s30  ;;  %p12440_p0 = scmp.lt.u32.totalorder %s12433_s30, %s14680_s11 }
 0x11d   : > { %p12436_p3 = pnand %p12434_p2, %p12698_p7 }
 0x11f   : > { %p12437_p13 = pneg %p12436_p3 }
 0x121   : > { %p12442_p1 = pnand %p12440_p0, %p12437_p13 }
 0x123   : > { %12445 = shalt.err (!%p12442_p1)
}
 0x124   : > { %s12446_s26 = scalar_lea.vmem %s642_s6, 3456  ;;  %p12454_p9 = scmp.lt.s32.totalorder %s642_s6, %s642_s6 }
 0x125   : > { %p12447_p4 = scmp.ne.s32.totalorder %s642_s6, %s12446_s26  ;;  %p12455_p10 = scmp.lt.s32.totalorder %s12446_s26, %s12446_s26 }
 0x127   : > { %p12449_p6 = pnand %p12447_p4, %p12698_p7  ;;  %p12456_p11 = por %p12455_p10, %p12454_p9 }
 0x129   : > { %p12450_p8 = pneg %p12449_p6 }
 0x12b   : > { %p12457_p12 = pnand %p12456_p11, %p12450_p8 }
 0x12d   : > { %12460 = shalt.err (!%p12457_p12)
}
 0x12e   : > { %12057 = dma.hbm_to_vmem [thread:$0]  (!%p12682_p5), %s14680_s11, 3456, %s642_s6, [#allocation20], %s12529_s1, %s12529_s1, %s12530_s22  }
 0x12f   : > { %s12461_s27 = scalar_lea.hbm %s14681_s12, 384 }
 0x130   : > { %p12462_p2 = scmp.ne.s32.totalorder %s14681_s12, %s12461_s27  ;;  %p12468_p0 = scmp.lt.u32.totalorder %s12461_s27, %s14681_s12 }
 0x132   : > { %p12464_p3 = pnand %p12462_p2, %p12698_p7 }
 0x134   : > { %p12465_p13 = pneg %p12464_p3 }
 0x136   : > { %p12470_p1 = pnand %p12468_p0, %p12465_p13 }
 0x138   : > { %12473 = shalt.err (!%p12470_p1)
}
 0x139   : > { %s12474_s8 = scalar_lea.vmem %s655_s3, 384  ;;  %p12482_p9 = scmp.lt.s32.totalorder %s655_s3, %s655_s3 }
 0x13a   : > { %p12475_p4 = scmp.ne.s32.totalorder %s655_s3, %s12474_s8  ;;  %p12483_p10 = scmp.lt.s32.totalorder %s12474_s8, %s12474_s8 }
 0x13c   : > { %p12477_p6 = pnand %p12475_p4, %p12698_p7  ;;  %p12484_p11 = por %p12483_p10, %p12482_p9 }
 0x13e   : > { %p12478_p8 = pneg %p12477_p6 }
 0x140   : > { %p12485_p12 = pnand %p12484_p11, %p12478_p8 }
 0x142   : > { %12488 = shalt.err (!%p12485_p12)
}
 0x143   : > { %12060 = dma.hbm_to_vmem [thread:$0]  (!%p12682_p5), %s14681_s12, 384, %s655_s3, [#allocation23], %s12529_s1, %s12529_s1, %s12530_s22  }
 0x144   : > { %p14783_p2 = scmp.ne.s32.totalorder %s14774_s18, 0 }
 0x146   : > { %698 = sbr.rel (%p14783_p2) target bundleno = 6366 (0x18de), region = 100 }
 0x14d   : > { %p14784_p7 = scmp.eq.s32.totalorder %s12665_s17, 0 }
 0x14f   : > { %12494 = dma.done.wait (%p14784_p7), [#allocation6], 12672   ;;  %p14785_p3 = pmov %p14784_p7 }
 0x151   : > { %12496 = vsyncadd (%p14785_p3), [#allocation6], 4294954624  ;;  %p14786_p13 = pmov %p14785_p3 }
 0x152   : > { %p14787_p0 = pmov %p14785_p3 }
 0x153   : > { %12498 = dma.done.wait (%p14786_p13), [#allocation8], 2560  }
 0x154   : > { %12500 = vsyncadd (%p14787_p0), [#allocation8], 4294964736  ;;  %p14788_p1 = pmov %p14787_p0 }
 0x155   : > { %p14789_p5 = pmov %p14787_p0 }
 0x156   : > { %12502 = dma.done.wait (%p14788_p1), [#allocation11], 2560  }
 0x157   : > { %12504 = vsyncadd (%p14789_p5), [#allocation11], 4294964736  ;;  %p14790_p4 = pmov %p14787_p0 }
 0x158   : > { %p14791_p6 = pmov %p14787_p0 }
 0x159   : > { %12506 = dma.done.wait (%p14790_p4), [#allocation14], 512  }
 0x15a   : > { %12508 = vsyncadd (%p14791_p6), [#allocation14], 4294966784  ;;  %p14792_p8 = pmov %p14787_p0 }
 0x15b   : > { %p14793_p9 = pmov %p14787_p0 }
 0x15c   : > { %12510 = dma.done.wait (%p14792_p8), [#allocation17], 3840  }
 0x15d   : > { %12512 = vsyncadd (%p14793_p9), [#allocation17], 4294963456  ;;  %p14794_p10 = pmov %p14787_p0 }
 0x15e   : > { %p14795_p11 = pmov %p14787_p0 }
 0x15f   : > { %12514 = dma.done.wait (%p14794_p10), [#allocation20], 3840  }
 0x160   : > { %12516 = vsyncadd (%p14795_p11), [#allocation20], 4294963456  ;;  %p14796_p12 = pmov %p14787_p0 }
 0x161   : > { %p14797_p2 = pmov %p14787_p0 }
 0x162   : > { %12518 = dma.done.wait (%p14796_p12), [#allocation23], 384  }
 0x163   : > { %12520 = vsyncadd (%p14797_p2), [#allocation23], 4294966912  ;;  %p797_p7 = scmp.lt.s32.totalorder %s12665_s17, 1  ;;  %s14798_s1 = sld [smem:[#allocation56_spill]]  ;;  %vm814_vm0 = vcmask 1045504   ;;  %vm807_vm1 = vcmask 48128  }
 0x164   : > { %v905_v4 = vld [vmem:[#allocation7 + $0x10] sm:$0xff]  ;;  %v906_v5 = vld [vmem:[#allocation7 + $0x18] sm:$0xf]  ;;  %v989_v6 = vld [vmem:[#allocation5 + $0x58] sm:$0xff]  ;;  %vm1007_vm2 = vcmask 1040384   ;;  %vm1000_vm3 = vcmask 662528  }
 0x165   : > { %s14883_s17 = smov (!%p797_p7, %s12665_s17), 1  ;;  %9489 = vmatprep.mubr.msk.f32.mxu1 %vm807_vm1, %v905_v4  ;;  %v990_v7 = vld [vmem:[#allocation5 + $0x60] sm:$0xff]  ;;  %v805_v8 = vld [vmem:[#allocation7] sm:$0xff]  ;;  %v991_v11 = vld [vmem:[#allocation5 + $0x68] sm:$0xff]  ;;  %vm2447_vm4 = vcmask 658432   ;;  %vm2454_vm5 = vcmask 1043456  }
 0x166   : > { %s8449_s18 = sshll.u32 %s14883_s17, 3  ;;  %v13014_v9 = vpack.c.bf16 %v990_v7, %v989_v6  ;;  %v806_v10 = vld [vmem:[#allocation7 + $0x8] sm:$0xf]  ;;  %v992_v12 = vld [vmem:[#allocation5 + $0x70] sm:$0xff]  ;;  %v993_v14 = vld [vmem:[#allocation5 + $0x78] sm:$0xff]  ;;  %9484 = vmatprep.mubr.msk.f32.mxu0 %vm807_vm1, %v805_v8  ;;  %vm2572_vm6 = vcmask 97280  }
 0x167   : > { %v13019_v13 = vpack.c.bf16 %v992_v12, %v991_v11  ;;  %v994_v15 = vld [vmem:[#allocation5 + $0x80] sm:$0xff]  ;;  %v995_v17 = vld [vmem:[#allocation5 + $0x88] sm:$0xff]  ;;  %v996_v18 = vld [vmem:[#allocation5 + $0x90] sm:$0xff]  ;;  %vm12541_vm9 = vmmov 1   ;;  %vm12543_vm11 = vmmov 0   ;;  %vm5980_vm15 = vcmask 195584  }
 0x168   : > { %v13026_v16 = vpack.c.bf16 %v994_v15, %v993_v14  ;;  %v13030_v19 = vpack.c.bf16 %v996_v18, %v995_v17  ;;  %v997_v20 = vld [vmem:[#allocation5 + $0x98] sm:$0xff]  ;;  %v998_v21 = vld [vmem:[#allocation5 + $0xa0] sm:$0xff]  ;;  %v13039_v23 = vld [vmem:[#allocation5 + $0xa8] sm:$0x1]  ;;  %s14878_s6 = sld [smem:[#allocation63_spill]]  ;;  %s14879_s4 = sld [smem:[#allocation64_spill]] }
 0x169   : > { %s13002_s22 = scalar_lea.vmem %s14798_s1, %s8449_s18  ;;  %v13034_v22 = vpack.c.bf16 %v998_v21, %v997_v20  ;;  %v893_v24 = vld [vmem:[#allocation5] sm:$0xff]  ;;  %v894_v25 = vld [vmem:[#allocation5 + $0x8] sm:$0xff]  ;;  %v895_v26 = vld [vmem:[#allocation5 + $0x10] sm:$0xff]  ;;  %s14880_s1 = sld [smem:[#allocation65_spill]] }
 0x16a   : > { %v13005_v3 = vld [vmem:[%s13002_s22] sm:$0x3f]  ;;  %v13047_v27 = vpack.c.bf16 %v894_v25, %v893_v24  ;;  %v896_v28 = vld [vmem:[#allocation5 + $0x18] sm:$0xff]  ;;  %v897_v30 = vld [vmem:[#allocation5 + $0x20] sm:$0xff] }
 0x16b   : > { %9487 = vmatprep.subr.msk.mxu1 %vm814_vm0, %v13005_v3  ;;  %9482 = vmatprep.subr.msk.mxu0 %vm814_vm0, %v13005_v3  ;;  %v13049_v29 = vpack.c.bf16 %v896_v28, %v895_v26  ;;  %v898_v31 = vld [vmem:[#allocation5 + $0x28] sm:$0xff]  ;;  %v899_v33 = vld [vmem:[#allocation5 + $0x30] sm:$0xff]  ;;  %v900_v34 = vld [vmem:[#allocation5 + $0x38] sm:$0xff] }
 0x16c   : > { %9488 = vmatpush3.msk.msra.mxu1 %vm814_vm0, %v13005_v3  ;;  %9483 = vmatpush3.msk.msra.mxu0 %vm814_vm0, %v13005_v3  ;;  %v13054_v32 = vpack.c.bf16 %v898_v31, %v897_v30  ;;  %v13058_v35 = vpack.c.bf16 %v900_v34, %v899_v33  ;;  %v901_v36 = vld [vmem:[#allocation5 + $0x40] sm:$0xff]  ;;  %v902_v37 = vld [vmem:[#allocation5 + $0x48] sm:$0xff]  ;;  %v13066_v39 = vld [vmem:[#allocation5 + $0x50] sm:$0x1] }
 0x16d   : > { %9490 = vmatmul.mubr.msk.f32.vlgmr.msra.gmra.mrb[0].mxu1 %vm807_vm1, %v906_v5  ;;  %11001 = vmatprep.subr.bf16.mxu1 %v13014_v9  ;;  %v13062_v38 = vpack.c.bf16 %v902_v37, %v901_v36  ;;  %v1255_v40 = vld [vmem:[#allocation5 + $0xb0] sm:$0xff]  ;;  %v1256_v41 = vld [vmem:[#allocation5 + $0xb8] sm:$0xff]  ;;  %v1257_v47 = vld [vmem:[#allocation5 + $0xc0] sm:$0xff] }
 0x16e   : > { %11003 = vmatpush3.bf16.msra.mxu1 %v13014_v9  ;;  %9485 = vmatmul.mubr.msk.f32.vlgmr.msra.gmra.mrb[0].mxu0 %vm807_vm1, %v806_v10  ;;  %v13071_v42 = vpack.c.bf16 %v1256_v41, %v1255_v40  ;;  %v1171_v45 = vld [vmem:[#allocation7 + $0x20] sm:$0xff]  ;;  %v1258_v48 = vld [vmem:[#allocation5 + $0xc8] sm:$0xff]  ;;  %v1172_v50 = vld [vmem:[#allocation7 + $0x28] sm:$0xf] }
 0x16f   : > { %11005 = vmatprep.subr.bf16.mxu1 %v13019_v13  ;;  %11021 = vmatprep.subr.bf16.mxu0 %v13047_v27  ;;  %v1353_v51 = vld [vmem:[#allocation7 + $0x30] sm:$0xff]  ;;  %v13084_v52 = vpack.c.bf16 %v1258_v48, %v1257_v47  ;;  %v1259_v53 = vld [vmem:[#allocation5 + $0xd0] sm:$0xff]  ;;  %v1260_v54 = vld [vmem:[#allocation5 + $0xd8] sm:$0xff]  ;;  %s803_s3 = scalar_lea.vmem %s14880_s1, %s14883_s17 }
 0x170   : > { %11023 = vmatpush3.bf16.msra.mxu0 %v13047_v27  ;;  %v1354_v55 = vld [vmem:[#allocation7 + $0x38] sm:$0xf]  ;;  %v1535_v56 = vld [vmem:[#allocation7 + $0x40] sm:$0xff]  ;;  %v13095_v57 = vpack.c.bf16 %v1260_v54, %v1259_v53  ;;  %v1261_v58 = vld [vmem:[#allocation5 + $0xe0] sm:$0xff] }
 0x171   : > { %11025 = vmatprep.subr.bf16.mxu0 %v13049_v29  ;;  %v1262_v59 = vld [vmem:[#allocation5 + $0xe8] sm:$0xff]  ;;  %v1536_v60 = vld [vmem:[#allocation7 + $0x48] sm:$0xf]  ;;  %v1718_v63 = vld [vmem:[#allocation7 + $0x58] sm:$0xf] }
 0x172   : > { %11007 = vmatpush3.bf16.msra.mxu1 %v13019_v13  ;;  %v1717_v61 = vld [vmem:[#allocation7 + $0x50] sm:$0xff]  ;;  %v13105_v62 = vpack.c.bf16 %v1262_v59, %v1261_v58  ;;  %v1899_v0 = vld [vmem:[#allocation7 + $0x60] sm:$0xff]  ;;  %v1900_v1 = vld [vmem:[#allocation7 + $0x68] sm:$0xf] }
 0x173   : > { %11009 = vmatprep.subr.bf16.mxu1 %v13026_v16  ;;  %v2081_v2 = vld [vmem:[#allocation7 + $0x70] sm:$0xff]  ;;  %v2082_v4 = vld [vmem:[#allocation7 + $0x78] sm:$0xf]  ;;  %v2263_v5 = vld [vmem:[#allocation7 + $0x80] sm:$0xff] }
 0x174   : > { %11027 = vmatpush3.bf16.msra.mxu0 %v13049_v29  ;;  %v2264_v6 = vld [vmem:[#allocation7 + $0x88] sm:$0xf]  ;;  %v1263_v7 = vld [vmem:[#allocation5 + $0xf0] sm:$0xff]  ;;  %v1264_v8 = vld [vmem:[#allocation5 + $0xf8] sm:$0xff] }
 0x175   : > { %11029 = vmatprep.subr.bf16.mxu0 %v13054_v32  ;;  %v13133_v10 = vpack.c.bf16 %v1264_v8, %v1263_v7  ;;  %v13137_v11 = vld [vmem:[#allocation5 + $0x100] sm:$0x1]  ;;  %v1437_v12 = vld [vmem:[#allocation5 + $0x108] sm:$0xff]  ;;  %v1438_v14 = vld [vmem:[#allocation5 + $0x110] sm:$0xff] }
 0x176   : > { %11011 = vmatpush3.bf16.msra.mxu1 %v13026_v16  ;;  %v1439_v18 = vld [vmem:[#allocation5 + $0x118] sm:$0xff]  ;;  %v1440_v20 = vld [vmem:[#allocation5 + $0x120] sm:$0xff]  ;;  %v1441_v26 = vld [vmem:[#allocation5 + $0x128] sm:$0xff] }
 0x177   : > { %11013 = vmatprep.subr.bf16.mxu1 %v13030_v19  ;;  %v13150_v25 = vpack.c.bf16 %v1440_v20, %v1439_v18  ;;  %v1442_v28 = vld [vmem:[#allocation5 + $0x130] sm:$0xff]  ;;  %v1443_v34 = vld [vmem:[#allocation5 + $0x138] sm:$0xff]  ;;  %v1444_v36 = vld [vmem:[#allocation5 + $0x140] sm:$0xff] }
 0x178   : > { %11031 = vmatpush3.bf16.msra.mxu0 %v13054_v32  ;;  %v13156_v31 = vpack.c.bf16 %v1442_v28, %v1441_v26  ;;  %v13161_v40 = vpack.c.bf16 %v1444_v36, %v1443_v34  ;;  %v1620_v53 = vld [vmem:[#allocation5 + $0x168] sm:$0xff]  ;;  %v1621_v54 = vld [vmem:[#allocation5 + $0x170] sm:$0xff]  ;;  %v1627_v7 = vld [vmem:[#allocation5 + $0x1a0] sm:$0xff] }
 0x179   : > { %11033 = vmatprep.subr.bf16.mxu0 %v13058_v35  ;;  %14799 = vst [vmem:[#allocation32_spill] sm:$0xff] %v13150_v25  ;;  %v1628_v8 = vld [vmem:[#allocation5 + $0x1a8] sm:$0xff]  ;;  %v1801_v18 = vld [vmem:[#allocation5 + $0x1b8] sm:$0xff]  ;;  %v1802_v20 = vld [vmem:[#allocation5 + $0x1c0] sm:$0xff] }
 0x17a   : > { %11015 = vmatpush3.bf16.msra.mxu1 %v13030_v19  ;;  %14800 = vst [vmem:[#allocation33_spill] sm:$0xff] %v13156_v31  ;;  %v13216_v26 = vpack.c.bf16 %v1802_v20, %v1801_v18  ;;  %v1807_v36 = vld [vmem:[#allocation5 + $0x1e8] sm:$0xff]  ;;  %v1989_v18 = vld [vmem:[#allocation5 + $0x240] sm:$0xff]  ;;  %vm13350_vm10 = vmpackc.low %vm2454_vm5, %vm12541_vm9 }
 0x17b   : > { %11017 = vmatprep.subr.bf16.mxu1 %v13034_v22  ;;  %v1990_v20 = vld [vmem:[#allocation5 + $0x248] sm:$0xff] }
 0x17c   : > { %11035 = vmatpush3.bf16.msra.mxu0 %v13058_v35 }
 0x17d   : > { %11037 = vmatprep.subr.bf16.mxu0 %v13062_v38 }
 0x17e   : > { %11019 = vmatpush3.bf16.msra.mxu1 %v13034_v22 }
 0x17f   : > { %9512 = vmatprep.subr.msk.mxu1 %vm1007_vm2, %v13039_v23 }
 0x180   : > { %11039 = vmatpush3.bf16.msra.mxu0 %v13062_v38 }
 0x181   : > { %9537 = vmatprep.subr.msk.mxu0 %vm1007_vm2, %v13066_v39 }
 0x182   : > { %9513 = vmatpush3.msk.msra.mxu1 %vm1007_vm2, %v13039_v23 }
 0x183   : > { %9542 = vmatprep.subr.msk.mxu1 %vm814_vm0, %v13005_v3 }
 0x184   : > { %9538 = vmatpush3.msk.msra.mxu0 %vm1007_vm2, %v13066_v39 }
 0x185   : > { %11041 = vmatprep.subr.bf16.mxu0 %v13071_v42 }
 0x240   : > { %v9491_v43 = vpop.f32.mrb[0].mxu1 }
 0x241   : > { %v979_v44 = vpop.f32.mrb[1].mxu1  ;;  %v9486_v46 = vpop.f32.mrb[0].mxu0 }
 0x242   : > { %9514 = vmatprep.mubr.msk.f32.mxu1 %vm1000_vm3, %v979_v44  ;;  %v884_v49 = vpop.f32.mrb[1].mxu0  ;;  %v1446_v44 = vld [vmem:[#allocation5 + $0x150] sm:$0xff] }
 0x243   : > { %9515 = vmatmul.mubr.msk.f32.vlgmr.msra.gmra.mrb[2].mxu1 %vm1000_vm3, %v9491_v43  ;;  %9539 = vmatprep.mubr.msk.f32.mxu0 %vm1000_vm3, %v884_v49  ;;  %v1445_v43 = vld [vmem:[#allocation5 + $0x148] sm:$0xff] }
 0x244   : > { %9543 = vmatpush3.msk.msra.mxu1 %vm814_vm0, %v13005_v3  ;;  %9544 = vmatprep.mubr.msk.f32.mxu1 %vm807_vm1, %v1171_v45 }
 0x245   : > { %9572 = vmatprep.subr.msk.mxu1 %vm814_vm0, %v13005_v3  ;;  %9540 = vmatmul.mubr.msk.f32.vlgmr.msra.gmra.mrb[2].mxu0 %vm1000_vm3, %v9486_v46  ;;  %v13167_v46 = vpack.c.bf16 %v1446_v44, %v1445_v43  ;;  %v1809_v44 = vld [vmem:[#allocation5 + $0x1f8] sm:$0xff] }
 0x246   : > { %11043 = vmatpush3.bf16.msra.mxu0 %v13071_v42 }
 0x247   : > { %9545 = vmatmul.mubr.msk.f32.vlgmr.msra.gmra.mrb[4].mxu1 %vm807_vm1, %v1172_v50  ;;  %11045 = vmatprep.subr.bf16.mxu0 %v13084_v52  ;;  %v13175_v50 = vld [vmem:[#allocation5 + $0x158] sm:$0x1] }
 0x248   : > { %9573 = vmatpush3.msk.msra.mxu1 %vm814_vm0, %v13005_v3  ;;  %9574 = vmatprep.mubr.msk.f32.mxu1 %vm807_vm1, %v1353_v51  ;;  %v1619_v51 = vld [vmem:[#allocation5 + $0x160] sm:$0xff] }
 0x249   : > { %9602 = vmatprep.subr.msk.mxu1 %vm814_vm0, %v13005_v3  ;;  %v13182_v58 = vpack.c.bf16 %v1620_v53, %v1619_v51  ;;  %v1983_v53 = vld [vmem:[#allocation5 + $0x210] sm:$0xff] }
 0x24a   : > { %11047 = vmatpush3.bf16.msra.mxu0 %v13084_v52 }
 0x24b   : > { %9575 = vmatmul.mubr.msk.f32.vlgmr.msra.gmra.mrb[6].mxu1 %vm807_vm1, %v1354_v55  ;;  %11049 = vmatprep.subr.bf16.mxu0 %v13095_v57  ;;  %v1622_v55 = vld [vmem:[#allocation5 + $0x178] sm:$0xff] }
 0x24c   : > { %9603 = vmatpush3.msk.msra.mxu1 %vm814_vm0, %v13005_v3  ;;  %9604 = vmatprep.mubr.msk.f32.mxu1 %vm807_vm1, %v1535_v56 }
 0x24d   : > { %9632 = vmatprep.subr.msk.mxu1 %vm814_vm0, %v13005_v3 }
 0x24e   : > { %11051 = vmatpush3.bf16.msra.mxu0 %v13095_v57 }
 0x24f   : > { %9605 = vmatmul.mubr.msk.f32.vlgmr.msra.gmra.mrb[8].mxu1 %vm807_vm1, %v1536_v60  ;;  %11053 = vmatprep.subr.bf16.mxu0 %v13105_v62  ;;  %v13186_v60 = vpack.c.bf16 %v1622_v55, %v1621_v54  ;;  %v1984_v54 = vld [vmem:[#allocation5 + $0x218] sm:$0xff]  ;;  %v1985_v55 = vld [vmem:[#allocation5 + $0x220] sm:$0xff] }
 0x250   : > { %9633 = vmatpush3.msk.msra.mxu1 %vm814_vm0, %v13005_v3  ;;  %9634 = vmatprep.mubr.msk.f32.mxu1 %vm807_vm1, %v1717_v61  ;;  %v1623_v61 = vld [vmem:[#allocation5 + $0x180] sm:$0xff] }
 0x251   : > { %9662 = vmatprep.subr.msk.mxu1 %vm814_vm0, %v13005_v3 }
 0x252   : > { %11055 = vmatpush3.bf16.msra.mxu0 %v13105_v62 }
 0x253   : > { %9635 = vmatmul.mubr.msk.f32.vlgmr.msra.gmra.mrb[10].mxu1 %vm807_vm1, %v1718_v63  ;;  %11057 = vmatprep.subr.bf16.mxu0 %v13133_v10  ;;  %v1624_v63 = vld [vmem:[#allocation5 + $0x188] sm:$0xff] }
 0x254   : > { %9663 = vmatpush3.msk.msra.mxu1 %vm814_vm0, %v13005_v3  ;;  %9664 = vmatprep.mubr.msk.f32.mxu1 %vm807_vm1, %v1899_v0 }
 0x255   : > { %9692 = vmatprep.subr.msk.mxu1 %vm814_vm0, %v13005_v3 }
 0x256   : > { %11059 = vmatpush3.bf16.msra.mxu0 %v13133_v10 }
 0x257   : > { %9665 = vmatmul.mubr.msk.f32.vlgmr.msra.gmra.mrb[12].mxu1 %vm807_vm1, %v1900_v1  ;;  %9567 = vmatprep.subr.msk.mxu0 %vm1007_vm2, %v13137_v11 }
 0x258   : > { %9693 = vmatpush3.msk.msra.mxu1 %vm814_vm0, %v13005_v3  ;;  %9694 = vmatprep.mubr.msk.f32.mxu1 %vm807_vm1, %v2081_v2  ;;  %v13199_v2 = vpack.c.bf16 %v1624_v63, %v1623_v61  ;;  %v1986_v61 = vld [vmem:[#allocation5 + $0x228] sm:$0xff]  ;;  %v13244_v63 = vpack.c.bf16 %v1984_v54, %v1983_v53 }
 0x259   : > { %9722 = vmatprep.subr.msk.mxu1 %vm814_vm0, %v13005_v3  ;;  %v2169_v54 = vld [vmem:[#allocation5 + $0x288] sm:$0xff] }
 0x25a   : > { %9568 = vmatpush3.msk.msra.mxu0 %vm1007_vm2, %v13137_v11  ;;  %14804 = vst [vmem:[#allocation37_spill] sm:$0xff] %v13244_v63 }
 0x25b   : > { %9695 = vmatmul.mubr.msk.f32.vlgmr.msra.gmra.mrb[14].mxu1 %vm807_vm1, %v2082_v4  ;;  %v1625_v4 = vld [vmem:[#allocation5 + $0x190] sm:$0xff] }
 0x25c   : > { %9723 = vmatpush3.msk.msra.mxu1 %vm814_vm0, %v13005_v3  ;;  %9724 = vmatprep.mubr.msk.f32.mxu1 %vm807_vm1, %v2263_v5  ;;  %v13141_v3 = vpack.c.bf16 %v1438_v14, %v1437_v12  ;;  %v1626_v5 = vld [vmem:[#allocation5 + $0x198] sm:$0xff]  ;;  %v13207_v12 = vpack.c.bf16 %v1628_v8, %v1627_v7  ;;  %v13211_v14 = vld [vmem:[#allocation5 + $0x1b0] sm:$0x1]  ;;  %vm8243_vm0 = vcmask 811008  }
 0x25d   : > { %v1988_v7 = vld [vmem:[#allocation5 + $0x238] sm:$0xff] }
 0x25e   : > { %11061 = vmatprep.subr.bf16.mxu0 %v13141_v3 }
 0x25f   : > { %9725 = vmatmul.mubr.msk.f32.vlgmr.msra.gmra.mrb[16].mxu1 %vm807_vm1, %v2264_v6  ;;  %v13203_v6 = vpack.c.bf16 %v1626_v5, %v1625_v4  ;;  %v13246_v4 = vpack.c.bf16 %v1986_v61, %v1985_v55  ;;  %v1987_v5 = vld [vmem:[#allocation5 + $0x230] sm:$0xff]  ;;  %vm8254_vm1 = vcmask 0  }
 0x260   : > { %v13257_v8 = vpack.c.bf16 %v1988_v7, %v1987_v5  ;;  %v2170_v55 = vld [vmem:[#allocation5 + $0x290] sm:$0xff]  ;;  %v2171_v5 = vld [vmem:[#allocation5 + $0x298] sm:$0xff]  ;;  %v2172_v7 = vld [vmem:[#allocation5 + $0x2a0] sm:$0xff] }
 0x261   : > { %14805 = vst [vmem:[#allocation38_spill] sm:$0xff] %v13246_v4  ;;  %v13287_v61 = vpack.c.bf16 %v2170_v55, %v2169_v54  ;;  %v2351_v55 = vld [vmem:[#allocation5 + $0x2e0] sm:$0xff] }
 0x262   : > { %14806 = vst [vmem:[#allocation39_spill] sm:$0xff] %v13257_v8 }
 0x263   : > { %14812 = vst [vmem:[#allocation45_spill] sm:$0xff] %v13287_v61 }
 0x316   : > { %v13146_v15 = vpop.f32.mrb[2].mxu1 }
 0x317   : > { %v13148_v17 = vpop.f32.mrb[3].mxu1 }
 0x31a   : > { %v9546_v21 = vpop.f32.mrb[4].mxu1 }
 0x31b   : > { %v1245_v24 = vpop.f32.mrb[5].mxu1 }
 0x31c   : > { %9569 = vmatprep.mubr.msk.f32.mxu0 %vm1000_vm3, %v1245_v24  ;;  %v1804_v24 = vld [vmem:[#allocation5 + $0x1d0] sm:$0xff] }
 0x31d   : > { %9570 = vmatmul.mubr.msk.f32.vlgmr.msra.gmra.mrb[2].mxu0 %vm1000_vm3, %v9546_v21  ;;  %v1803_v21 = vld [vmem:[#allocation5 + $0x1c8] sm:$0xff] }
 0x31e   : > { %11063 = vmatpush3.bf16.msra.mxu0 %v13141_v3  ;;  %v9576_v30 = vpop.f32.mrb[6].mxu1  ;;  %v13218_v28 = vpack.c.bf16 %v1804_v24, %v1803_v21  ;;  %v13261_v21 = vpack.c.bf16 %v1990_v20, %v1989_v18  ;;  %v1992_v24 = vld [vmem:[#allocation5 + $0x258] sm:$0xff]  ;;  %v13291_v18 = vpack.c.bf16 %v2172_v7, %v2171_v5  ;;  %v2174_v20 = vld [vmem:[#allocation5 + $0x2b0] sm:$0xff]  ;;  %v2352_v5 = vld [vmem:[#allocation5 + $0x2e8] sm:$0xff] }
 0x31f   : > { %11065 = vmatprep.subr.bf16.mxu0 %v13150_v25  ;;  %v1427_v33 = vpop.f32.mrb[7].mxu1  ;;  %v13317_v7 = vpack.c.bf16 %v2352_v5, %v2351_v55 }
 0x320   : > { %9599 = vmatprep.mubr.msk.f32.mxu0 %vm1000_vm3, %v1427_v33  ;;  %v1806_v33 = vld [vmem:[#allocation5 + $0x1e0] sm:$0xff]  ;;  %14807 = vst [vmem:[#allocation40_spill] sm:$0xff] %v13261_v21  ;;  %14813 = vst [vmem:[#allocation46_spill] sm:$0xff] %v13291_v18 }
 0x321   : > { %14818 = vst [vmem:[#allocation51_spill] sm:$0xff] %v13317_v7 }
 0x322   : > { %11067 = vmatpush3.bf16.msra.mxu0 %v13150_v25  ;;  %v9606_v37 = vpop.f32.mrb[8].mxu1 }
 0x323   : > { %11069 = vmatprep.subr.bf16.mxu0 %v13156_v31  ;;  %v1609_v41 = vpop.f32.mrb[9].mxu1 }
 0x326   : > { %11071 = vmatpush3.bf16.msra.mxu0 %v13156_v31  ;;  %v13164_v45 = vpop.f32.mrb[10].mxu1 }
 0x327   : > { %11073 = vmatprep.subr.bf16.mxu0 %v13161_v40  ;;  %v1791_v47 = vpop.f32.mrb[11].mxu1 }
 0x32a   : > { %11075 = vmatpush3.bf16.msra.mxu0 %v13161_v40  ;;  %v13170_v48 = vpop.f32.mrb[12].mxu1 }
 0x32b   : > { %11077 = vmatprep.subr.bf16.mxu0 %v13167_v46  ;;  %v13173_v49 = vpop.f32.mrb[13].mxu1 }
 0x32e   : > { %11079 = vmatpush3.bf16.msra.mxu0 %v13167_v46  ;;  %v13178_v56 = vpop.f32.mrb[14].mxu1 }
 0x32f   : > { %9597 = vmatprep.subr.msk.mxu0 %vm1007_vm2, %v13175_v50  ;;  %v13184_v59 = vpop.f32.mrb[15].mxu1 }
 0x332   : > { %9598 = vmatpush3.msk.msra.mxu0 %vm1007_vm2, %v13175_v50  ;;  %v13190_v0 = vpop.f32.mrb[16].mxu1 }
 0x333   : > { %9600 = vmatmul.mubr.msk.f32.vlgmr.msra.gmra.mrb[2].mxu0 %vm1000_vm3, %v9576_v30  ;;  %11081 = vmatprep.subr.bf16.mxu0 %v13182_v58  ;;  %v13194_v1 = vpop.f32.mrb[17].mxu1  ;;  %v1805_v30 = vld [vmem:[#allocation5 + $0x1d8] sm:$0xff] }
 0x334   : > { %11083 = vmatpush3.bf16.msra.mxu0 %v13182_v58  ;;  %9629 = vmatprep.mubr.msk.f32.mxu0 %vm1000_vm3, %v1609_v41  ;;  %v13227_v34 = vpack.c.bf16 %v1806_v33, %v1805_v30  ;;  %v1808_v41 = vld [vmem:[#allocation5 + $0x1f0] sm:$0xff]  ;;  %v2165_v33 = vld [vmem:[#allocation5 + $0x268] sm:$0xff] }
 0x335   : > { %11085 = vmatprep.subr.bf16.mxu0 %v13186_v60  ;;  %v13231_v43 = vpack.c.bf16 %v1808_v41, %v1807_v36  ;;  %v2166_v36 = vld [vmem:[#allocation5 + $0x270] sm:$0xff]  ;;  %v2167_v41 = vld [vmem:[#allocation5 + $0x278] sm:$0xff] }
 0x336   : > { %14801 = vst [vmem:[#allocation34_spill] sm:$0xff] %v13227_v34 }
 0x337   : > { %14802 = vst [vmem:[#allocation35_spill] sm:$0xff] %v13231_v43 }
 0x338   : > { %11087 = vmatpush3.bf16.msra.mxu0 %v13186_v60 }
 0x339   : > { %11089 = vmatprep.subr.bf16.mxu0 %v13199_v2 }
 0x33c   : > { %11091 = vmatpush3.bf16.msra.mxu0 %v13199_v2 }
 0x33d   : > { %11093 = vmatprep.subr.bf16.mxu0 %v13203_v6 }
 0x340   : > { %11095 = vmatpush3.bf16.msra.mxu0 %v13203_v6 }
 0x341   : > { %11097 = vmatprep.subr.bf16.mxu0 %v13207_v12 }
 0x344   : > { %11099 = vmatpush3.bf16.msra.mxu0 %v13207_v12 }
 0x345   : > { %9627 = vmatprep.subr.msk.mxu0 %vm1007_vm2, %v13211_v14 }
 0x348   : > { %9628 = vmatpush3.msk.msra.mxu0 %vm1007_vm2, %v13211_v14 }
 0x349   : > { %9630 = vmatmul.mubr.msk.f32.vlgmr.msra.gmra.mrb[2].mxu0 %vm1000_vm3, %v9606_v37  ;;  %11101 = vmatprep.subr.bf16.mxu0 %v13216_v26  ;;  %v1810_v37 = vld [vmem:[#allocation5 + $0x200] sm:$0xff] }
 0x34a   : > { %11103 = vmatpush3.bf16.msra.mxu0 %v13216_v26  ;;  %9659 = vmatprep.mubr.msk.f32.mxu0 %vm1000_vm3, %v1791_v47  ;;  %v13235_v51 = vpack.c.bf16 %v1810_v37, %v1809_v44  ;;  %v13239_v47 = vld [vmem:[#allocation5 + $0x208] sm:$0x1]  ;;  %v2168_v44 = vld [vmem:[#allocation5 + $0x280] sm:$0xff]  ;;  %v13274_v37 = vpack.c.bf16 %v2166_v36, %v2165_v33  ;;  %v2349_v36 = vld [vmem:[#allocation5 + $0x2d0] sm:$0xff] }
 0x34b   : > { %11105 = vmatprep.subr.bf16.mxu0 %v13218_v28  ;;  %v13276_v53 = vpack.c.bf16 %v2168_v44, %v2167_v41  ;;  %v2348_v33 = vld [vmem:[#allocation5 + $0x2c8] sm:$0xff]  ;;  %v2350_v41 = vld [vmem:[#allocation5 + $0x2d8] sm:$0xff] }
 0x34c   : > { %14803 = vst [vmem:[#allocation36_spill] sm:$0xff] %v13235_v51  ;;  %14810 = vst [vmem:[#allocation43_spill] sm:$0xff] %v13274_v37  ;;  %v13306_v54 = vpack.c.bf16 %v2350_v41, %v2349_v36 }
 0x34d   : > { %14811 = vst [vmem:[#allocation44_spill] sm:$0xff] %v13276_v53 }
 0x34e   : > { %11107 = vmatpush3.bf16.msra.mxu0 %v13218_v28  ;;  %14817 = vst [vmem:[#allocation50_spill] sm:$0xff] %v13306_v54 }
 0x34f   : > { %11109 = vmatprep.subr.bf16.mxu0 %v13227_v34 }
 0x352   : > { %11111 = vmatpush3.bf16.msra.mxu0 %v13227_v34 }
 0x353   : > { %11113 = vmatprep.subr.bf16.mxu0 %v13231_v43 }
 0x356   : > { %11115 = vmatpush3.bf16.msra.mxu0 %v13231_v43 }
 0x357   : > { %11117 = vmatprep.subr.bf16.mxu0 %v13235_v51 }
 0x35a   : > { %11119 = vmatpush3.bf16.msra.mxu0 %v13235_v51 }
 0x35b   : > { %9657 = vmatprep.subr.msk.mxu0 %vm1007_vm2, %v13239_v47 }
 0x35e   : > { %9658 = vmatpush3.msk.msra.mxu0 %vm1007_vm2, %v13239_v47 }
 0x35f   : > { %9660 = vmatmul.mubr.msk.f32.vlgmr.msra.gmra.mrb[2].mxu0 %vm1000_vm3, %v13164_v45  ;;  %11121 = vmatprep.subr.bf16.mxu0 %v13244_v63  ;;  %v1991_v45 = vld [vmem:[#allocation5 + $0x250] sm:$0xff] }
 0x360   : > { %11123 = vmatpush3.bf16.msra.mxu0 %v13244_v63  ;;  %9689 = vmatprep.mubr.msk.f32.mxu0 %vm1000_vm3, %v13173_v49  ;;  %v13265_v30 = vpack.c.bf16 %v1992_v24, %v1991_v45  ;;  %v13269_v49 = vld [vmem:[#allocation5 + $0x260] sm:$0x1] }
 0x361   : > { %11125 = vmatprep.subr.bf16.mxu0 %v13246_v4  ;;  %14809 = vst [vmem:[#allocation42_spill] sm:$0xff] %v13269_v49  ;;  %v2347_v24 = vld [vmem:[#allocation5 + $0x2c0] sm:$0xff] }
 0x362   : > { %14808 = vst [vmem:[#allocation41_spill] sm:$0xff] %v13265_v30  ;;  %v13304_v44 = vpack.c.bf16 %v2348_v33, %v2347_v24  ;;  %v2356_v33 = vld [vmem:[#allocation5 + $0x308] sm:$0xff] }
 0x364   : > { %11127 = vmatpush3.bf16.msra.mxu0 %v13246_v4  ;;  %14816 = vst [vmem:[#allocation49_spill] sm:$0xff] %v13304_v44 }
 0x365   : > { %11129 = vmatprep.subr.bf16.mxu0 %v13257_v8 }
 0x368   : > { %11131 = vmatpush3.bf16.msra.mxu0 %v13257_v8 }
 0x369   : > { %11133 = vmatprep.subr.bf16.mxu0 %v13261_v21 }
 0x36c   : > { %11135 = vmatpush3.bf16.msra.mxu0 %v13261_v21 }
 0x36d   : > { %11137 = vmatprep.subr.bf16.mxu0 %v13265_v30 }
 0x370   : > { %11139 = vmatpush3.bf16.msra.mxu0 %v13265_v30 }
 0x371   : > { %9687 = vmatprep.subr.msk.mxu0 %vm1007_vm2, %v13269_v49 }
 0x374   : > { %9688 = vmatpush3.msk.msra.mxu0 %vm1007_vm2, %v13269_v49 }
 0x375   : > { %9690 = vmatmul.mubr.msk.f32.vlgmr.msra.gmra.mrb[2].mxu0 %vm1000_vm3, %v13170_v48  ;;  %11141 = vmatprep.subr.bf16.mxu0 %v13274_v37  ;;  %v2173_v48 = vld [vmem:[#allocation5 + $0x2a8] sm:$0xff] }
 0x376   : > { %11143 = vmatpush3.bf16.msra.mxu0 %v13274_v37  ;;  %9719 = vmatprep.mubr.msk.f32.mxu0 %vm1000_vm3, %v13184_v59  ;;  %v13295_v45 = vpack.c.bf16 %v2174_v20, %v2173_v48  ;;  %v13299_v59 = vld [vmem:[#allocation5 + $0x2b8] sm:$0x1]  ;;  %v2353_v48 = vld [vmem:[#allocation5 + $0x2f0] sm:$0xff] }
 0x377   : > { %11145 = vmatprep.subr.bf16.mxu0 %v13276_v53  ;;  %14815 = vst [vmem:[#allocation48_spill] sm:$0xff] %v13299_v59  ;;  %v2354_v20 = vld [vmem:[#allocation5 + $0x2f8] sm:$0xff] }
 0x378   : > { %14814 = vst [vmem:[#allocation47_spill] sm:$0xff] %v13295_v45  ;;  %v13321_v24 = vpack.c.bf16 %v2354_v20, %v2353_v48 }
 0x37a   : > { %11147 = vmatpush3.bf16.msra.mxu0 %v13276_v53  ;;  %14819 = vst [vmem:[#allocation52_spill] sm:$0xff] %v13321_v24 }
 0x37b   : > { %11149 = vmatprep.subr.bf16.mxu0 %v13287_v61 }
 0x37e   : > { %11151 = vmatpush3.bf16.msra.mxu0 %v13287_v61 }
 0x37f   : > { %11153 = vmatprep.subr.bf16.mxu0 %v13291_v18 }
 0x382   : > { %11155 = vmatpush3.bf16.msra.mxu0 %v13291_v18 }
 0x383   : > { %11157 = vmatprep.subr.bf16.mxu0 %v13295_v45 }
 0x386   : > { %11159 = vmatpush3.bf16.msra.mxu0 %v13295_v45 }
 0x387   : > { %9717 = vmatprep.subr.msk.mxu0 %vm1007_vm2, %v13299_v59 }
 0x38a   : > { %9718 = vmatpush3.msk.msra.mxu0 %vm1007_vm2, %v13299_v59 }
 0x38b   : > { %9720 = vmatmul.mubr.msk.f32.vlgmr.msra.gmra.mrb[2].mxu0 %vm1000_vm3, %v13178_v56  ;;  %11161 = vmatprep.subr.bf16.mxu0 %v13304_v44  ;;  %v2355_v56 = vld [vmem:[#allocation5 + $0x300] sm:$0xff] }
 0x38c   : > { %11163 = vmatpush3.bf16.msra.mxu0 %v13304_v44  ;;  %9749 = vmatprep.mubr.msk.f32.mxu0 %vm1000_vm3, %v13194_v1  ;;  %v13325_v36 = vpack.c.bf16 %v2356_v33, %v2355_v56  ;;  %v13329_v1 = vld [vmem:[#allocation5 + $0x310] sm:$0x1]  ;;  %v12539_v33 = vmov 0  }
 0x38d   : > { %11165 = vmatprep.subr.bf16.mxu0 %v13306_v54  ;;  %14821 = vst [vmem:[#allocation54_spill] sm:$0xff] %v13329_v1  ;;  %12114 = vset.pattern.permute.xlu1 %v12539_v33 }
 0x38e   : > { %14820 = vst [vmem:[#allocation53_spill] sm:$0xff] %v13325_v36  ;;  %12113 = vset.pattern.permute.xlu0 %v12539_v33 }
 0x390   : > { %11167 = vmatpush3.bf16.msra.mxu0 %v13306_v54 }
 0x391   : > { %11169 = vmatprep.subr.bf16.mxu0 %v13317_v7 }
 0x394   : > { %11171 = vmatpush3.bf16.msra.mxu0 %v13317_v7 }
 0x395   : > { %11173 = vmatprep.subr.bf16.mxu0 %v13321_v24 }
 0x398   : > { %11175 = vmatpush3.bf16.msra.mxu0 %v13321_v24 }
 0x399   : > { %11177 = vmatprep.subr.bf16.mxu0 %v13325_v36 }
 0x39c   : > { %11179 = vmatpush3.bf16.msra.mxu0 %v13325_v36 }
 0x39d   : > { %9747 = vmatprep.subr.msk.mxu0 %vm1007_vm2, %v13329_v1 }
 0x3a0   : > { %9748 = vmatpush3.msk.msra.mxu0 %vm1007_vm2, %v13329_v1  ;;  %v2490_v1 = vld [vmem:[#allocation9] sm:$0xff] }
 0x3a1   : > { %9750 = vmatmul.mubr.msk.f32.vlgmr.msra.gmra.mrb[2].mxu0 %vm1000_vm3, %v13190_v0 }
 0x474   : > { %v9751_v41 = vpop.f32.mrb[2].mxu0 }
 0x475   : > { %v11837_v55 = vadd.f32 %v9751_v41, %v13146_v15  ;;  %v2433_v5 = vpop.f32.mrb[3].mxu0 }
 0x476   : > { %v11838_v48 = vadd.f32 %v2433_v5, %v13148_v17 }
 0x477   : > { %v2448_v20 = vsel %vm2447_vm4, %v11837_v55, 0.0 }
 0x478   : > { %2449 = vadd.xlane.f32.xlu0 %v2448_v20  ;;  %v2444_v56 = vsel %vm1000_vm3, %v11838_v48, 0.0 }
 0x47c   : > { %2445 = vadd.xlane.f32.xlu0 %v2444_v56 }
 0x492   : > { %2494 = vperm.xlu0 %12113, %v2490_v1  }
 0x505   : > { %v2450_v36 = vpop.xlane.xlu0 %2449 }
 0x506   : > { %v2453_v0 = vmul.f32 0.012345679, %v2450_v36 }
 0x508   : > { %v2455_v15 = vsel %vm2454_vm5, %v2453_v0, 0.0  ;;  %v2505_v0 = vld [vmem:[#allocation10 + $0x8] sm:$0xf] }
 0x509   : > { %v2446_v24 = vpop.xlane.xlu0 %2445 }
 0x50a   : > { %v2452_v7 = vmul.f32 0.012345679, %v2446_v24  ;;  %v2491_v24 = vld [vmem:[#allocation9 + $0x8] sm:$0xf] }
 0x50c   : > { %v2456_v41 = vadd.f32 %v2455_v15, %v2452_v7  ;;  %v2504_v7 = vld [vmem:[#allocation10] sm:$0xff] }
 0x50e   : > { %v2457_v17 = vrot.slane %v2456_v41, 4 }
 0x510   : > { %v2458_v5 = vadd.f32 %v2457_v17, %v2456_v41 }
 0x512   : > { %v2459_v54 = vrot.slane %v2458_v5, 2 }
 0x514   : > { %v2460_v20 = vadd.f32 %v2459_v54, %v2458_v5  ;;  %v2570_v54 = vld [vmem:[#allocation12] sm:$0xff] }
 0x515   : > { %9756 = vmatprep.mubr.msk.f32.mxu1 %vm2572_vm6, %v2570_v54  ;;  %v2495_v54 = vpop.permute.xlu0 %2494 }
 0x516   : > { %v2461_v44 = vrot.slane %v2460_v20, 1 }
 0x518   : > { %v2462_v59 = vadd.f32 %v2461_v44, %v2460_v20 }
 0x51a   : > { %v2464_v56 = vmul.f32 0.083333336, %v2462_v59 }
 0x51c   : > { %v2466_v45 = vsub.f32 %v11837_v55, %v2464_v56  ;;  %v2465_v18 = vsub.f32 %v11838_v48, %v2464_v56 }
 0x51e   : > { %v2468_v33 = vmul.f32 %v2466_v45, %v2466_v45  ;;  %v2467_v61 = vmul.f32 %v2465_v18, %v2465_v18 }
 0x520   : > { %v2472_v1 = vsel %vm2447_vm4, %v2468_v33, 0.0  ;;  %v2469_v36 = vsel %vm1000_vm3, %v2467_v61, 0.0 }
 0x521   : > { %2473 = vadd.xlane.f32.xlu1 %v2472_v1 }
 0x525   : > { %2470 = vadd.xlane.f32.xlu1 %v2469_v36 }
 0x536   : > { %2499 = vperm.xlu1 %12114, %v2491_v24  }
 0x53a   : > { %2508 = vperm.xlu1 %12114, %v2504_v7  }
 0x53e   : > { %2513 = vperm.xlu1 %12114, %v2505_v0  }
 0x5ae   : > { %v2474_v59 = vpop.xlane.xlu1 %2473 }
 0x5af   : > { %v2476_v44 = vmul.f32 0.012345679, %v2474_v59 }
 0x5b1   : > { %v2477_v15 = vsel %vm2454_vm5, %v2476_v44, 0.0 }
 0x5b2   : > { %v2471_v55 = vpop.xlane.xlu1 %2470 }
 0x5b3   : > { %v2475_v48 = vmul.f32 0.012345679, %v2471_v55 }
 0x5b5   : > { %v2478_v41 = vadd.f32 %v2477_v15, %v2475_v48 }
 0x5b6   : > { %v2500_v24 = vpop.permute.xlu1 %2499 }
 0x5b7   : > { %v2479_v17 = vrot.slane %v2478_v41, 4 }
 0x5b9   : > { %v2480_v61 = vadd.f32 %v2479_v17, %v2478_v41 }
 0x5ba   : > { %v2509_v7 = vpop.permute.xlu1 %2508 }
 0x5bb   : > { %v2481_v5 = vrot.slane %v2480_v61, 2 }
 0x5bd   : > { %v2482_v20 = vadd.f32 %v2481_v5, %v2480_v61 }
 0x5be   : > { %v2514_v49 = vpop.permute.xlu1 %2513 }
 0x5bf   : > { %v2483_v56 = vrot.slane %v2482_v20, 1 }
 0x5c1   : > { %v2484_v33 = vadd.f32 %v2483_v56, %v2482_v20 }
 0x5c3   : > { %v2485_v1 = vmul.f32 0.083333336, %v2484_v33 }
 0x5c5   : > { %v2486_v36 = vadd.f32 1e-05, %v2485_v1 }
 0x5c7   : > { %12115 = vrsqrt.f32 %v2486_v36 }
 0x5d1   : > { %v12116_v0 = vpop.eup %12115 }
 0x5d2   : > { %v2489_v53 = vmul.f32 %v12116_v0, %v2466_v45  ;;  %v2488_v59 = vmul.f32 %v12116_v0, %v2465_v18 }
 0x5d4   : > { %v2503_v37 = vmul.f32 %v2500_v24, %v2489_v53  ;;  %v2502_v55 = vmul.f32 %v2495_v54, %v2488_v59 }
 0x5d6   : > { %v2517_v44 = vadd.f32 %v2514_v49, %v2503_v37  ;;  %v2516_v48 = vadd.f32 %v2509_v7, %v2502_v55 }
 0x5d8   : > { %v2521_v15 = vmul.f32 0.70710677, %v2517_v44  ;;  %v2520_v41 = vmul.f32 0.70710677, %v2516_v48 }
 0x5da   : > { %v2527_v17 = vand.u32 2147483647, %v2521_v15  ;;  %v2526_v61 = vand.u32 2147483647, %v2520_v41  ;;  %vm2523_vm7 = vcmp.ge.f32.partialorder %v2521_v15, 0.0  ;;  %vm2522_vm8 = vcmp.ge.f32.partialorder %v2520_v41, 0.0 }
 0x5db   : > { %v5620_v15 = vld [vmem:[#allocation16 + $0xc8] sm:$0xff] }
 0x5dc   : > { %v2529_v5 = vmul.f32 0.3275911, %v2527_v17  ;;  %v2528_v20 = vmul.f32 0.3275911, %v2526_v61  ;;  %v2553_v1 = vsub.f32 0.0, %v2527_v17  ;;  %v2552_v36 = vsub.f32 0.0, %v2526_v61 }
 0x5de   : > { %v2531_v56 = vadd.f32 1.0, %v2529_v5  ;;  %v2530_v33 = vadd.f32 1.0, %v2528_v20  ;;  %v2555_v45 = vmul.f32 %v2553_v1, %v2527_v17  ;;  %v2554_v24 = vmul.f32 %v2552_v36, %v2526_v61 }
 0x5e0   : > { %12117 = vrcp.f32 %v2531_v56  ;;  %v2558_v37 = vmul.f32 1.442695, %v2555_v45  ;;  %v2556_v59 = vmul.f32 1.442695, %v2554_v24 }
 0x5e1   : > { %12119 = vrcp.f32 %v2530_v33 }
 0x5e2   : > { %12121 = vpow2.f32 %v2558_v37  ;;  %v14733_v37 = vmov -1.0  }
 0x5e3   : > { %12123 = vpow2.f32 %v2556_v59  ;;  %v2524_v59 = vsel %vm2522_vm8, 1.0, %v14733_v37 }
 0x5ea   : > { %v12118_v30 = vpop.eup %12117 }
 0x5eb   : > { %v12120_v18 = vpop.eup %12119  ;;  %v2535_v53 = vmul.f32 1.0614054, %v12118_v30 }
 0x5ec   : > { %v2534_v0 = vmul.f32 1.0614054, %v12120_v18  ;;  %v12122_v36 = vpop.eup %12121 }
 0x5ed   : > { %v2537_v49 = vadd.f32 -1.4531521, %v2535_v53  ;;  %v12124_v45 = vpop.eup %12123 }
 0x5ee   : > { %v2536_v7 = vadd.f32 -1.4531521, %v2534_v0 }
 0x5ef   : > { %v2539_v54 = vmul.f32 %v12118_v30, %v2537_v49 }
 0x5f0   : > { %v2538_v55 = vmul.f32 %v12120_v18, %v2536_v7 }
 0x5f1   : > { %v2541_v21 = vadd.f32 1.4214138, %v2539_v54 }
 0x5f2   : > { %v2540_v5 = vadd.f32 1.4214138, %v2538_v55 }
 0x5f3   : > { %v2543_v20 = vmul.f32 %v12118_v30, %v2541_v21  ;;  %v2525_v21 = vsel %vm2523_vm7, 1.0, %v14733_v37 }
 0x5f4   : > { %v2542_v56 = vmul.f32 %v12120_v18, %v2540_v5  ;;  %v2518_v5 = vmul.f32 0.5, %v2516_v48  ;;  %v2658_v48 = vld [vmem:[#allocation12 + $0x10] sm:$0xff] }
 0x5f5   : > { %v2545_v33 = vadd.f32 -0.28449672, %v2543_v20 }
 0x5f6   : > { %v2544_v8 = vadd.f32 -0.28449672, %v2542_v56 }
 0x5f7   : > { %v2547_v4 = vmul.f32 %v12118_v30, %v2545_v33 }
 0x5f8   : > { %v2546_v17 = vmul.f32 %v12120_v18, %v2544_v8  ;;  %v2519_v8 = vmul.f32 0.5, %v2517_v44  ;;  %v2571_v44 = vld [vmem:[#allocation12 + $0x8] sm:$0xf] }
 0x5f9   : > { %v2549_v1 = vadd.f32 0.2548296, %v2547_v4 }
 0x5fa   : > { %v2548_v63 = vadd.f32 0.2548296, %v2546_v17 }
 0x5fb   : > { %v2551_v61 = vmul.f32 %v12118_v30, %v2549_v1 }
 0x5fc   : > { %v2550_v53 = vmul.f32 %v12120_v18, %v2548_v63  ;;  %v2659_v18 = vld [vmem:[#allocation12 + $0x18] sm:$0xf] }
 0x5fd   : > { %v2561_v0 = vmul.f32 %v12122_v36, %v2551_v61  ;;  %v2905_v61 = vld [vmem:[#allocation12 + $0x28] sm:$0xf] }
 0x5fe   : > { %v2560_v24 = vmul.f32 %v12124_v45, %v2550_v53  ;;  %v3071_v53 = vld [vmem:[#allocation12 + $0x30] sm:$0xff]  ;;  %v3072_v45 = vld [vmem:[#allocation12 + $0x38] sm:$0xf] }
 0x5ff   : > { %v2563_v49 = vsub.f32 1.0, %v2561_v0 }
 0x600   : > { %v2562_v7 = vsub.f32 1.0, %v2560_v24  ;;  %v3238_v24 = vld [vmem:[#allocation12 + $0x40] sm:$0xff] }
 0x601   : > { %v2565_v54 = vmul.f32 %v2563_v49, %v2525_v21  ;;  %v3239_v49 = vld [vmem:[#allocation12 + $0x48] sm:$0xf] }
 0x602   : > { %v2564_v55 = vmul.f32 %v2562_v7, %v2524_v59  ;;  %v3405_v7 = vld [vmem:[#allocation12 + $0x50] sm:$0xff] }
 0x603   : > { %v2567_v4 = vadd.f32 1.0, %v2565_v54  ;;  %v3406_v54 = vld [vmem:[#allocation12 + $0x58] sm:$0xf] }
 0x604   : > { %v2566_v30 = vadd.f32 1.0, %v2564_v55  ;;  %v3572_v55 = vld [vmem:[#allocation12 + $0x60] sm:$0xff] }
 0x605   : > { %v2569_v20 = vmul.f32 %v2567_v4, %v2519_v8  ;;  %v3573_v8 = vld [vmem:[#allocation12 + $0x68] sm:$0xf]  ;;  %v14824_v4 = vld [vmem:[#allocation37_spill] sm:$0xff] }
 0x606   : > { %v2568_v63 = vmul.f32 %v2566_v30, %v2518_v5  ;;  %v14826_v5 = vld [vmem:[#allocation39_spill] sm:$0xff]  ;;  %v14827_v30 = vld [vmem:[#allocation40_spill] sm:$0xff] }
 0x608   : > { %v13354_v41 = vpack.c.bf16 %v2569_v20, %v2568_v63  ;;  %v14828_v20 = vld [vmem:[#allocation41_spill] sm:$0xff]  ;;  %v14829_v63 = vld [vmem:[#allocation42_spill] sm:$0xff] }
 0x60a   : > { %11182 = vmatprep.subr.msk.bf16.mxu1 %vm13350_vm10, %v13354_v41  ;;  %11390 = vmatprep.subr.msk.bf16.mxu0 %vm13350_vm10, %v13354_v41 }
 0x60b   : > { %11185 = vmatpush3.bf16.msk.msra.mxu1 %vm13350_vm10, %v13354_v41  ;;  %11393 = vmatpush3.bf16.msk.msra.mxu0 %vm13350_vm10, %v13354_v41 }
 0x60c   : > { %11188 = vmatprep.subr.msk.bf16.mxu1 %vm13350_vm10, %v13354_v41 }
 0x60e   : > { %9757 = vmatmul.mubr.msk.f32.vlgmr.msra.gmra.mrb[18].mxu1 %vm2572_vm6, %v2571_v44  ;;  %v3906_v44 = vld [vmem:[#allocation12 + $0x80] sm:$0xff] }
 0x60f   : > { %11191 = vmatpush3.bf16.msk.msra.mxu1 %vm13350_vm10, %v13354_v41  ;;  %9763 = vmatprep.mubr.msk.f32.mxu1 %vm2572_vm6, %v2658_v48  ;;  %v3907_v48 = vld [vmem:[#allocation12 + $0x88] sm:$0xf] }
 0x610   : > { %11193 = vmatprep.subr.bf16.mxu1 %v13014_v9  ;;  %10012 = vmatprep.mubr.msk.f32.mxu0 %vm2572_vm6, %v3906_v44 }
 0x611   : > { %10013 = vmatmul.mubr.msk.f32.vlgmr.msra.gmra.mrb[4].mxu0 %vm2572_vm6, %v3907_v48 }
 0x612   : > { %9764 = vmatmul.mubr.msk.f32.vlgmr.msra.gmra.mrb[20].mxu1 %vm2572_vm6, %v2659_v18 }
 0x613   : > { %11195 = vmatpush3.bf16.msra.mxu1 %v13014_v9 }
 0x614   : > { %11197 = vmatprep.subr.bf16.mxu1 %v13019_v13 }
 0x617   : > { %11199 = vmatpush3.bf16.msra.mxu1 %v13019_v13 }
 0x618   : > { %11201 = vmatprep.subr.bf16.mxu1 %v13026_v16 }
 0x61b   : > { %11203 = vmatpush3.bf16.msra.mxu1 %v13026_v16 }
 0x61c   : > { %11205 = vmatprep.subr.bf16.mxu1 %v13030_v19 }
 0x61f   : > { %11207 = vmatpush3.bf16.msra.mxu1 %v13030_v19 }
 0x620   : > { %11209 = vmatprep.subr.bf16.mxu1 %v13034_v22 }
 0x623   : > { %11211 = vmatpush3.bf16.msra.mxu1 %v13034_v22 }
 0x624   : > { %9786 = vmatprep.subr.msk.mxu1 %vm1007_vm2, %v13039_v23 }
 0x627   : > { %9787 = vmatpush3.msk.msra.mxu1 %vm1007_vm2, %v13039_v23  ;;  %v2904_v23 = vld [vmem:[#allocation12 + $0x20] sm:$0xff] }
 0x628   : > { %11213 = vmatprep.subr.bf16.mxu1 %v13047_v27 }
 0x6e1   : > { %v9758_v56 = vpop.f32.mrb[18].mxu1 }
 0x6e2   : > { %v2648_v33 = vpop.f32.mrb[19].mxu1 }
 0x6e5   : > { %v9765_v17 = vpop.f32.mrb[20].mxu1 }
 0x6e6   : > { %v2732_v1 = vpop.f32.mrb[21].mxu1 }
 0x6e7   : > { %9788 = vmatprep.mubr.msk.f32.mxu1 %vm1000_vm3, %v2732_v1  ;;  %v14830_v1 = vld [vmem:[#allocation43_spill] sm:$0xff] }
 0x6e8   : > { %9789 = vmatmul.mubr.msk.f32.vlgmr.msra.gmra.mrb[22].mxu1 %vm1000_vm3, %v9765_v17  ;;  %v3740_v17 = vld [vmem:[#allocation12 + $0x78] sm:$0xf] }
 0x6e9   : > { %11215 = vmatpush3.bf16.msra.mxu1 %v13047_v27  ;;  %9813 = vmatprep.mubr.msk.f32.mxu1 %vm1000_vm3, %v2648_v33  ;;  %v3739_v33 = vld [vmem:[#allocation12 + $0x70] sm:$0xff] }
 0x6ea   : > { %11217 = vmatprep.subr.bf16.mxu1 %v13049_v29 }
 0x6ed   : > { %11219 = vmatpush3.bf16.msra.mxu1 %v13049_v29 }
 0x6ee   : > { %11221 = vmatprep.subr.bf16.mxu1 %v13054_v32 }
 0x6f1   : > { %11223 = vmatpush3.bf16.msra.mxu1 %v13054_v32 }
 0x6f2   : > { %11225 = vmatprep.subr.bf16.mxu1 %v13058_v35 }
 0x6f5   : > { %11227 = vmatpush3.bf16.msra.mxu1 %v13058_v35 }
 0x6f6   : > { %11229 = vmatprep.subr.bf16.mxu1 %v13062_v38 }
 0x6f9   : > { %11231 = vmatpush3.bf16.msra.mxu1 %v13062_v38 }
 0x6fa   : > { %9811 = vmatprep.subr.msk.mxu1 %vm1007_vm2, %v13066_v39 }
 0x6fd   : > { %9812 = vmatpush3.msk.msra.mxu1 %vm1007_vm2, %v13066_v39 }
 0x6fe   : > { %9814 = vmatmul.mubr.msk.f32.vlgmr.msra.gmra.mrb[22].mxu1 %vm1000_vm3, %v9758_v56  ;;  %11234 = vmatprep.subr.msk.bf16.mxu1 %vm13350_vm10, %v13354_v41 }
 0x6ff   : > { %11237 = vmatpush3.bf16.msk.msra.mxu1 %vm13350_vm10, %v13354_v41  ;;  %9820 = vmatprep.mubr.msk.f32.mxu1 %vm2572_vm6, %v2904_v23  ;;  %v14831_v23 = vld [vmem:[#allocation44_spill] sm:$0xff] }
 0x700   : > { %11239 = vmatprep.subr.bf16.mxu1 %v13071_v42 }
 0x702   : > { %9821 = vmatmul.mubr.msk.f32.vlgmr.msra.gmra.mrb[24].mxu1 %vm2572_vm6, %v2905_v61  ;;  %v14832_v61 = vld [vmem:[#allocation45_spill] sm:$0xff] }
 0x703   : > { %11241 = vmatpush3.bf16.msra.mxu1 %v13071_v42 }
 0x704   : > { %11243 = vmatprep.subr.bf16.mxu1 %v13084_v52 }
 0x707   : > { %11245 = vmatpush3.bf16.msra.mxu1 %v13084_v52 }
 0x708   : > { %11247 = vmatprep.subr.bf16.mxu1 %v13095_v57 }
 0x70b   : > { %11249 = vmatpush3.bf16.msra.mxu1 %v13095_v57 }
 0x70c   : > { %11251 = vmatprep.subr.bf16.mxu1 %v13105_v62 }
 0x70f   : > { %11253 = vmatpush3.bf16.msra.mxu1 %v13105_v62 }
 0x710   : > { %11255 = vmatprep.subr.bf16.mxu1 %v13133_v10 }
 0x713   : > { %11257 = vmatpush3.bf16.msra.mxu1 %v13133_v10 }
 0x714   : > { %9843 = vmatprep.subr.msk.mxu1 %vm1007_vm2, %v13137_v11 }
 0x717   : > { %9844 = vmatpush3.msk.msra.mxu1 %vm1007_vm2, %v13137_v11 }
 0x718   : > { %11260 = vmatprep.subr.msk.bf16.mxu1 %vm13350_vm10, %v13354_v41 }
 0x7d5   : > { %v9822_v39 = vpop.f32.mrb[24].mxu1 }
 0x7d6   : > { %v2978_v36 = vpop.f32.mrb[25].mxu1 }
 0x7d7   : > { %9845 = vmatprep.mubr.msk.f32.mxu1 %vm1000_vm3, %v2978_v36  ;;  %v14835_v36 = vld [vmem:[#allocation48_spill] sm:$0xff] }
 0x7d8   : > { %9846 = vmatmul.mubr.msk.f32.vlgmr.msra.gmra.mrb[22].mxu1 %vm1000_vm3, %v9822_v39  ;;  %v14833_v39 = vld [vmem:[#allocation46_spill] sm:$0xff] }
 0x7d9   : > { %11263 = vmatpush3.bf16.msk.msra.mxu1 %vm13350_vm10, %v13354_v41  ;;  %9852 = vmatprep.mubr.msk.f32.mxu1 %vm2572_vm6, %v3071_v53  ;;  %v14836_v53 = vld [vmem:[#allocation49_spill] sm:$0xff] }
 0x7da   : > { %11265 = vmatprep.subr.bf16.mxu1 %v13141_v3 }
 0x7dc   : > { %9853 = vmatmul.mubr.msk.f32.vlgmr.msra.gmra.mrb[26].mxu1 %vm2572_vm6, %v3072_v45  ;;  %v10014_v45 = vpop.f32.mrb[4].mxu0 }
 0x7dd   : > { %11267 = vmatpush3.bf16.msra.mxu1 %v13141_v3 }
 0x7de   : > { %11269 = vmatprep.subr.bf16.mxu1 %v13150_v25 }
 0x7e1   : > { %11271 = vmatpush3.bf16.msra.mxu1 %v13150_v25 }
 0x7e2   : > { %11273 = vmatprep.subr.bf16.mxu1 %v13156_v31 }
 0x7e5   : > { %11275 = vmatpush3.bf16.msra.mxu1 %v13156_v31 }
 0x7e6   : > { %11277 = vmatprep.subr.bf16.mxu1 %v13161_v40 }
 0x7e9   : > { %11279 = vmatpush3.bf16.msra.mxu1 %v13161_v40 }
 0x7ea   : > { %11281 = vmatprep.subr.bf16.mxu1 %v13167_v46 }
 0x7ed   : > { %11283 = vmatpush3.bf16.msra.mxu1 %v13167_v46 }
 0x7ee   : > { %9875 = vmatprep.subr.msk.mxu1 %vm1007_vm2, %v13175_v50 }
 0x7f1   : > { %9876 = vmatpush3.msk.msra.mxu1 %vm1007_vm2, %v13175_v50 }
 0x7f2   : > { %11286 = vmatprep.subr.msk.bf16.mxu1 %vm13350_vm10, %v13354_v41 }
 0x8af   : > { %v9854_v11 = vpop.f32.mrb[26].mxu1 }
 0x8b0   : > { %v3145_v0 = vpop.f32.mrb[27].mxu1 }
 0x8b1   : > { %9877 = vmatprep.mubr.msk.f32.mxu1 %vm1000_vm3, %v3145_v0 }
 0x8b2   : > { %9878 = vmatmul.mubr.msk.f32.vlgmr.msra.gmra.mrb[22].mxu1 %vm1000_vm3, %v9854_v11  ;;  %v3980_v11 = vpop.f32.mrb[5].mxu0 }
 0x8b3   : > { %11289 = vmatpush3.bf16.msk.msra.mxu1 %vm13350_vm10, %v13354_v41  ;;  %9884 = vmatprep.mubr.msk.f32.mxu1 %vm2572_vm6, %v3238_v24 }
 0x8b4   : > { %11291 = vmatprep.subr.bf16.mxu1 %v13182_v58 }
 0x8b6   : > { %9885 = vmatmul.mubr.msk.f32.vlgmr.msra.gmra.mrb[28].mxu1 %vm2572_vm6, %v3239_v49  ;;  %v14837_v49 = vld [vmem:[#allocation50_spill] sm:$0xff] }
 0x8b7   : > { %11293 = vmatpush3.bf16.msra.mxu1 %v13182_v58 }
 0x8b8   : > { %11295 = vmatprep.subr.bf16.mxu1 %v13186_v60 }
 0x8bb   : > { %11297 = vmatpush3.bf16.msra.mxu1 %v13186_v60 }
 0x8bc   : > { %11299 = vmatprep.subr.bf16.mxu1 %v13199_v2 }
 0x8bf   : > { %11301 = vmatpush3.bf16.msra.mxu1 %v13199_v2 }
 0x8c0   : > { %11303 = vmatprep.subr.bf16.mxu1 %v13203_v6 }
 0x8c3   : > { %11305 = vmatpush3.bf16.msra.mxu1 %v13203_v6 }
 0x8c4   : > { %11307 = vmatprep.subr.bf16.mxu1 %v13207_v12 }
 0x8c7   : > { %11309 = vmatpush3.bf16.msra.mxu1 %v13207_v12 }
 0x8c8   : > { %9907 = vmatprep.subr.msk.mxu1 %vm1007_vm2, %v13211_v14 }
 0x8cb   : > { %9908 = vmatpush3.msk.msra.mxu1 %vm1007_vm2, %v13211_v14 }
 0x8cc   : > { %11312 = vmatprep.subr.msk.bf16.mxu1 %vm13350_vm10, %v13354_v41 }
 0x989   : > { %v9886_v50 = vpop.f32.mrb[28].mxu1 }
 0x98a   : > { %v3312_v21 = vpop.f32.mrb[29].mxu1 }
 0x98b   : > { %9909 = vmatprep.mubr.msk.f32.mxu1 %vm1000_vm3, %v3312_v21  ;;  %v14839_v21 = vld [vmem:[#allocation52_spill] sm:$0xff] }
 0x98c   : > { %9910 = vmatmul.mubr.msk.f32.vlgmr.msra.gmra.mrb[22].mxu1 %vm1000_vm3, %v9886_v50  ;;  %v14838_v50 = vld [vmem:[#allocation51_spill] sm:$0xff] }
 0x98d   : > { %11315 = vmatpush3.bf16.msk.msra.mxu1 %vm13350_vm10, %v13354_v41  ;;  %9916 = vmatprep.mubr.msk.f32.mxu1 %vm2572_vm6, %v3405_v7  ;;  %v14840_v7 = vld [vmem:[#allocation53_spill] sm:$0xff] }
 0x98e   : > { %11317 = vmatprep.subr.bf16.mxu1 %v13216_v26 }
 0x990   : > { %9917 = vmatmul.mubr.msk.f32.vlgmr.msra.gmra.mrb[30].mxu1 %vm2572_vm6, %v3406_v54  ;;  %v14841_v54 = vld [vmem:[#allocation54_spill] sm:$0xff] }
 0x991   : > { %11319 = vmatpush3.bf16.msra.mxu1 %v13216_v26 }
 0x992   : > { %11321 = vmatprep.subr.bf16.mxu1 %v13218_v28 }
 0x995   : > { %11323 = vmatpush3.bf16.msra.mxu1 %v13218_v28 }
 0x996   : > { %11325 = vmatprep.subr.bf16.mxu1 %v13227_v34 }
 0x999   : > { %11327 = vmatpush3.bf16.msra.mxu1 %v13227_v34 }
 0x99a   : > { %11329 = vmatprep.subr.bf16.mxu1 %v13231_v43 }
 0x99d   : > { %11331 = vmatpush3.bf16.msra.mxu1 %v13231_v43 }
 0x99e   : > { %11333 = vmatprep.subr.bf16.mxu1 %v13235_v51 }
 0x9a1   : > { %11335 = vmatpush3.bf16.msra.mxu1 %v13235_v51 }
 0x9a2   : > { %9939 = vmatprep.subr.msk.mxu1 %vm1007_vm2, %v13239_v47 }
 0x9a5   : > { %9940 = vmatpush3.msk.msra.mxu1 %vm1007_vm2, %v13239_v47  ;;  %v14825_v47 = vld [vmem:[#allocation38_spill] sm:$0xff] }
 0x9a6   : > { %11338 = vmatprep.subr.msk.bf16.mxu1 %vm13350_vm10, %v13354_v41 }
 0xa63   : > { %v9918_v14 = vpop.f32.mrb[30].mxu1 }
 0xa64   : > { %v3479_v59 = vpop.f32.mrb[31].mxu1 }
 0xa65   : > { %9941 = vmatprep.mubr.msk.f32.mxu1 %vm1000_vm3, %v3479_v59 }
 0xa66   : > { %9942 = vmatmul.mubr.msk.f32.vlgmr.msra.gmra.mrb[22].mxu1 %vm1000_vm3, %v9918_v14 }
 0xa67   : > { %11341 = vmatpush3.bf16.msk.msra.mxu1 %vm13350_vm10, %v13354_v41  ;;  %9948 = vmatprep.mubr.msk.f32.mxu1 %vm2572_vm6, %v3572_v55 }
 0xa68   : > { %11343 = vmatprep.subr.bf16.mxu1 %v14824_v4 }
 0xa6a   : > { %9949 = vmatmul.mubr.msk.f32.vlgmr.msra.gmra.mrb[32].mxu1 %vm2572_vm6, %v3573_v8 }
 0xa6b   : > { %11345 = vmatpush3.bf16.msra.mxu1 %v14824_v4 }
 0xa6c   : > { %11347 = vmatprep.subr.bf16.mxu1 %v14825_v47 }
 0xa6f   : > { %11349 = vmatpush3.bf16.msra.mxu1 %v14825_v47 }
 0xa70   : > { %11351 = vmatprep.subr.bf16.mxu1 %v14826_v5 }
 0xa73   : > { %11353 = vmatpush3.bf16.msra.mxu1 %v14826_v5 }
 0xa74   : > { %11355 = vmatprep.subr.bf16.mxu1 %v14827_v30 }
 0xa77   : > { %11357 = vmatpush3.bf16.msra.mxu1 %v14827_v30 }
 0xa78   : > { %11359 = vmatprep.subr.bf16.mxu1 %v14828_v20 }
 0xa7b   : > { %11361 = vmatpush3.bf16.msra.mxu1 %v14828_v20 }
 0xa7c   : > { %9971 = vmatprep.subr.msk.mxu1 %vm1007_vm2, %v14829_v63 }
 0xa7f   : > { %9972 = vmatpush3.msk.msra.mxu1 %vm1007_vm2, %v14829_v63  ;;  %v4115_v63 = vld [vmem:[#allocation13 + $0x8] sm:$0xf] }
 0xa80   : > { %11364 = vmatprep.subr.msk.bf16.mxu1 %vm13350_vm10, %v13354_v41 }
 0xb3d   : > { %v9950_v18 = vpop.f32.mrb[32].mxu1 }
 0xb3e   : > { %v3646_v56 = vpop.f32.mrb[33].mxu1 }
 0xb3f   : > { %9973 = vmatprep.mubr.msk.f32.mxu1 %vm1000_vm3, %v3646_v56 }
 0xb40   : > { %9974 = vmatmul.mubr.msk.f32.vlgmr.msra.gmra.mrb[22].mxu1 %vm1000_vm3, %v9950_v18 }
 0xb41   : > { %11367 = vmatpush3.bf16.msk.msra.mxu1 %vm13350_vm10, %v13354_v41  ;;  %9980 = vmatprep.mubr.msk.f32.mxu1 %vm2572_vm6, %v3739_v33  ;;  %v14834_v41 = vld [vmem:[#allocation47_spill] sm:$0xff] }
 0xb42   : > { %11369 = vmatprep.subr.bf16.mxu1 %v14830_v1 }
 0xb44   : > { %9981 = vmatmul.mubr.msk.f32.vlgmr.msra.gmra.mrb[34].mxu1 %vm2572_vm6, %v3740_v17 }
 0xb45   : > { %11371 = vmatpush3.bf16.msra.mxu1 %v14830_v1 }
 0xb46   : > { %11373 = vmatprep.subr.bf16.mxu1 %v14831_v23 }
 0xb49   : > { %11375 = vmatpush3.bf16.msra.mxu1 %v14831_v23 }
 0xb4a   : > { %11377 = vmatprep.subr.bf16.mxu1 %v14832_v61 }
 0xb4d   : > { %11379 = vmatpush3.bf16.msra.mxu1 %v14832_v61 }
 0xb4e   : > { %11381 = vmatprep.subr.bf16.mxu1 %v14833_v39 }
 0xb51   : > { %11383 = vmatpush3.bf16.msra.mxu1 %v14833_v39 }
 0xb52   : > { %11385 = vmatprep.subr.bf16.mxu1 %v14834_v41 }
 0xb55   : > { %11387 = vmatpush3.bf16.msra.mxu1 %v14834_v41 }
 0xb56   : > { %10003 = vmatprep.subr.msk.mxu1 %vm1007_vm2, %v14835_v36 }
 0xb59   : > { %10004 = vmatpush3.msk.msra.mxu1 %vm1007_vm2, %v14835_v36 }
 0xb5a   : > { %11395 = vmatprep.subr.bf16.mxu1 %v14836_v53 }
 0xc17   : > { %v9982_v0 = vpop.f32.mrb[34].mxu1 }
 0xc18   : > { %v3813_v24 = vpop.f32.mrb[35].mxu1 }
 0xc19   : > { %10005 = vmatprep.mubr.msk.f32.mxu1 %vm1000_vm3, %v3813_v24 }
 0xc1a   : > { %10006 = vmatmul.mubr.msk.f32.vlgmr.msra.gmra.mrb[22].mxu1 %vm1000_vm3, %v9982_v0 }
 0xc1b   : > { %11397 = vmatpush3.bf16.msra.mxu1 %v14836_v53  ;;  %10037 = vmatprep.mubr.msk.f32.mxu1 %vm1000_vm3, %v3980_v11 }
 0xc1c   : > { %11399 = vmatprep.subr.bf16.mxu1 %v14837_v49 }
 0xc1f   : > { %11401 = vmatpush3.bf16.msra.mxu1 %v14837_v49 }
 0xc20   : > { %11403 = vmatprep.subr.bf16.mxu1 %v14838_v50 }
 0xc23   : > { %11405 = vmatpush3.bf16.msra.mxu1 %v14838_v50 }
 0xc24   : > { %11407 = vmatprep.subr.bf16.mxu1 %v14839_v21 }
 0xc27   : > { %11409 = vmatpush3.bf16.msra.mxu1 %v14839_v21 }
 0xc28   : > { %11411 = vmatprep.subr.bf16.mxu1 %v14840_v7 }
 0xc2b   : > { %11413 = vmatpush3.bf16.msra.mxu1 %v14840_v7 }
 0xc2c   : > { %10035 = vmatprep.subr.msk.mxu1 %vm1007_vm2, %v14841_v54 }
 0xc2f   : > { %10036 = vmatpush3.msk.msra.mxu1 %vm1007_vm2, %v14841_v54 }
 0xc30   : > { %10038 = vmatmul.mubr.msk.f32.vlgmr.msra.gmra.mrb[22].mxu1 %vm1000_vm3, %v10014_v45 }
 0xd03   : > { %v10039_v14 = vpop.f32.mrb[22].mxu1 }
 0xd04   : > { %v4061_v59 = vpop.f32.mrb[23].mxu1  ;;  %v4075_v55 = vsel %vm2447_vm4, %v10039_v14, 0.0 }
 0xd05   : > { %4076 = vadd.xlane.f32.xlu1 %v4075_v55  ;;  %v4072_v8 = vsel %vm1000_vm3, %v4061_v59, 0.0 }
 0xd06   : > { %4073 = vadd.xlane.f32.xlu0 %v4072_v8 }
 0xd1c   : > { %4123 = vperm.xlu0 %12113, %v4115_v63  }
 0xd92   : > { %v4077_v44 = vpop.xlane.xlu1 %4076 }
 0xd93   : > { %v4079_v48 = vmul.f32 0.012345679, %v4077_v44  ;;  %v4074_v18 = vpop.xlane.xlu0 %4073 }
 0xd94   : > { %v4078_v56 = vmul.f32 0.012345679, %v4074_v18  ;;  %v4114_v18 = vld [vmem:[#allocation13] sm:$0xff] }
 0xd95   : > { %v4080_v33 = vsel %vm2454_vm5, %v4079_v48, 0.0  ;;  %v4128_v48 = vld [vmem:[#allocation15] sm:$0xff] }
 0xd96   : > { %v4081_v17 = vadd.f32 %v4080_v33, %v4078_v56  ;;  %v4129_v56 = vld [vmem:[#allocation15 + $0x8] sm:$0xf]  ;;  %v14737_v33 = vmov 0.0|0.0  }
 0xd97   : > { %11414 = vmatprep.subr.bf16.mxu0 %v14737_v33  ;;  %11452 = vmatprep.subr.bf16.mxu1 %v14737_v33 }
 0xd98   : > { %v4082_v36 = vrot.slane %v4081_v17, 4 }
 0xd9a   : > { %v4083_v11 = vadd.f32 %v4082_v36, %v4081_v17 }
 0xd9c   : > { %v4084_v45 = vrot.slane %v4083_v11, 2 }
 0xd9e   : > { %v4085_v0 = vadd.f32 %v4084_v45, %v4083_v11 }
 0xda0   : > { %v4086_v24 = vrot.slane %v4085_v0, 1 }
 0xda2   : > { %v4087_v54 = vadd.f32 %v4086_v24, %v4085_v0 }
 0xda4   : > { %v4088_v37 = vmul.f32 0.083333336, %v4087_v54 }
 0xda6   : > { %v4090_v55 = vsub.f32 %v10039_v14, %v4088_v37  ;;  %v4089_v7 = vsub.f32 %v4061_v59, %v4088_v37  ;;  %v14739_v37 = vmov 0.0  }
 0xda7   : > { %10044 = vmatprep.mubr.msk.f32.mxu0 %vm12543_vm11, %v14739_v37  ;;  %10132 = vmatprep.mubr.msk.f32.mxu1 %vm12543_vm11, %v14739_v37 }
 0xda8   : > { %v4092_v21 = vmul.f32 %v4090_v55, %v4090_v55  ;;  %v4091_v63 = vmul.f32 %v4089_v7, %v4089_v7 }
 0xdaa   : > { %v4096_v8 = vsel %vm2447_vm4, %v4092_v21, 0.0  ;;  %v4093_v44 = vsel %vm1000_vm3, %v4091_v63, 0.0 }
 0xdab   : > { %4097 = vadd.xlane.f32.xlu1 %v4096_v8 }
 0xdaf   : > { %4094 = vadd.xlane.f32.xlu1 %v4093_v44 }
 0xdc0   : > { %4118 = vperm.xlu1 %12114, %v4114_v18  }
 0xdc4   : > { %4132 = vperm.xlu1 %12114, %v4128_v48  }
 0xdc8   : > { %4137 = vperm.xlu1 %12114, %v4129_v56  }
 0xe38   : > { %v4098_v21 = vpop.xlane.xlu1 %4097 }
 0xe39   : > { %v4100_v14 = vmul.f32 0.012345679, %v4098_v21  ;;  %v4124_v21 = vpop.permute.xlu0 %4123 }
 0xe3b   : > { %v4101_v36 = vsel %vm2454_vm5, %v4100_v14, 0.0 }
 0xe3c   : > { %v4095_v59 = vpop.xlane.xlu1 %4094 }
 0xe3d   : > { %v4099_v17 = vmul.f32 0.012345679, %v4095_v59 }
 0xe3f   : > { %v4102_v11 = vadd.f32 %v4101_v36, %v4099_v17 }
 0xe40   : > { %v4119_v48 = vpop.permute.xlu1 %4118 }
 0xe41   : > { %v4103_v45 = vrot.slane %v4102_v11, 4 }
 0xe43   : > { %v4104_v0 = vadd.f32 %v4103_v45, %v4102_v11  ;;  %v4142_v11 = vld [vmem:[#allocation16] sm:$0xff]  ;;  %v4509_v45 = vld [vmem:[#allocation16 + $0x30] sm:$0xff] }
 0xe44   : > { %v4133_v56 = vpop.permute.xlu1 %4132 }
 0xe45   : > { %v4105_v24 = vrot.slane %v4104_v0, 2 }
 0xe47   : > { %v4106_v54 = vadd.f32 %v4105_v24, %v4104_v0  ;;  %v4694_v0 = vld [vmem:[#allocation16 + $0x48] sm:$0xff]  ;;  %v4695_v24 = vld [vmem:[#allocation16 + $0x50] sm:$0xff] }
 0xe48   : > { %v4138_v53 = vpop.permute.xlu1 %4137 }
 0xe49   : > { %v4107_v8 = vrot.slane %v4106_v54, 1 }
 0xe4b   : > { %v4108_v63 = vadd.f32 %v4107_v8, %v4106_v54  ;;  %v4239_v54 = vld [vmem:[#allocation16 + $0x20] sm:$0xff]  ;;  %v4696_v8 = vld [vmem:[#allocation16 + $0x58] sm:$0xff] }
 0xe4d   : > { %v4109_v44 = vmul.f32 0.083333336, %v4108_v63  ;;  %v4240_v63 = vld [vmem:[#allocation16 + $0x28] sm:$0xff] }
 0xe4f   : > { %v4110_v18 = vadd.f32 1e-05, %v4109_v44  ;;  %v4879_v44 = vld [vmem:[#allocation16 + $0x60] sm:$0xff] }
 0xe51   : > { %12125 = vrsqrt.f32 %v4110_v18  ;;  %v4880_v18 = vld [vmem:[#allocation16 + $0x68] sm:$0xff] }
 0xe5b   : > { %v12126_v33 = vpop.eup %12125 }
 0xe5c   : > { %v4112_v37 = vmul.f32 %v12126_v33, %v4089_v7  ;;  %v4113_v50 = vmul.f32 %v12126_v33, %v4090_v55  ;;  %v14842_v7 = vmov 0.0|0.0   ;;  %v4144_v55 = vld [vmem:[#allocation16 + $0x10] sm:$0xff]  ;;  %v4511_v33 = vld [vmem:[#allocation16 + $0x40] sm:$0xff] }
 0xe5e   : > { %v4126_v49 = vmul.f32 %v4119_v48, %v4112_v37  ;;  %v4127_v59 = vmul.f32 %v4124_v21, %v4113_v50  ;;  %v14843_v50 = vmov 0.0   ;;  %v4238_v37 = vld [vmem:[#allocation16 + $0x18] sm:$0xff]  ;;  %v4881_v48 = vld [vmem:[#allocation16 + $0x70] sm:$0xff] }
 0xe5f   : > { %v13664_v21 = vld [vmem:[#allocation5 + $0xa8] sm:$0x1] }
 0xe60   : > { %v4140_v14 = vadd.f32 %v4133_v56, %v4126_v49  ;;  %v4141_v17 = vadd.f32 %v4138_v53, %v4127_v59  ;;  %v4143_v53 = vld [vmem:[#allocation16 + $0x8] sm:$0xff]  ;;  %v4510_v49 = vld [vmem:[#allocation16 + $0x38] sm:$0xff]  ;;  %v5065_v59 = vld [vmem:[#allocation16 + $0x80] sm:$0xff] }
 0xe61   : > { %v5064_v56 = vld [vmem:[#allocation16 + $0x78] sm:$0xff] }
 0xe62   : > { %v13583_v36 = vpack.c.bf16 %v4141_v17, %v4140_v14  ;;  %v5066_v14 = vld [vmem:[#allocation16 + $0x88] sm:$0xff]  ;;  %v5249_v17 = vld [vmem:[#allocation16 + $0x90] sm:$0xff] }
 0xe64   : > { %11417 = vmatpush3.bf16.msk.msra.mxu0 %vm13350_vm10, %v13583_v36  ;;  %11455 = vmatpush3.bf16.msk.msra.mxu1 %vm13350_vm10, %v13583_v36 }
 0xe65   : > { %11418 = vmatprep.subr.bf16.mxu0 %v14842_v7  ;;  %11471 = vmatprep.subr.bf16.mxu1 %v14842_v7 }
 0xe67   : > { %10045 = vmatmul.mubr.msk.f32.vlgmr.msra.gmra.mrb[6].mxu0 %vm2572_vm6, %v4142_v11  ;;  %10133 = vmatmul.mubr.msk.f32.vlgmr.msra.gmra.mrb[36].mxu1 %vm2572_vm6, %v4509_v45  ;;  %v5250_v11 = vld [vmem:[#allocation16 + $0x98] sm:$0xff]  ;;  %v5251_v45 = vld [vmem:[#allocation16 + $0xa0] sm:$0xff] }
 0xe68   : > { %11421 = vmatpush3.bf16.msk.msra.mxu0 %vm13350_vm10, %v13583_v36  ;;  %11474 = vmatpush3.bf16.msk.msra.mxu1 %vm13350_vm10, %v13583_v36 }
 0xe69   : > { %10047 = vmatprep.mubr.msk.f32.mxu0 %vm12543_vm11, %v14843_v50  ;;  %10135 = vmatprep.mubr.msk.f32.mxu1 %vm12543_vm11, %v14843_v50 }
 0xe6a   : > { %11490 = vmatprep.subr.bf16.mxu1 %v14842_v7  ;;  %11422 = vmatprep.subr.bf16.mxu0 %v14842_v7 }
 0xe6b   : > { %10048 = vmatmul.mubr.msk.f32.gmra.mrb[8].mxu0 %vm2572_vm6, %v4143_v53  ;;  %10136 = vmatmul.mubr.msk.f32.gmra.mrb[38].mxu1 %vm2572_vm6, %v4510_v49  ;;  %v5434_v53 = vld [vmem:[#allocation16 + $0xa8] sm:$0xff]  ;;  %v5435_v49 = vld [vmem:[#allocation16 + $0xb0] sm:$0xff] }
 0xe6c   : > { %10050 = vmatprep.mubr.msk.f32.mxu0 %vm12543_vm11, %v14843_v50  ;;  %10138 = vmatprep.mubr.msk.f32.mxu1 %vm12543_vm11, %v14843_v50 }
 0xe6f   : > { %10051 = vmatmul.mubr.msk.f32.gmra.mrb[10].mxu0 %vm2572_vm6, %v4144_v55  ;;  %10139 = vmatmul.mubr.msk.f32.gmra.mrb[40].mxu1 %vm2572_vm6, %v4511_v33  ;;  %v5436_v55 = vld [vmem:[#allocation16 + $0xb8] sm:$0xff]  ;;  %v5619_v33 = vld [vmem:[#allocation16 + $0xc0] sm:$0xff] }
 0xe70   : > { %10057 = vmatprep.mubr.msk.f32.mxu0 %vm12543_vm11, %v14843_v50  ;;  %10176 = vmatprep.mubr.msk.f32.mxu1 %vm12543_vm11, %v14843_v50 }
 0xe73   : > { %10058 = vmatmul.mubr.msk.f32.vlgmr.msra.gmra.mrb[12].mxu0 %vm2572_vm6, %v4238_v37  ;;  %10177 = vmatmul.mubr.msk.f32.vlgmr.msra.gmra.mrb[42].mxu1 %vm2572_vm6, %v4694_v0 }
 0xe74   : > { %11493 = vmatpush3.bf16.msk.msra.mxu1 %vm13350_vm10, %v13583_v36  ;;  %10179 = vmatprep.mubr.msk.f32.mxu1 %vm12543_vm11, %v14843_v50 }
 0xe75   : > { %11509 = vmatprep.subr.bf16.mxu1 %v14842_v7  ;;  %10060 = vmatprep.mubr.msk.f32.mxu0 %vm12543_vm11, %v14843_v50 }
 0xe76   : > { %11424 = vmatpush3.bf16.msra.mxu0 %v13014_v9 }
 0xe77   : > { %10180 = vmatmul.mubr.msk.f32.gmra.mrb[44].mxu1 %vm2572_vm6, %v4695_v24  ;;  %10061 = vmatmul.mubr.msk.f32.gmra.mrb[14].mxu0 %vm2572_vm6, %v4239_v54 }
 0xe78   : > { %10182 = vmatprep.mubr.msk.f32.mxu1 %vm12543_vm11, %v14843_v50  ;;  %10063 = vmatprep.mubr.msk.f32.mxu0 %vm12543_vm11, %v14843_v50 }
 0xe79   : > { %11425 = vmatprep.subr.bf16.mxu0 %v14842_v7 }
 0xe7a   : > { %11427 = vmatpush3.bf16.msra.mxu0 %v13019_v13 }
 0xe7b   : > { %10183 = vmatmul.mubr.msk.f32.gmra.mrb[46].mxu1 %vm2572_vm6, %v4696_v8  ;;  %10064 = vmatmul.mubr.msk.f32.gmra.mrb[16].mxu0 %vm2572_vm6, %v4240_v63 }
 0xe7c   : > { %10220 = vmatprep.mubr.msk.f32.mxu1 %vm12543_vm11, %v14843_v50  ;;  %11428 = vmatprep.subr.bf16.mxu0 %v14842_v7 }
 0xe7d   : > { %10088 = vmatprep.mubr.msk.f32.mxu0 %vm12543_vm11, %v14843_v50 }
 0xe7e   : > { %11430 = vmatpush3.bf16.msra.mxu0 %v13026_v16 }
 0xe7f   : > { %10221 = vmatmul.mubr.msk.f32.vlgmr.msra.gmra.mrb[48].mxu1 %vm2572_vm6, %v4879_v44  ;;  %11431 = vmatprep.subr.bf16.mxu0 %v14842_v7 }
 0xe80   : > { %11512 = vmatpush3.bf16.msk.msra.mxu1 %vm13350_vm10, %v13583_v36  ;;  %10223 = vmatprep.mubr.msk.f32.mxu1 %vm12543_vm11, %v14843_v50 }
 0xe81   : > { %11528 = vmatprep.subr.bf16.mxu1 %v14842_v7 }
 0xe82   : > { %11433 = vmatpush3.bf16.msra.mxu0 %v13030_v19 }
 0xe83   : > { %10224 = vmatmul.mubr.msk.f32.gmra.mrb[50].mxu1 %vm2572_vm6, %v4880_v18  ;;  %11434 = vmatprep.subr.bf16.mxu0 %v14842_v7 }
 0xe84   : > { %10226 = vmatprep.mubr.msk.f32.mxu1 %vm12543_vm11, %v14843_v50 }
 0xe86   : > { %11436 = vmatpush3.bf16.msra.mxu0 %v13034_v22 }
 0xe87   : > { %10227 = vmatmul.mubr.msk.f32.gmra.mrb[52].mxu1 %vm2572_vm6, %v4881_v48  ;;  %10086 = vmatprep.subr.mxu0 %v14843_v50 }
 0xe88   : > { %10264 = vmatprep.mubr.msk.f32.mxu1 %vm12543_vm11, %v14843_v50 }
 0xe8a   : > { %10087 = vmatpush3.msk.msra.mxu0 %vm1007_vm2, %v13664_v21 }
 0xe8b   : > { %10265 = vmatmul.mubr.msk.f32.vlgmr.msra.gmra.mrb[54].mxu1 %vm2572_vm6, %v5064_v56  ;;  %11437 = vmatprep.subr.bf16.mxu0 %v14842_v7 }
 0xe8c   : > { %11531 = vmatpush3.bf16.msk.msra.mxu1 %vm13350_vm10, %v13583_v36  ;;  %10267 = vmatprep.mubr.msk.f32.mxu1 %vm12543_vm11, %v14843_v50 }
 0xe8d   : > { %11547 = vmatprep.subr.bf16.mxu1 %v14842_v7 }
 0xe8f   : > { %10268 = vmatmul.mubr.msk.f32.gmra.mrb[56].mxu1 %vm2572_vm6, %v5065_v59 }
 0xe90   : > { %10270 = vmatprep.mubr.msk.f32.mxu1 %vm12543_vm11, %v14843_v50 }
 0xe93   : > { %10271 = vmatmul.mubr.msk.f32.gmra.mrb[58].mxu1 %vm2572_vm6, %v5066_v14 }
 0xe94   : > { %10308 = vmatprep.mubr.msk.f32.mxu1 %vm12543_vm11, %v14843_v50 }
 0xe97   : > { %10309 = vmatmul.mubr.msk.f32.vlgmr.msra.gmra.mrb[60].mxu1 %vm2572_vm6, %v5249_v17 }
 0xe98   : > { %11550 = vmatpush3.bf16.msk.msra.mxu1 %vm13350_vm10, %v13583_v36  ;;  %10311 = vmatprep.mubr.msk.f32.mxu1 %vm12543_vm11, %v14843_v50 }
 0xe99   : > { %11566 = vmatprep.subr.bf16.mxu1 %v14842_v7 }
 0xe9b   : > { %10312 = vmatmul.mubr.msk.f32.gmra.mrb[62].mxu1 %vm2572_vm6, %v5250_v11 }
 0xe9c   : > { %10314 = vmatprep.mubr.msk.f32.mxu1 %vm12543_vm11, %v14843_v50 }
 0xe9f   : > { %10315 = vmatmul.mubr.msk.f32.gmra.mrb[64].mxu1 %vm2572_vm6, %v5251_v45 }
 0xea0   : > { %10352 = vmatprep.mubr.msk.f32.mxu1 %vm12543_vm11, %v14843_v50 }
 0xea3   : > { %10353 = vmatmul.mubr.msk.f32.vlgmr.msra.gmra.mrb[66].mxu1 %vm2572_vm6, %v5434_v53 }
 0xea4   : > { %11569 = vmatpush3.bf16.msk.msra.mxu1 %vm13350_vm10, %v13583_v36  ;;  %10355 = vmatprep.mubr.msk.f32.mxu1 %vm12543_vm11, %v14843_v50  ;;  %v5621_v36 = vld [vmem:[#allocation16 + $0xd0] sm:$0xff] }
 0xea5   : > { %11585 = vmatprep.subr.bf16.mxu1 %v14842_v7 }
 0xea7   : > { %10356 = vmatmul.mubr.msk.f32.gmra.mrb[68].mxu1 %vm2572_vm6, %v5435_v49 }
 0xea8   : > { %10358 = vmatprep.mubr.msk.f32.mxu1 %vm12543_vm11, %v14843_v50 }
 0xeab   : > { %10359 = vmatmul.mubr.msk.f32.gmra.mrb[70].mxu1 %vm2572_vm6, %v5436_v55 }
 0xeac   : > { %10396 = vmatprep.mubr.msk.f32.mxu1 %vm12543_vm11, %v14843_v50 }
 0xeaf   : > { %10397 = vmatmul.mubr.msk.f32.vlgmr.msra.gmra.mrb[72].mxu1 %vm2572_vm6, %v5619_v33 }
 0xeb0   : > { %10399 = vmatprep.mubr.msk.f32.mxu1 %vm12543_vm11, %v14843_v50 }
 0xeb3   : > { %10400 = vmatmul.mubr.msk.f32.gmra.mrb[74].mxu1 %vm2572_vm6, %v5620_v15 }
 0xeb4   : > { %10402 = vmatprep.mubr.msk.f32.mxu1 %vm12543_vm11, %v14843_v50 }
 0xeb7   : > { %10403 = vmatmul.mubr.msk.f32.gmra.mrb[76].mxu1 %vm2572_vm6, %v5621_v36 }
 0xeb8   : > { %10442 = vmatprep.mubr.msk.f32.mxu1 %vm12543_vm11, %v14843_v50 }
 0xf3a   : > { %v4223_v37 = vpop.f32.mrb[6].mxu0  ;;  %v13717_v0 = vpop.f32.mrb[36].mxu1 }
 0xf3b   : > { %v10046_v24 = vpop.f32.mrb[7].mxu0  ;;  %v10134_v54 = vpop.f32.mrb[37].mxu1 }
 0xf3e   : > { %v4228_v8 = vpop.f32.mrb[8].mxu0  ;;  %v13719_v63 = vpop.f32.mrb[38].mxu1 }
 0xf3f   : > { %v10049_v44 = vpop.f32.mrb[9].mxu0  ;;  %v10137_v18 = vpop.f32.mrb[39].mxu1 }
 0xf42   : > { %v4233_v48 = vpop.f32.mrb[10].mxu0  ;;  %v13721_v56 = vpop.f32.mrb[40].mxu1 }
 0xf43   : > { %v10052_v59 = vpop.f32.mrb[11].mxu0  ;;  %v10140_v14 = vpop.f32.mrb[41].mxu1 }
 0xf46   : > { %v4316_v17 = vpop.f32.mrb[12].mxu0  ;;  %v13723_v11 = vpop.f32.mrb[42].mxu1 }
 0xf47   : > { %v10059_v45 = vpop.f32.mrb[13].mxu0  ;;  %10089 = vmatmul.mubr.msk.f32.vlgmr.msra.gmra.mrb[18].mxu0 %vm1000_vm3, %v4316_v17  ;;  %v10178_v53 = vpop.f32.mrb[43].mxu1 }
 0xf48   : > { %11439 = vmatpush3.bf16.msra.mxu0 %v13047_v27  ;;  %10091 = vmatprep.mubr.msk.f32.mxu0 %vm12543_vm11, %v14843_v50 }
 0xf49   : > { %11440 = vmatprep.subr.bf16.mxu0 %v14842_v7 }
 0xf4a   : > { %v4321_v49 = vpop.f32.mrb[14].mxu0  ;;  %v13730_v55 = vpop.f32.mrb[44].mxu1 }
 0xf4b   : > { %v10062_v33 = vpop.f32.mrb[15].mxu0  ;;  %10092 = vmatmul.mubr.msk.f32.gmra.mrb[20].mxu0 %vm1000_vm3, %v4321_v49  ;;  %v10181_v15 = vpop.f32.mrb[45].mxu1  ;;  %v13754_v49 = vld [vmem:[#allocation5 + $0x50] sm:$0x1] }
 0xf4c   : > { %11442 = vmatpush3.bf16.msra.mxu0 %v13049_v29  ;;  %10094 = vmatprep.mubr.msk.f32.mxu0 %vm12543_vm11, %v14843_v50 }
 0xf4d   : > { %11443 = vmatprep.subr.bf16.mxu0 %v14842_v7 }
 0xf4e   : > { %v4326_v36 = vpop.f32.mrb[16].mxu0  ;;  %v13737_v24 = vpop.f32.mrb[46].mxu1 }
 0xf4f   : > { %v10065_v54 = vpop.f32.mrb[17].mxu0  ;;  %10095 = vmatmul.mubr.msk.f32.gmra.mrb[22].mxu0 %vm1000_vm3, %v4326_v36  ;;  %v10184_v44 = vpop.f32.mrb[47].mxu1 }
 0xf50   : > { %11445 = vmatpush3.bf16.msra.mxu0 %v13054_v32  ;;  %10119 = vmatprep.mubr.msk.f32.mxu0 %vm12543_vm11, %v14843_v50 }
 0xf51   : > { %11446 = vmatprep.subr.bf16.mxu0 %v14842_v7 }
 0xf52   : > { %v13744_v18 = vpop.f32.mrb[48].mxu1 }
 0xf53   : > { %v10222_v59 = vpop.f32.mrb[49].mxu1 }
 0xf54   : > { %11448 = vmatpush3.bf16.msra.mxu0 %v13058_v35 }
 0xf55   : > { %11449 = vmatprep.subr.bf16.mxu0 %v14842_v7 }
 0xf56   : > { %v13748_v14 = vpop.f32.mrb[50].mxu1 }
 0xf57   : > { %v10225_v17 = vpop.f32.mrb[51].mxu1 }
 0xf58   : > { %11451 = vmatpush3.bf16.msra.mxu0 %v13062_v38 }
 0xf59   : > { %10117 = vmatprep.subr.mxu0 %v14843_v50 }
 0xf5a   : > { %v13752_v45 = vpop.f32.mrb[52].mxu1 }
 0xf5b   : > { %v10228_v53 = vpop.f32.mrb[53].mxu1 }
 0xf5c   : > { %10118 = vmatpush3.msk.msra.mxu0 %vm1007_vm2, %v13754_v49  ;;  %v13788_v53 = vld [vmem:[#allocation5 + $0x100] sm:$0x1] }
 0xf5d   : > { %10120 = vmatmul.mubr.msk.f32.vlgmr.msra.gmra.mrb[18].mxu0 %vm1000_vm3, %v4223_v37  ;;  %11456 = vmatprep.subr.bf16.mxu0 %v14842_v7 }
 0xf5e   : > { %11458 = vmatpush3.bf16.msra.mxu0 %v13071_v42  ;;  %10122 = vmatprep.mubr.msk.f32.mxu0 %vm12543_vm11, %v14843_v50  ;;  %v13763_v33 = vpop.f32.mrb[54].mxu1 }
 0xf5f   : > { %11459 = vmatprep.subr.bf16.mxu0 %v14842_v7  ;;  %v10266_v15 = vpop.f32.mrb[55].mxu1 }
 0xf61   : > { %10123 = vmatmul.mubr.msk.f32.gmra.mrb[20].mxu0 %vm1000_vm3, %v4228_v8 }
 0xf62   : > { %11461 = vmatpush3.bf16.msra.mxu0 %v13084_v52  ;;  %10125 = vmatprep.mubr.msk.f32.mxu0 %vm12543_vm11, %v14843_v50  ;;  %v13770_v37 = vpop.f32.mrb[56].mxu1 }
 0xf63   : > { %11462 = vmatprep.subr.bf16.mxu0 %v14842_v7  ;;  %v10269_v36 = vpop.f32.mrb[57].mxu1 }
 0xf65   : > { %10126 = vmatmul.mubr.msk.f32.gmra.mrb[22].mxu0 %vm1000_vm3, %v4233_v48 }
 0xf66   : > { %11464 = vmatpush3.bf16.msra.mxu0 %v13095_v57  ;;  %10163 = vmatprep.mubr.msk.f32.mxu0 %vm12543_vm11, %v14843_v50  ;;  %v13777_v54 = vpop.f32.mrb[58].mxu1 }
 0xf67   : > { %11465 = vmatprep.subr.bf16.mxu0 %v14842_v7  ;;  %v10272_v8 = vpop.f32.mrb[59].mxu1 }
 0xf6a   : > { %11467 = vmatpush3.bf16.msra.mxu0 %v13105_v62  ;;  %v13781_v44 = vpop.f32.mrb[60].mxu1 }
 0xf6b   : > { %11468 = vmatprep.subr.bf16.mxu0 %v14842_v7  ;;  %v10310_v59 = vpop.f32.mrb[61].mxu1 }
 0xf6e   : > { %11470 = vmatpush3.bf16.msra.mxu0 %v13133_v10  ;;  %v13785_v48 = vpop.f32.mrb[62].mxu1 }
 0xf6f   : > { %10161 = vmatprep.subr.mxu0 %v14843_v50  ;;  %v10313_v17 = vpop.f32.mrb[63].mxu1 }
 0xf72   : > { %10162 = vmatpush3.msk.msra.mxu0 %vm1007_vm2, %v13788_v53  ;;  %v13792_v15 = vpop.f32.mrb[64].mxu1 }
 0xf73   : > { %11475 = vmatprep.subr.bf16.mxu0 %v14842_v7  ;;  %10164 = vmatmul.mubr.msk.f32.vlgmr.msra.gmra.mrb[18].mxu0 %vm1000_vm3, %v13717_v0  ;;  %v10316_v36 = vpop.f32.mrb[65].mxu1 }
 0xf74   : > { %11477 = vmatpush3.bf16.msra.mxu0 %v13141_v3  ;;  %10166 = vmatprep.mubr.msk.f32.mxu0 %vm12543_vm11, %v14843_v50 }
 0xf75   : > { %11478 = vmatprep.subr.bf16.mxu0 %v14842_v7 }
 0xf76   : > { %v13801_v8 = vpop.f32.mrb[66].mxu1 }
 0xf77   : > { %10167 = vmatmul.mubr.msk.f32.gmra.mrb[20].mxu0 %vm1000_vm3, %v13719_v63  ;;  %v10354_v59 = vpop.f32.mrb[67].mxu1 }
 0xf78   : > { %11480 = vmatpush3.bf16.msra.mxu0 %v13150_v25  ;;  %10169 = vmatprep.mubr.msk.f32.mxu0 %vm12543_vm11, %v14843_v50 }
 0xf79   : > { %11481 = vmatprep.subr.bf16.mxu0 %v14842_v7 }
 0xf7a   : > { %v13809_v0 = vpop.f32.mrb[68].mxu1 }
 0xf7b   : > { %10170 = vmatmul.mubr.msk.f32.gmra.mrb[22].mxu0 %vm1000_vm3, %v13721_v56  ;;  %v10357_v17 = vpop.f32.mrb[69].mxu1 }
 0xf7c   : > { %11483 = vmatpush3.bf16.msra.mxu0 %v13156_v31  ;;  %10207 = vmatprep.mubr.msk.f32.mxu0 %vm12543_vm11, %v14843_v50  ;;  %v13827_v31 = vld [vmem:[#allocation5 + $0x158] sm:$0x1] }
 0xf7d   : > { %11484 = vmatprep.subr.bf16.mxu0 %v14842_v7 }
 0xf7e   : > { %v13817_v63 = vpop.f32.mrb[70].mxu1 }
 0xf7f   : > { %v10360_v36 = vpop.f32.mrb[71].mxu1 }
 0xf80   : > { %11486 = vmatpush3.bf16.msra.mxu0 %v13161_v40 }
 0xf81   : > { %11487 = vmatprep.subr.bf16.mxu0 %v14842_v7 }
 0xf82   : > { %v13821_v59 = vpop.f32.mrb[72].mxu1 }
 0xf83   : > { %v10398_v25 = vpop.f32.mrb[73].mxu1 }
 0xf84   : > { %11489 = vmatpush3.bf16.msra.mxu0 %v13167_v46 }
 0xf85   : > { %10205 = vmatprep.subr.mxu0 %v14843_v50 }
 0xf86   : > { %v13825_v56 = vpop.f32.mrb[74].mxu1 }
 0xf87   : > { %v10401_v17 = vpop.f32.mrb[75].mxu1 }
 0xf88   : > { %10206 = vmatpush3.msk.msra.mxu0 %vm1007_vm2, %v13827_v31 }
 0xf89   : > { %11494 = vmatprep.subr.bf16.mxu0 %v14842_v7  ;;  %10208 = vmatmul.mubr.msk.f32.vlgmr.msra.gmra.mrb[18].mxu0 %vm1000_vm3, %v13723_v11  ;;  %v13856_v11 = vld [vmem:[#allocation5 + $0x1b0] sm:$0x1] }
 0xf8a   : > { %11496 = vmatpush3.bf16.msra.mxu0 %v13182_v58  ;;  %10210 = vmatprep.mubr.msk.f32.mxu0 %vm12543_vm11, %v14843_v50  ;;  %v13837_v25 = vpop.f32.mrb[76].mxu1 }
 0xf8b   : > { %11497 = vmatprep.subr.bf16.mxu0 %v14842_v7  ;;  %v10404_v36 = vpop.f32.mrb[77].mxu1 }
 0xf8d   : > { %10211 = vmatmul.mubr.msk.f32.gmra.mrb[20].mxu0 %vm1000_vm3, %v13730_v55  ;;  %v13883_v55 = vld [vmem:[#allocation5 + $0x208] sm:$0x1] }
 0xf8e   : > { %11499 = vmatpush3.bf16.msra.mxu0 %v13186_v60  ;;  %10213 = vmatprep.mubr.msk.f32.mxu0 %vm12543_vm11, %v14843_v50  ;;  %14844 = vst [vmem:[#allocation42_spill] sm:$0xff] %v13883_v55 }
 0xf8f   : > { %11500 = vmatprep.subr.bf16.mxu0 %v14842_v7 }
 0xf91   : > { %10214 = vmatmul.mubr.msk.f32.gmra.mrb[22].mxu0 %vm1000_vm3, %v13737_v24  ;;  %v13910_v24 = vld [vmem:[#allocation5 + $0x260] sm:$0x1] }
 0xf92   : > { %11502 = vmatpush3.bf16.msra.mxu0 %v13199_v2  ;;  %10251 = vmatprep.mubr.msk.f32.mxu0 %vm12543_vm11, %v14843_v50  ;;  %14845 = vst [vmem:[#allocation48_spill] sm:$0xff] %v13910_v24 }
 0xf93   : > { %11503 = vmatprep.subr.bf16.mxu0 %v14842_v7 }
 0xf96   : > { %11505 = vmatpush3.bf16.msra.mxu0 %v13203_v6 }
 0xf97   : > { %11506 = vmatprep.subr.bf16.mxu0 %v14842_v7 }
 0xf9a   : > { %11508 = vmatpush3.bf16.msra.mxu0 %v13207_v12 }
 0xf9b   : > { %10249 = vmatprep.subr.mxu0 %v14843_v50 }
 0xf9e   : > { %10250 = vmatpush3.msk.msra.mxu0 %vm1007_vm2, %v13856_v11 }
 0xf9f   : > { %11513 = vmatprep.subr.bf16.mxu0 %v14842_v7  ;;  %10252 = vmatmul.mubr.msk.f32.vlgmr.msra.gmra.mrb[18].mxu0 %vm1000_vm3, %v13744_v18  ;;  %v13937_v18 = vld [vmem:[#allocation5 + $0x2b8] sm:$0x1] }
 0xfa0   : > { %11515 = vmatpush3.bf16.msra.mxu0 %v13216_v26  ;;  %10254 = vmatprep.mubr.msk.f32.mxu0 %vm12543_vm11, %v14843_v50  ;;  %14846 = vst [vmem:[#allocation54_spill] sm:$0xff] %v13937_v18 }
 0xfa1   : > { %11516 = vmatprep.subr.bf16.mxu0 %v14842_v7 }
 0xfa3   : > { %10255 = vmatmul.mubr.msk.f32.gmra.mrb[20].mxu0 %vm1000_vm3, %v13748_v14  ;;  %v14847_v14 = vld [vmem:[#allocation49_spill] sm:$0xff] }
 0xfa4   : > { %11518 = vmatpush3.bf16.msra.mxu0 %v13218_v28  ;;  %10257 = vmatprep.mubr.msk.f32.mxu0 %vm12543_vm11, %v14843_v50 }
 0xfa5   : > { %11519 = vmatprep.subr.bf16.mxu0 %v14842_v7 }
 0xfa7   : > { %10258 = vmatmul.mubr.msk.f32.gmra.mrb[22].mxu0 %vm1000_vm3, %v13752_v45  ;;  %v14848_v45 = vld [vmem:[#allocation50_spill] sm:$0xff] }
 0xfa8   : > { %11521 = vmatpush3.bf16.msra.mxu0 %v13227_v34  ;;  %10295 = vmatprep.mubr.msk.f32.mxu0 %vm12543_vm11, %v14843_v50 }
 0xfa9   : > { %11522 = vmatprep.subr.bf16.mxu0 %v14842_v7 }
 0xfac   : > { %11524 = vmatpush3.bf16.msra.mxu0 %v13231_v43 }
 0xfad   : > { %11525 = vmatprep.subr.bf16.mxu0 %v14842_v7 }
 0xfb0   : > { %11527 = vmatpush3.bf16.msra.mxu0 %v13235_v51 }
 0xfb1   : > { %10293 = vmatprep.subr.mxu0 %v14843_v50 }
 0xfb4   : > { %10294 = vmatpush3.msk.msra.mxu0 %vm1007_vm2, %v13883_v55 }
 0xfb5   : > { %11532 = vmatprep.subr.bf16.mxu0 %v14842_v7  ;;  %10296 = vmatmul.mubr.msk.f32.vlgmr.msra.gmra.mrb[18].mxu0 %vm1000_vm3, %v13763_v33  ;;  %v14849_v33 = vld [vmem:[#allocation51_spill] sm:$0xff] }
 0xfb6   : > { %11534 = vmatpush3.bf16.msra.mxu0 %v14824_v4  ;;  %10298 = vmatprep.mubr.msk.f32.mxu0 %vm12543_vm11, %v14843_v50 }
 0xfb7   : > { %11535 = vmatprep.subr.bf16.mxu0 %v14842_v7 }
 0xfb9   : > { %10299 = vmatmul.mubr.msk.f32.gmra.mrb[20].mxu0 %vm1000_vm3, %v13770_v37  ;;  %v14850_v37 = vld [vmem:[#allocation52_spill] sm:$0xff] }
 0xfba   : > { %11537 = vmatpush3.bf16.msra.mxu0 %v14825_v47  ;;  %10301 = vmatprep.mubr.msk.f32.mxu0 %vm12543_vm11, %v14843_v50 }
 0xfbb   : > { %11538 = vmatprep.subr.bf16.mxu0 %v14842_v7 }
 0xfbd   : > { %10302 = vmatmul.mubr.msk.f32.gmra.mrb[22].mxu0 %vm1000_vm3, %v13777_v54  ;;  %v14851_v54 = vld [vmem:[#allocation53_spill] sm:$0xff] }
 0xfbe   : > { %11540 = vmatpush3.bf16.msra.mxu0 %v14826_v5  ;;  %10339 = vmatprep.mubr.msk.f32.mxu0 %vm12543_vm11, %v14843_v50 }
 0xfbf   : > { %11541 = vmatprep.subr.bf16.mxu0 %v14842_v7 }
 0xfc2   : > { %11543 = vmatpush3.bf16.msra.mxu0 %v14827_v30 }
 0xfc3   : > { %11544 = vmatprep.subr.bf16.mxu0 %v14842_v7 }
 0xfc6   : > { %11546 = vmatpush3.bf16.msra.mxu0 %v14828_v20 }
 0xfc7   : > { %10337 = vmatprep.subr.mxu0 %v14843_v50 }
 0xfca   : > { %10338 = vmatpush3.msk.msra.mxu0 %vm1007_vm2, %v13910_v24 }
 0xfcb   : > { %11551 = vmatprep.subr.bf16.mxu0 %v14842_v7  ;;  %10340 = vmatmul.mubr.msk.f32.vlgmr.msra.gmra.mrb[18].mxu0 %vm1000_vm3, %v13781_v44  ;;  %v13964_v44 = vld [vmem:[#allocation5 + $0x310] sm:$0x1] }
 0xfcc   : > { %11553 = vmatpush3.bf16.msra.mxu0 %v14830_v1  ;;  %10342 = vmatprep.mubr.msk.f32.mxu0 %vm12543_vm11, %v14843_v50  ;;  %14852 = vst [vmem:[#allocation55_spill] sm:$0xff] %v13964_v44 }
 0xfcd   : > { %11554 = vmatprep.subr.bf16.mxu0 %v14842_v7 }
 0xfcf   : > { %10343 = vmatmul.mubr.msk.f32.gmra.mrb[20].mxu0 %vm1000_vm3, %v13785_v48 }
 0xfd0   : > { %11556 = vmatpush3.bf16.msra.mxu0 %v14831_v23  ;;  %10345 = vmatprep.mubr.msk.f32.mxu0 %vm12543_vm11, %v14843_v50 }
 0xfd1   : > { %11557 = vmatprep.subr.bf16.mxu0 %v14842_v7 }
 0xfd3   : > { %10346 = vmatmul.mubr.msk.f32.gmra.mrb[22].mxu0 %vm1000_vm3, %v13792_v15 }
 0xfd4   : > { %11559 = vmatpush3.bf16.msra.mxu0 %v14832_v61  ;;  %10383 = vmatprep.mubr.msk.f32.mxu0 %vm12543_vm11, %v14843_v50 }
 0xfd5   : > { %11560 = vmatprep.subr.bf16.mxu0 %v14842_v7 }
 0xfd8   : > { %11562 = vmatpush3.bf16.msra.mxu0 %v14833_v39 }
 0xfd9   : > { %11563 = vmatprep.subr.bf16.mxu0 %v14842_v7 }
 0xfdc   : > { %11565 = vmatpush3.bf16.msra.mxu0 %v14834_v41 }
 0xfdd   : > { %10381 = vmatprep.subr.mxu0 %v14843_v50 }
 0xfe0   : > { %10382 = vmatpush3.msk.msra.mxu0 %vm1007_vm2, %v13937_v18 }
 0xfe1   : > { %11570 = vmatprep.subr.bf16.mxu0 %v14842_v7  ;;  %10384 = vmatmul.mubr.msk.f32.vlgmr.msra.gmra.mrb[18].mxu0 %vm1000_vm3, %v13801_v8 }
 0xfe2   : > { %11572 = vmatpush3.bf16.msra.mxu0 %v14847_v14  ;;  %10386 = vmatprep.mubr.msk.f32.mxu0 %vm12543_vm11, %v14843_v50 }
 0xfe3   : > { %11573 = vmatprep.subr.bf16.mxu0 %v14842_v7 }
 0xfe5   : > { %10387 = vmatmul.mubr.msk.f32.gmra.mrb[20].mxu0 %vm1000_vm3, %v13809_v0 }
 0xfe6   : > { %11575 = vmatpush3.bf16.msra.mxu0 %v14848_v45  ;;  %10389 = vmatprep.mubr.msk.f32.mxu0 %vm12543_vm11, %v14843_v50 }
 0xfe7   : > { %11576 = vmatprep.subr.bf16.mxu0 %v14842_v7 }
 0xfe9   : > { %10390 = vmatmul.mubr.msk.f32.gmra.mrb[22].mxu0 %vm1000_vm3, %v13817_v63 }
 0xfea   : > { %11578 = vmatpush3.bf16.msra.mxu0 %v14849_v33  ;;  %10427 = vmatprep.mubr.msk.f32.mxu0 %vm12543_vm11, %v14843_v50 }
 0xfeb   : > { %11579 = vmatprep.subr.bf16.mxu0 %v14842_v7 }
 0xfee   : > { %11581 = vmatpush3.bf16.msra.mxu0 %v14850_v37 }
 0xfef   : > { %11582 = vmatprep.subr.bf16.mxu0 %v14842_v7 }
 0xff2   : > { %11584 = vmatpush3.bf16.msra.mxu0 %v14851_v54 }
 0xff3   : > { %10425 = vmatprep.subr.mxu0 %v14843_v50 }
 0xff6   : > { %10426 = vmatpush3.msk.msra.mxu0 %vm1007_vm2, %v13964_v44 }
 0xff7   : > { %10428 = vmatmul.mubr.msk.f32.vlgmr.msra.gmra.mrb[18].mxu0 %vm1000_vm3, %v13821_v59  ;;  %11639 = vmatprep.subr.bf16.mxu0 %v14842_v7 }
 0xff8   : > { %10430 = vmatprep.mubr.msk.f32.mxu0 %vm12543_vm11, %v14843_v50 }
 0xffb   : > { %10431 = vmatmul.mubr.msk.f32.gmra.mrb[20].mxu0 %vm1000_vm3, %v13825_v56 }
 0xffc   : > { %10433 = vmatprep.mubr.msk.f32.mxu0 %vm12543_vm11, %v14843_v50 }
 0xfff   : > { %10434 = vmatmul.mubr.msk.f32.gmra.mrb[22].mxu0 %vm1000_vm3, %v13837_v25 }
0x1000   : > { %10580 = vmatprep.mubr.msk.f32.mxu0 %vm12543_vm11, %v14843_v50 }
0x10ca   : > { %v5786_v48 = vpop.f32.mrb[18].mxu0 }
0x10cb   : > { %v10429_v15 = vpop.f32.mrb[19].mxu0  ;;  %v5803_v8 = vsel %vm1000_vm3, %v5786_v48, 0.0 }
0x10cc   : > { %5804 = vadd.xlane.f32.xlu1 %v5803_v8 }
0x10ce   : > { %v5791_v0 = vpop.f32.mrb[20].mxu0 }
0x10cf   : > { %v10432_v63 = vpop.f32.mrb[21].mxu0  ;;  %v5806_v59 = vsel %vm1000_vm3, %v5791_v0, 0.0 }
0x10d0   : > { %5807 = vadd.xlane.f32.xlu0 %v5806_v59 }
0x10d2   : > { %v5796_v56 = vpop.f32.mrb[22].mxu0 }
0x10d3   : > { %v10435_v17 = vpop.f32.mrb[23].mxu0  ;;  %v5809_v36 = vsel %vm1000_vm3, %v5796_v56, 0.0 }
0x10d4   : > { %5810 = vadd.xlane.f32.xlu0 %v5809_v36 }
0x1159   : > { %v5805_v44 = vpop.xlane.xlu1 %5804 }
0x115a   : > { %v5812_v37 = vmul.f32 0.012345679, %v5805_v44 }
0x115d   : > { %v5808_v25 = vpop.xlane.xlu0 %5807 }
0x115e   : > { %v5813_v54 = vmul.f32 0.012345679, %v5808_v25 }
0x1160   : > { %v5815_v45 = vadd.f32 %v5813_v54, %v5812_v37 }
0x1161   : > { %v5811_v33 = vpop.xlane.xlu0 %5810 }
0x1162   : > { %v5814_v15 = vmul.f32 0.012345679, %v5811_v33  ;;  %v5880_v33 = vld [vmem:[#allocation19 + $0x10] sm:$0xff] }
0x1164   : > { %v5816_v14 = vadd.f32 %v5815_v45, %v5814_v15 }
0x1166   : > { %v5817_v18 = vrot.slane %v5816_v14, 4 }
0x1168   : > { %v5818_v8 = vadd.f32 %v5817_v18, %v5816_v14  ;;  %v5858_v18 = vld [vmem:[#allocation18 + $0x8] sm:$0xff]  ;;  %v5859_v14 = vld [vmem:[#allocation18 + $0x10] sm:$0xff] }
0x116a   : > { %v5819_v41 = vrot.slane %v5818_v8, 2 }
0x116c   : > { %v5820_v63 = vadd.f32 %v5819_v41, %v5818_v8  ;;  %v5857_v41 = vld [vmem:[#allocation18] sm:$0xff] }
0x116e   : > { %v5821_v39 = vrot.slane %v5820_v63, 1 }
0x1170   : > { %v5822_v61 = vadd.f32 %v5821_v39, %v5820_v63  ;;  %v5879_v39 = vld [vmem:[#allocation19 + $0x8] sm:$0xff] }
0x1172   : > { %v5824_v59 = vmul.f32 0.041666668, %v5822_v61  ;;  %v5878_v61 = vld [vmem:[#allocation19] sm:$0xff] }
0x1174   : > { %v5826_v23 = vsub.f32 %v5791_v0, %v5824_v59  ;;  %v5825_v17 = vsub.f32 %v5786_v48, %v5824_v59  ;;  %v5827_v1 = vsub.f32 %v5796_v56, %v5824_v59 }
0x1176   : > { %v5829_v24 = vmul.f32 %v5826_v23, %v5826_v23  ;;  %v5828_v36 = vmul.f32 %v5825_v17, %v5825_v17  ;;  %v5830_v25 = vmul.f32 %v5827_v1, %v5827_v1 }
0x1178   : > { %v5834_v20 = vsel %vm1000_vm3, %v5829_v24, 0.0  ;;  %v5831_v44 = vsel %vm1000_vm3, %v5828_v36, 0.0  ;;  %v5837_v45 = vsel %vm1000_vm3, %v5830_v25, 0.0 }
0x1179   : > { %5835 = vadd.xlane.f32.xlu0 %v5834_v20  ;;  %5832 = vadd.xlane.f32.xlu1 %v5831_v44 }
0x117d   : > { %5838 = vadd.xlane.f32.xlu1 %v5837_v45 }
0x118e   : > { %5867 = vperm.xlu1 %12114, %v5858_v18  }
0x118f   : > { %5862 = vperm.xlu0 %12113, %v5857_v41  }
0x1192   : > { %5883 = vperm.xlu1 %12114, %v5878_v61  }
0x1193   : > { %5888 = vperm.xlu0 %12113, %v5879_v39  }
0x1196   : > { %5872 = vperm.xlu1 %12114, %v5859_v14  }
0x1197   : > { %5893 = vperm.xlu0 %12113, %v5880_v33  }
0x1206   : > { %v5836_v24 = vpop.xlane.xlu0 %5835  ;;  %v5833_v37 = vpop.xlane.xlu1 %5832 }
0x1207   : > { %v5841_v54 = vmul.f32 0.012345679, %v5836_v24  ;;  %v5840_v20 = vmul.f32 0.012345679, %v5833_v37 }
0x1209   : > { %v5843_v0 = vadd.f32 %v5841_v54, %v5840_v20 }
0x120a   : > { %v5839_v48 = vpop.xlane.xlu1 %5838 }
0x120b   : > { %v5842_v56 = vmul.f32 0.012345679, %v5839_v48 }
0x120d   : > { %v5844_v15 = vadd.f32 %v5843_v0, %v5842_v56 }
0x120e   : > { %v5868_v41 = vpop.permute.xlu1 %5867  ;;  %v5863_v61 = vpop.permute.xlu0 %5862 }
0x120f   : > { %v5845_v8 = vrot.slane %v5844_v15, 4 }
0x1211   : > { %v5846_v63 = vadd.f32 %v5845_v8, %v5844_v15 }
0x1212   : > { %v5884_v39 = vpop.permute.xlu1 %5883  ;;  %v5889_v14 = vpop.permute.xlu0 %5888 }
0x1213   : > { %v5847_v59 = vrot.slane %v5846_v63, 2 }
0x1215   : > { %v5848_v36 = vadd.f32 %v5847_v59, %v5846_v63 }
0x1216   : > { %v5873_v54 = vpop.permute.xlu1 %5872  ;;  %v5894_v56 = vpop.permute.xlu0 %5893 }
0x1217   : > { %v5849_v44 = vrot.slane %v5848_v36, 1 }
0x1219   : > { %v5850_v25 = vadd.f32 %v5849_v44, %v5848_v36 }
0x121b   : > { %v5851_v45 = vmul.f32 0.041666668, %v5850_v25 }
0x121d   : > { %v5852_v18 = vadd.f32 1e-05, %v5851_v45 }
0x121f   : > { %12127 = vrsqrt.f32 %v5852_v18 }
0x1229   : > { %v12128_v33 = vpop.eup %12127 }
0x122a   : > { %v5854_v24 = vmul.f32 %v12128_v33, %v5825_v17  ;;  %v5855_v37 = vmul.f32 %v12128_v33, %v5826_v23  ;;  %v5856_v30 = vmul.f32 %v12128_v33, %v5827_v1 }
0x122c   : > { %v5875_v20 = vmul.f32 %v5863_v61, %v5854_v24  ;;  %v5876_v48 = vmul.f32 %v5868_v41, %v5855_v37  ;;  %v5877_v0 = vmul.f32 %v5873_v54, %v5856_v30 }
0x122e   : > { %v13987_v15 = vadd.f32 %v5889_v14, %v5876_v48  ;;  %v13989_v8 = vadd.f32 %v5884_v39, %v5875_v20  ;;  %v13991_v63 = vadd.f32 %v5894_v56, %v5877_v0 }
0x1230   : > { %v13994_v59 = vmul.f32 0.70710677, %v13987_v15  ;;  %v13997_v36 = vmul.f32 0.70710677, %v13989_v8  ;;  %v14000_v23 = vmul.f32 0.70710677, %v13991_v63 }
0x1232   : > { %v5912_v1 = vand.u32 2147483647, %v13994_v59  ;;  %v5911_v30 = vand.u32 2147483647, %v13997_v36  ;;  %v5913_v17 = vand.u32 2147483647, %v14000_v23 }
0x1233   : > { %vm5906_vm12 = vcmp.ge.f32.partialorder %v13994_v59, 0.0  ;;  %vm5905_vm13 = vcmp.ge.f32.partialorder %v13997_v36, 0.0  ;;  %vm5907_vm14 = vcmp.ge.f32.partialorder %v14000_v23, 0.0  ;;  %v5900_v59 = vmul.f32 0.5, %v13987_v15  ;;  %v6527_v23 = vld [vmem:[#allocation21 + $0x48] sm:$0xff] }
0x1234   : > { %v5915_v44 = vmul.f32 0.3275911, %v5912_v1  ;;  %v5914_v25 = vmul.f32 0.3275911, %v5911_v30  ;;  %v5916_v45 = vmul.f32 0.3275911, %v5913_v17 }
0x1235   : > { %v5951_v39 = vsub.f32 0.0, %v5912_v1  ;;  %v5950_v14 = vsub.f32 0.0, %v5911_v30  ;;  %v5952_v37 = vsub.f32 0.0, %v5913_v17  ;;  %v5899_v36 = vmul.f32 0.5, %v13989_v8  ;;  %v5977_v8 = vld [vmem:[#allocation21] sm:$0xff] }
0x1236   : > { %v5918_v18 = vadd.f32 1.0, %v5915_v44  ;;  %v5917_v41 = vadd.f32 1.0, %v5914_v25  ;;  %v5919_v61 = vadd.f32 1.0, %v5916_v45 }
0x1237   : > { %v5954_v24 = vmul.f32 %v5951_v39, %v5912_v1  ;;  %v5953_v48 = vmul.f32 %v5950_v14, %v5911_v30  ;;  %v5955_v55 = vmul.f32 %v5952_v37, %v5913_v17 }
0x1238   : > { %12129 = vrcp.f32 %v5918_v18 }
0x1239   : > { %12131 = vrcp.f32 %v5917_v41  ;;  %v5958_v47 = vmul.f32 1.442695, %v5954_v24  ;;  %v5956_v25 = vmul.f32 1.442695, %v5953_v48  ;;  %v5960_v43 = vmul.f32 1.442695, %v5955_v55 }
0x123a   : > { %12133 = vrcp.f32 %v5919_v61 }
0x123b   : > { %12135 = vpow2.f32 %v5958_v47 }
0x123c   : > { %12137 = vpow2.f32 %v5956_v25 }
0x123d   : > { %12139 = vpow2.f32 %v5960_v43 }
0x1242   : > { %v12130_v33 = vpop.eup %12129 }
0x1243   : > { %v12132_v54 = vpop.eup %12131  ;;  %v5924_v20 = vmul.f32 1.0614054, %v12130_v33 }
0x1244   : > { %v5923_v0 = vmul.f32 1.0614054, %v12132_v54  ;;  %v12134_v5 = vpop.eup %12133 }
0x1245   : > { %v5927_v56 = vadd.f32 -1.4531521, %v5924_v20  ;;  %v5925_v18 = vmul.f32 1.0614054, %v12134_v5 }
0x1246   : > { %v5926_v4 = vadd.f32 -1.4531521, %v5923_v0 }
0x1247   : > { %v5930_v44 = vmul.f32 %v12130_v33, %v5927_v56  ;;  %v5928_v61 = vadd.f32 -1.4531521, %v5925_v18  ;;  %v12136_v18 = vpop.eup %12135 }
0x1248   : > { %v5929_v45 = vmul.f32 %v12132_v54, %v5926_v4 }
0x1249   : > { %v5933_v41 = vadd.f32 1.4214138, %v5930_v44  ;;  %v5931_v39 = vmul.f32 %v12134_v5, %v5928_v61  ;;  %v14853_v61 = vmov -1.0  }
0x124a   : > { %v5932_v51 = vadd.f32 1.4214138, %v5929_v45  ;;  %v12138_v45 = vpop.eup %12137 }
0x124b   : > { %v5936_v1 = vmul.f32 %v12130_v33, %v5933_v41  ;;  %v5934_v14 = vadd.f32 1.4214138, %v5931_v39  ;;  %v12140_v41 = vpop.eup %12139 }
0x124c   : > { %v5935_v34 = vmul.f32 %v12132_v54, %v5932_v51 }
0x124d   : > { %v5939_v30 = vadd.f32 -0.28449672, %v5936_v1  ;;  %v5937_v0 = vmul.f32 %v12134_v5, %v5934_v14  ;;  %v5909_v1 = vsel %vm5906_vm12, 1.0, %v14853_v61 }
0x124e   : > { %v5938_v20 = vadd.f32 -0.28449672, %v5935_v34 }
0x124f   : > { %v5942_v24 = vmul.f32 %v12130_v33, %v5939_v30  ;;  %v5940_v48 = vadd.f32 -0.28449672, %v5937_v0 }
0x1250   : > { %v5941_v17 = vmul.f32 %v12132_v54, %v5938_v20 }
0x1251   : > { %v5945_v37 = vadd.f32 0.2548296, %v5942_v24  ;;  %v5943_v44 = vmul.f32 %v12134_v5, %v5940_v48 }
0x1252   : > { %v5944_v56 = vadd.f32 0.2548296, %v5941_v17 }
0x1253   : > { %v5948_v4 = vmul.f32 %v12130_v33, %v5945_v37  ;;  %v5946_v25 = vadd.f32 0.2548296, %v5943_v44  ;;  %v5908_v33 = vsel %vm5905_vm13, 1.0, %v14853_v61  ;;  %v5901_v44 = vmul.f32 0.5, %v13991_v63  ;;  %v5978_v63 = vld [vmem:[#allocation21 + $0x8] sm:$0xff] }
0x1254   : > { %v5947_v47 = vmul.f32 %v12132_v54, %v5944_v56 }
0x1255   : > { %v5963_v55 = vmul.f32 %v12136_v18, %v5948_v4  ;;  %v5949_v43 = vmul.f32 %v12134_v5, %v5946_v25  ;;  %v5910_v5 = vsel %vm5907_vm14, 1.0, %v14853_v61  ;;  %v6528_v18 = vld [vmem:[#allocation21 + $0x50] sm:$0xff]  ;;  %v6712_v25 = vld [vmem:[#allocation21 + $0x60] sm:$0xff]  ;;  %v7267_v61 = vld [vmem:[#allocation21 + $0xa8] sm:$0xff] }
0x1256   : > { %v5962_v51 = vmul.f32 %v12138_v45, %v5947_v47  ;;  %v5979_v47 = vld [vmem:[#allocation21 + $0x10] sm:$0xff]  ;;  %v6529_v45 = vld [vmem:[#allocation21 + $0x58] sm:$0xff] }
0x1257   : > { %v5966_v34 = vsub.f32 1.0, %v5963_v55  ;;  %v5964_v54 = vmul.f32 %v12140_v41, %v5949_v43  ;;  %v6071_v55 = vld [vmem:[#allocation21 + $0x18] sm:$0xff]  ;;  %v6073_v43 = vld [vmem:[#allocation21 + $0x28] sm:$0xff]  ;;  %v6714_v41 = vld [vmem:[#allocation21 + $0x70] sm:$0xff] }
0x1258   : > { %v5965_v39 = vsub.f32 1.0, %v5962_v51  ;;  %v6072_v51 = vld [vmem:[#allocation21 + $0x20] sm:$0xff] }
0x1259   : > { %v5969_v30 = vmul.f32 %v5966_v34, %v5909_v1  ;;  %v5967_v24 = vsub.f32 1.0, %v5964_v54  ;;  %v6713_v34 = vld [vmem:[#allocation21 + $0x68] sm:$0xff]  ;;  %v7268_v1 = vld [vmem:[#allocation21 + $0xb0] sm:$0xff] }
0x125a   : > { %v5968_v14 = vmul.f32 %v5965_v39, %v5908_v33  ;;  %v7269_v39 = vld [vmem:[#allocation21 + $0xb8] sm:$0xff]  ;;  %v7453_v33 = vld [vmem:[#allocation21 + $0xc8] sm:$0xff]  ;;  %v7454_v54 = vld [vmem:[#allocation21 + $0xd0] sm:$0xff] }
0x125b   : > { %v5972_v20 = vadd.f32 1.0, %v5969_v30  ;;  %v5970_v37 = vmul.f32 %v5967_v24, %v5910_v5  ;;  %v7452_v30 = vld [vmem:[#allocation21 + $0xc0] sm:$0xff] }
0x125c   : > { %v5971_v0 = vadd.f32 1.0, %v5968_v14 }
0x125d   : > { %v5975_v17 = vmul.f32 %v5972_v20, %v5900_v59  ;;  %v5973_v4 = vadd.f32 1.0, %v5970_v37 }
0x125e   : > { %v5974_v48 = vmul.f32 %v5971_v0, %v5899_v36 }
0x125f   : > { %v14020_v15 = vmul.f32 %v5973_v4, %v5901_v44 }
0x1260   : > { %v14013_v56 = vpack.c.bf16 %v5975_v17, %v5974_v48 }
0x1262   : > { %11587 = vmatpush3.bf16.msra.mxu1 %v14013_v56  ;;  %11641 = vmatpush3.bf16.msra.mxu0 %v14013_v56 }
0x1263   : > { %10440 = vmatprep.subr.mxu1 %v14843_v50  ;;  %10578 = vmatprep.subr.mxu0 %v14843_v50 }
0x1266   : > { %10441 = vmatpush3.msra.mxu1 %v14020_v15  ;;  %10579 = vmatpush3.msra.mxu0 %v14020_v15 }
0x1267   : > { %10443 = vmatmul.mubr.msk.f32.vlgmr.msra.gmra.mrb[78].mxu1 %vm5980_vm15, %v5977_v8  ;;  %11588 = vmatprep.subr.bf16.mxu1 %v14842_v7 }
0x1268   : > { %10581 = vmatmul.mubr.msk.f32.vlgmr.msra.gmra.mrb[24].mxu0 %vm5980_vm15, %v6527_v23  ;;  %11657 = vmatprep.subr.bf16.mxu0 %v14842_v7 }
0x1269   : > { %11590 = vmatpush3.bf16.msra.mxu1 %v14013_v56  ;;  %11659 = vmatpush3.bf16.msra.mxu0 %v14013_v56 }
0x126a   : > { %10445 = vmatprep.mubr.msk.f32.mxu1 %vm12543_vm11, %v14843_v50  ;;  %10583 = vmatprep.mubr.msk.f32.mxu0 %vm12543_vm11, %v14843_v50 }
0x126b   : > { %10446 = vmatmul.mubr.msk.f32.gmra.mrb[80].mxu1 %vm5980_vm15, %v5978_v63  ;;  %10455 = vmatprep.subr.mxu1 %v14843_v50 }
0x126c   : > { %10584 = vmatmul.mubr.msk.f32.gmra.mrb[26].mxu0 %vm5980_vm15, %v6528_v18  ;;  %10624 = vmatprep.subr.mxu0 %v14843_v50 }
0x126d   : > { %10456 = vmatpush3.msra.mxu1 %v14020_v15  ;;  %10625 = vmatpush3.msra.mxu0 %v14020_v15 }
0x126e   : > { %10448 = vmatprep.mubr.msk.f32.mxu1 %vm12543_vm11, %v14843_v50  ;;  %10586 = vmatprep.mubr.msk.f32.mxu0 %vm12543_vm11, %v14843_v50 }
0x126f   : > { %10449 = vmatmul.mubr.msk.f32.gmra.mrb[82].mxu1 %vm5980_vm15, %v5979_v47  ;;  %11675 = vmatprep.subr.bf16.mxu0 %v14842_v7 }
0x1270   : > { %10587 = vmatmul.mubr.msk.f32.gmra.mrb[28].mxu0 %vm5980_vm15, %v6529_v45  ;;  %10457 = vmatprep.mubr.msk.f32.mxu1 %vm12543_vm11, %v14843_v50 }
0x1271   : > { %10626 = vmatprep.mubr.msk.f32.mxu0 %vm12543_vm11, %v14843_v50  ;;  %11591 = vmatprep.subr.bf16.mxu1 %v14842_v7 }
0x1273   : > { %10458 = vmatmul.mubr.msk.f32.vlgmr.msra.gmra.mrb[84].mxu1 %vm5980_vm15, %v6071_v55 }
0x1274   : > { %10627 = vmatmul.mubr.msk.f32.vlgmr.msra.gmra.mrb[30].mxu0 %vm5980_vm15, %v6712_v25  ;;  %10460 = vmatprep.mubr.msk.f32.mxu1 %vm12543_vm11, %v14843_v50 }
0x1275   : > { %11677 = vmatpush3.bf16.msra.mxu0 %v14013_v56  ;;  %10629 = vmatprep.mubr.msk.f32.mxu0 %vm12543_vm11, %v14843_v50 }
0x1276   : > { %10670 = vmatprep.subr.mxu0 %v14843_v50  ;;  %11593 = vmatpush3.bf16.msra.mxu1 %v13014_v9  ;;  %v6897_v9 = vld [vmem:[#allocation21 + $0x78] sm:$0xff] }
0x1277   : > { %10461 = vmatmul.mubr.msk.f32.gmra.mrb[86].mxu1 %vm5980_vm15, %v6072_v51  ;;  %11594 = vmatprep.subr.bf16.mxu1 %v14842_v7 }
0x1278   : > { %10630 = vmatmul.mubr.msk.f32.gmra.mrb[32].mxu0 %vm5980_vm15, %v6713_v34  ;;  %10463 = vmatprep.mubr.msk.f32.mxu1 %vm12543_vm11, %v14843_v50 }
0x1279   : > { %10671 = vmatpush3.msra.mxu0 %v14020_v15  ;;  %10632 = vmatprep.mubr.msk.f32.mxu0 %vm12543_vm11, %v14843_v50 }
0x127a   : > { %11693 = vmatprep.subr.bf16.mxu0 %v14842_v7  ;;  %11596 = vmatpush3.bf16.msra.mxu1 %v13019_v13  ;;  %v6898_v13 = vld [vmem:[#allocation21 + $0x80] sm:$0xff] }
0x127b   : > { %10464 = vmatmul.mubr.msk.f32.gmra.mrb[88].mxu1 %vm5980_vm15, %v6073_v43  ;;  %11597 = vmatprep.subr.bf16.mxu1 %v14842_v7 }
0x127c   : > { %10633 = vmatmul.mubr.msk.f32.gmra.mrb[34].mxu0 %vm5980_vm15, %v6714_v41  ;;  %10488 = vmatprep.mubr.msk.f32.mxu1 %vm12543_vm11, %v14843_v50 }
0x127d   : > { %10672 = vmatprep.mubr.msk.f32.mxu0 %vm12543_vm11, %v14843_v50 }
0x127e   : > { %11599 = vmatpush3.bf16.msra.mxu1 %v13026_v16  ;;  %v6899_v16 = vld [vmem:[#allocation21 + $0x88] sm:$0xff] }
0x127f   : > { %11600 = vmatprep.subr.bf16.mxu1 %v14842_v7 }
0x1280   : > { %10673 = vmatmul.mubr.msk.f32.vlgmr.msra.gmra.mrb[36].mxu0 %vm5980_vm15, %v6897_v9 }
0x1281   : > { %11695 = vmatpush3.bf16.msra.mxu0 %v14013_v56  ;;  %10675 = vmatprep.mubr.msk.f32.mxu0 %vm12543_vm11, %v14843_v50 }
0x1282   : > { %10716 = vmatprep.subr.mxu0 %v14843_v50  ;;  %11602 = vmatpush3.bf16.msra.mxu1 %v13030_v19  ;;  %v7082_v19 = vld [vmem:[#allocation21 + $0x90] sm:$0xff] }
0x1283   : > { %11603 = vmatprep.subr.bf16.mxu1 %v14842_v7 }
0x1284   : > { %10676 = vmatmul.mubr.msk.f32.gmra.mrb[38].mxu0 %vm5980_vm15, %v6898_v13 }
0x1285   : > { %10717 = vmatpush3.msra.mxu0 %v14020_v15  ;;  %10678 = vmatprep.mubr.msk.f32.mxu0 %vm12543_vm11, %v14843_v50 }
0x1286   : > { %11711 = vmatprep.subr.bf16.mxu0 %v14842_v7  ;;  %11605 = vmatpush3.bf16.msra.mxu1 %v13034_v22  ;;  %v7083_v22 = vld [vmem:[#allocation21 + $0x98] sm:$0xff] }
0x1287   : > { %10486 = vmatprep.subr.mxu1 %v14843_v50 }
0x1288   : > { %10679 = vmatmul.mubr.msk.f32.gmra.mrb[40].mxu0 %vm5980_vm15, %v6899_v16 }
0x1289   : > { %10718 = vmatprep.mubr.msk.f32.mxu0 %vm12543_vm11, %v14843_v50 }
0x128a   : > { %10487 = vmatpush3.msk.msra.mxu1 %vm1007_vm2, %v13664_v21  ;;  %v7084_v21 = vld [vmem:[#allocation21 + $0xa0] sm:$0xff] }
0x128b   : > { %11606 = vmatprep.subr.bf16.mxu1 %v14842_v7 }
0x128c   : > { %10719 = vmatmul.mubr.msk.f32.vlgmr.msra.gmra.mrb[42].mxu0 %vm5980_vm15, %v7082_v19 }
0x128d   : > { %11713 = vmatpush3.bf16.msra.mxu0 %v14013_v56  ;;  %10721 = vmatprep.mubr.msk.f32.mxu0 %vm12543_vm11, %v14843_v50 }
0x128e   : > { %10762 = vmatprep.subr.mxu0 %v14843_v50 }
0x1290   : > { %10722 = vmatmul.mubr.msk.f32.gmra.mrb[44].mxu0 %vm5980_vm15, %v7083_v22 }
0x1291   : > { %10763 = vmatpush3.msra.mxu0 %v14020_v15  ;;  %10724 = vmatprep.mubr.msk.f32.mxu0 %vm12543_vm11, %v14843_v50 }
0x1292   : > { %11729 = vmatprep.subr.bf16.mxu0 %v14842_v7 }
0x1294   : > { %10725 = vmatmul.mubr.msk.f32.gmra.mrb[46].mxu0 %vm5980_vm15, %v7084_v21 }
0x1295   : > { %10764 = vmatprep.mubr.msk.f32.mxu0 %vm12543_vm11, %v14843_v50 }
0x1298   : > { %10765 = vmatmul.mubr.msk.f32.vlgmr.msra.gmra.mrb[48].mxu0 %vm5980_vm15, %v7267_v61 }
0x1299   : > { %11731 = vmatpush3.bf16.msra.mxu0 %v14013_v56  ;;  %10767 = vmatprep.mubr.msk.f32.mxu0 %vm12543_vm11, %v14843_v50 }
0x129a   : > { %10808 = vmatprep.subr.mxu0 %v14843_v50 }
0x129c   : > { %10768 = vmatmul.mubr.msk.f32.gmra.mrb[50].mxu0 %vm5980_vm15, %v7268_v1 }
0x129d   : > { %10809 = vmatpush3.msra.mxu0 %v14020_v15  ;;  %10770 = vmatprep.mubr.msk.f32.mxu0 %vm12543_vm11, %v14843_v50 }
0x129e   : > { %11747 = vmatprep.subr.bf16.mxu0 %v14842_v7 }
0x12a0   : > { %10771 = vmatmul.mubr.msk.f32.gmra.mrb[52].mxu0 %vm5980_vm15, %v7269_v39 }
0x12a1   : > { %10810 = vmatprep.mubr.msk.f32.mxu0 %vm12543_vm11, %v14843_v50 }
0x12a4   : > { %10811 = vmatmul.mubr.msk.f32.vlgmr.msra.gmra.mrb[54].mxu0 %vm5980_vm15, %v7452_v30 }
0x12a5   : > { %10813 = vmatprep.mubr.msk.f32.mxu0 %vm12543_vm11, %v14843_v50 }
0x12a8   : > { %10814 = vmatmul.mubr.msk.f32.gmra.mrb[56].mxu0 %vm5980_vm15, %v7453_v33 }
0x12a9   : > { %10816 = vmatprep.mubr.msk.f32.mxu0 %vm12543_vm11, %v14843_v50 }
0x12ac   : > { %10817 = vmatmul.mubr.msk.f32.gmra.mrb[58].mxu0 %vm5980_vm15, %v7454_v54 }
0x12ad   : > { %10872 = vmatprep.mubr.msk.f32.mxu0 %vm12543_vm11, %v14843_v50 }
0x133a   : > { %v6056_v14 = vpop.f32.mrb[78].mxu1 }
0x133b   : > { %v10444_v59 = vpop.f32.mrb[79].mxu1 }
0x133e   : > { %v6061_v20 = vpop.f32.mrb[80].mxu1 }
0x133f   : > { %v10447_v24 = vpop.f32.mrb[81].mxu1 }
0x1342   : > { %v6066_v36 = vpop.f32.mrb[82].mxu1 }
0x1343   : > { %v10450_v0 = vpop.f32.mrb[83].mxu1 }
0x1346   : > { %v6149_v5 = vpop.f32.mrb[84].mxu1 }
0x1347   : > { %10489 = vmatmul.mubr.msk.f32.vlgmr.msra.gmra.mrb[90].mxu1 %vm1000_vm3, %v6149_v5  ;;  %v10459_v17 = vpop.f32.mrb[85].mxu1  ;;  %v14855_v5 = vld [vmem:[#allocation33_spill] sm:$0xff] }
0x1348   : > { %11608 = vmatpush3.bf16.msra.mxu1 %v13047_v27  ;;  %10491 = vmatprep.mubr.msk.f32.mxu1 %vm12543_vm11, %v14843_v50 }
0x1349   : > { %11609 = vmatprep.subr.bf16.mxu1 %v14842_v7 }
0x134a   : > { %v6154_v37 = vpop.f32.mrb[86].mxu1 }
0x134b   : > { %10492 = vmatmul.mubr.msk.f32.gmra.mrb[92].mxu1 %vm1000_vm3, %v6154_v37  ;;  %v10462_v48 = vpop.f32.mrb[87].mxu1  ;;  %v14867_v37 = vld [vmem:[#allocation44_spill] sm:$0xff] }
0x134c   : > { %11611 = vmatpush3.bf16.msra.mxu1 %v13049_v29  ;;  %10494 = vmatprep.mubr.msk.f32.mxu1 %vm12543_vm11, %v14843_v50  ;;  %v6342_v29 = vld [vmem:[#allocation21 + $0x30] sm:$0xff]  ;;  %v14868_v48 = vld [vmem:[#allocation45_spill] sm:$0xff] }
0x134d   : > { %11612 = vmatprep.subr.bf16.mxu1 %v14842_v7 }
0x134e   : > { %v6159_v4 = vpop.f32.mrb[88].mxu1 }
0x134f   : > { %10495 = vmatmul.mubr.msk.f32.gmra.mrb[94].mxu1 %vm1000_vm3, %v6159_v4  ;;  %v10465_v27 = vpop.f32.mrb[89].mxu1  ;;  %v14869_v4 = vld [vmem:[#allocation46_spill] sm:$0xff] }
0x1350   : > { %11614 = vmatpush3.bf16.msra.mxu1 %v13054_v32  ;;  %10519 = vmatprep.mubr.msk.f32.mxu1 %vm12543_vm11, %v14843_v50  ;;  %v6343_v32 = vld [vmem:[#allocation21 + $0x38] sm:$0xff]  ;;  %v14870_v27 = vld [vmem:[#allocation47_spill] sm:$0xff] }
0x1351   : > { %11615 = vmatprep.subr.bf16.mxu1 %v14842_v7 }
0x1354   : > { %11617 = vmatpush3.bf16.msra.mxu1 %v13058_v35  ;;  %v6344_v35 = vld [vmem:[#allocation21 + $0x40] sm:$0xff] }
0x1355   : > { %11618 = vmatprep.subr.bf16.mxu1 %v14842_v7 }
0x1358   : > { %11620 = vmatpush3.bf16.msra.mxu1 %v13062_v38  ;;  %v6605_v38 = vpop.f32.mrb[24].mxu0 }
0x1359   : > { %10517 = vmatprep.subr.mxu1 %v14843_v50 }
0x135c   : > { %10518 = vmatpush3.msk.msra.mxu1 %vm1007_vm2, %v13754_v49 }
0x135d   : > { %10520 = vmatmul.mubr.msk.f32.vlgmr.msra.gmra.mrb[90].mxu1 %vm1000_vm3, %v6056_v14  ;;  %11621 = vmatprep.subr.bf16.mxu1 %v14842_v7 }
0x135e   : > { %11623 = vmatpush3.bf16.msra.mxu1 %v14013_v56  ;;  %10522 = vmatprep.mubr.msk.f32.mxu1 %vm12543_vm11, %v14843_v50 }
0x135f   : > { %10532 = vmatprep.subr.mxu1 %v14843_v50 }
0x1361   : > { %10523 = vmatmul.mubr.msk.f32.gmra.mrb[92].mxu1 %vm1000_vm3, %v6061_v20  ;;  %v14854_v20 = vld [vmem:[#allocation32_spill] sm:$0xff] }
0x1362   : > { %10533 = vmatpush3.msra.mxu1 %v14020_v15  ;;  %10525 = vmatprep.mubr.msk.f32.mxu1 %vm12543_vm11, %v14843_v50 }
0x1363   : > { %11624 = vmatprep.subr.bf16.mxu1 %v14842_v7 }
0x1365   : > { %10526 = vmatmul.mubr.msk.f32.gmra.mrb[94].mxu1 %vm1000_vm3, %v6066_v36 }
0x1366   : > { %10534 = vmatprep.mubr.msk.f32.mxu1 %vm12543_vm11, %v14843_v50 }
0x1369   : > { %10535 = vmatmul.mubr.msk.f32.vlgmr.msra.gmra.mrb[96].mxu1 %vm5980_vm15, %v6342_v29  ;;  %v14871_v29 = vld [vmem:[#allocation54_spill] sm:$0xff] }
0x136a   : > { %10537 = vmatprep.mubr.msk.f32.mxu1 %vm12543_vm11, %v14843_v50  ;;  %11626 = vmatpush3.bf16.msra.mxu1 %v13071_v42  ;;  %v10582_v42 = vpop.f32.mrb[25].mxu0 }
0x136b   : > { %11627 = vmatprep.subr.bf16.mxu1 %v14842_v7  ;;  %v14875_v42 = vld [vmem:[#allocation52_spill] sm:$0xff] }
0x136d   : > { %10538 = vmatmul.mubr.msk.f32.gmra.mrb[98].mxu1 %vm5980_vm15, %v6343_v32  ;;  %v14872_v32 = vld [vmem:[#allocation49_spill] sm:$0xff] }
0x136e   : > { %10540 = vmatprep.mubr.msk.f32.mxu1 %vm12543_vm11, %v14843_v50  ;;  %11629 = vmatpush3.bf16.msra.mxu1 %v13084_v52  ;;  %v6610_v52 = vpop.f32.mrb[26].mxu0 }
0x136f   : > { %11630 = vmatprep.subr.bf16.mxu1 %v14842_v7 }
0x1371   : > { %10541 = vmatmul.mubr.msk.f32.gmra.mrb[100].mxu1 %vm5980_vm15, %v6344_v35  ;;  %v14873_v35 = vld [vmem:[#allocation50_spill] sm:$0xff] }
0x1372   : > { %11632 = vmatpush3.bf16.msra.mxu1 %v13095_v57  ;;  %10565 = vmatprep.mubr.msk.f32.mxu1 %vm12543_vm11, %v14843_v50  ;;  %v10585_v57 = vpop.f32.mrb[27].mxu0 }
0x1373   : > { %11633 = vmatprep.subr.bf16.mxu1 %v14842_v7  ;;  %v14192_v49 = vpop.f32.mrb[28].mxu0  ;;  %v14877_v57 = vld [vmem:[#allocation55_spill] sm:$0xff] }
0x1374   : > { %v10588_v56 = vpop.f32.mrb[29].mxu0 }
0x1375   : > { %v14194_v44 = vpop.f32.mrb[30].mxu0 }
0x1376   : > { %11635 = vmatpush3.bf16.msra.mxu1 %v13105_v62  ;;  %v10628_v62 = vpop.f32.mrb[31].mxu0 }
0x1377   : > { %11636 = vmatprep.subr.bf16.mxu1 %v14842_v7  ;;  %v14196_v15 = vpop.f32.mrb[32].mxu0 }
0x137a   : > { %11638 = vmatpush3.bf16.msra.mxu1 %v13133_v10  ;;  %v10631_v10 = vpop.f32.mrb[33].mxu0 }
0x137b   : > { %10563 = vmatprep.subr.mxu1 %v14843_v50  ;;  %v14198_v8 = vpop.f32.mrb[34].mxu0 }
0x137c   : > { %v10634_v23 = vpop.f32.mrb[35].mxu0 }
0x137d   : > { %v14200_v63 = vpop.f32.mrb[36].mxu0 }
0x137e   : > { %10564 = vmatpush3.msk.msra.mxu1 %vm1007_vm2, %v13788_v53  ;;  %v10674_v53 = vpop.f32.mrb[37].mxu0 }
0x137f   : > { %11642 = vmatprep.subr.bf16.mxu1 %v14842_v7  ;;  %v14202_v18 = vpop.f32.mrb[38].mxu0 }
0x1380   : > { %v10677_v47 = vpop.f32.mrb[39].mxu0 }
0x1381   : > { %v14204_v45 = vpop.f32.mrb[40].mxu0 }
0x1382   : > { %v10680_v55 = vpop.f32.mrb[41].mxu0 }
0x1383   : > { %v14206_v25 = vpop.f32.mrb[42].mxu0 }
0x1384   : > { %v10720_v51 = vpop.f32.mrb[43].mxu0 }
0x1385   : > { %v14208_v34 = vpop.f32.mrb[44].mxu0 }
0x1386   : > { %v10723_v43 = vpop.f32.mrb[45].mxu0 }
0x1387   : > { %v14210_v41 = vpop.f32.mrb[46].mxu0 }
0x1388   : > { %v10726_v9 = vpop.f32.mrb[47].mxu0 }
0x1389   : > { %v14212_v13 = vpop.f32.mrb[48].mxu0 }
0x138a   : > { %v10766_v16 = vpop.f32.mrb[49].mxu0 }
0x138b   : > { %v14214_v19 = vpop.f32.mrb[50].mxu0 }
0x138c   : > { %v10769_v22 = vpop.f32.mrb[51].mxu0 }
0x138d   : > { %v14216_v21 = vpop.f32.mrb[52].mxu0 }
0x138e   : > { %v10772_v61 = vpop.f32.mrb[53].mxu0 }
0x138f   : > { %v14219_v30 = vpop.f32.mrb[54].mxu0 }
0x1390   : > { %v10812_v33 = vpop.f32.mrb[55].mxu0 }
0x1391   : > { %v14226_v59 = vpop.f32.mrb[56].mxu0 }
0x1392   : > { %v10815_v24 = vpop.f32.mrb[57].mxu0 }
0x1393   : > { %v14233_v0 = vpop.f32.mrb[58].mxu0  ;;  %v7687_v24 = vld [vmem:[#allocation22] sm:$0xff] }
0x1394   : > { %v10818_v17 = vpop.f32.mrb[59].mxu0 }
0x1395   : > { %v7710_v17 = vld [vmem:[%s14683_s14 + $0x18] sm:$0xff] }
0x143c   : > { %v6420_v1 = vpop.f32.mrb[96].mxu1 }
0x143d   : > { %10566 = vmatmul.mubr.msk.f32.vlgmr.msra.gmra.mrb[90].mxu1 %vm1000_vm3, %v6420_v1  ;;  %v10536_v39 = vpop.f32.mrb[97].mxu1 }
0x143e   : > { %11644 = vmatpush3.bf16.msra.mxu1 %v13141_v3  ;;  %10568 = vmatprep.mubr.msk.f32.mxu1 %vm12543_vm11, %v14843_v50 }
0x143f   : > { %11645 = vmatprep.subr.bf16.mxu1 %v14842_v7 }
0x1440   : > { %v6425_v54 = vpop.f32.mrb[98].mxu1 }
0x1441   : > { %10569 = vmatmul.mubr.msk.f32.gmra.mrb[92].mxu1 %vm1000_vm3, %v6425_v54  ;;  %v10539_v14 = vpop.f32.mrb[99].mxu1 }
0x1442   : > { %11647 = vmatpush3.bf16.msra.mxu1 %v14854_v20  ;;  %10571 = vmatprep.mubr.msk.f32.mxu1 %vm12543_vm11, %v14843_v50  ;;  %v7694_v20 = vld [vmem:[%s14682_s13] sm:$0xff] }
0x1443   : > { %11648 = vmatprep.subr.bf16.mxu1 %v14842_v7 }
0x1444   : > { %v6430_v3 = vpop.f32.mrb[100].mxu1 }
0x1445   : > { %10572 = vmatmul.mubr.msk.f32.gmra.mrb[94].mxu1 %vm1000_vm3, %v6430_v3  ;;  %v10542_v36 = vpop.f32.mrb[101].mxu1  ;;  %v7707_v3 = vld [vmem:[%s14683_s14] sm:$0xff] }
0x1446   : > { %11650 = vmatpush3.bf16.msra.mxu1 %v14855_v5  ;;  %10611 = vmatprep.mubr.msk.f32.mxu1 %vm12543_vm11, %v14843_v50  ;;  %v7708_v36 = vld [vmem:[%s14683_s14 + $0x8] sm:$0xff]  ;;  %v7709_v5 = vld [vmem:[%s14683_s14 + $0x10] sm:$0xff] }
0x1447   : > { %11651 = vmatprep.subr.bf16.mxu1 %v14842_v7 }
0x144a   : > { %11653 = vmatpush3.bf16.msra.mxu1 %v13161_v40  ;;  %v14857_v40 = vld [vmem:[#allocation35_spill] sm:$0xff] }
0x144b   : > { %11654 = vmatprep.subr.bf16.mxu1 %v14842_v7 }
0x144e   : > { %11656 = vmatpush3.bf16.msra.mxu1 %v13167_v46  ;;  %v14858_v46 = vld [vmem:[#allocation36_spill] sm:$0xff] }
0x144f   : > { %10609 = vmatprep.subr.mxu1 %v14843_v50 }
0x1452   : > { %10610 = vmatpush3.msk.msra.mxu1 %vm1007_vm2, %v13827_v31  ;;  %v14856_v31 = vld [vmem:[#allocation34_spill] sm:$0xff] }
0x1453   : > { %11660 = vmatprep.subr.bf16.mxu1 %v14842_v7  ;;  %10612 = vmatmul.mubr.msk.f32.vlgmr.msra.gmra.mrb[90].mxu1 %vm1000_vm3, %v6605_v38  ;;  %v14874_v38 = vld [vmem:[#allocation51_spill] sm:$0xff] }
0x1454   : > { %11662 = vmatpush3.bf16.msra.mxu1 %v13182_v58  ;;  %10614 = vmatprep.mubr.msk.f32.mxu1 %vm12543_vm11, %v14843_v50  ;;  %v14859_v58 = vld [vmem:[#allocation42_spill] sm:$0xff] }
0x1455   : > { %11663 = vmatprep.subr.bf16.mxu1 %v14842_v7 }
0x1457   : > { %10615 = vmatmul.mubr.msk.f32.gmra.mrb[92].mxu1 %vm1000_vm3, %v6610_v52  ;;  %v14876_v52 = vld [vmem:[#allocation53_spill] sm:$0xff] }
0x1458   : > { %11665 = vmatpush3.bf16.msra.mxu1 %v13186_v60  ;;  %10617 = vmatprep.mubr.msk.f32.mxu1 %vm12543_vm11, %v14843_v50  ;;  %v14860_v60 = vld [vmem:[#allocation37_spill] sm:$0xff] }
0x1459   : > { %11666 = vmatprep.subr.bf16.mxu1 %v14842_v7 }
0x145b   : > { %10618 = vmatmul.mubr.msk.f32.gmra.mrb[94].mxu1 %vm1000_vm3, %v14192_v49 }
0x145c   : > { %11668 = vmatpush3.bf16.msra.mxu1 %v13199_v2  ;;  %10657 = vmatprep.mubr.msk.f32.mxu1 %vm12543_vm11, %v14843_v50  ;;  %v14861_v2 = vld [vmem:[#allocation38_spill] sm:$0xff] }
0x145d   : > { %11669 = vmatprep.subr.bf16.mxu1 %v14842_v7 }
0x1460   : > { %11671 = vmatpush3.bf16.msra.mxu1 %v13203_v6  ;;  %v14862_v6 = vld [vmem:[#allocation39_spill] sm:$0xff] }
0x1461   : > { %11672 = vmatprep.subr.bf16.mxu1 %v14842_v7 }
0x1464   : > { %11674 = vmatpush3.bf16.msra.mxu1 %v13207_v12  ;;  %v14863_v12 = vld [vmem:[#allocation40_spill] sm:$0xff] }
0x1465   : > { %10655 = vmatprep.subr.mxu1 %v14843_v50 }
0x1468   : > { %10656 = vmatpush3.msk.msra.mxu1 %vm1007_vm2, %v13856_v11  ;;  %v14866_v11 = vld [vmem:[#allocation43_spill] sm:$0xff] }
0x1469   : > { %11678 = vmatprep.subr.bf16.mxu1 %v14842_v7  ;;  %10658 = vmatmul.mubr.msk.f32.vlgmr.msra.gmra.mrb[90].mxu1 %vm1000_vm3, %v14194_v44 }
0x146a   : > { %11680 = vmatpush3.bf16.msra.mxu1 %v13216_v26  ;;  %10660 = vmatprep.mubr.msk.f32.mxu1 %vm12543_vm11, %v14843_v50  ;;  %v14864_v26 = vld [vmem:[#allocation41_spill] sm:$0xff] }
0x146b   : > { %11681 = vmatprep.subr.bf16.mxu1 %v14842_v7 }
0x146d   : > { %10661 = vmatmul.mubr.msk.f32.gmra.mrb[92].mxu1 %vm1000_vm3, %v14196_v15 }
0x146e   : > { %11683 = vmatpush3.bf16.msra.mxu1 %v13218_v28  ;;  %10663 = vmatprep.mubr.msk.f32.mxu1 %vm12543_vm11, %v14843_v50  ;;  %v14865_v28 = vld [vmem:[#allocation48_spill] sm:$0xff] }
0x146f   : > { %11684 = vmatprep.subr.bf16.mxu1 %v14842_v7 }
0x1471   : > { %10664 = vmatmul.mubr.msk.f32.gmra.mrb[94].mxu1 %vm1000_vm3, %v14198_v8 }
0x1472   : > { %11686 = vmatpush3.bf16.msra.mxu1 %v14856_v31  ;;  %10703 = vmatprep.mubr.msk.f32.mxu1 %vm12543_vm11, %v14843_v50  ;;  %v11751_v31 = vpack.c.bf16 %v7710_v17, %v7709_v5  ;;  %v8711_v5 = vld [vmem:[%s14683_s14 + $0xc8] sm:$0xff] }
0x1473   : > { %11687 = vmatprep.subr.bf16.mxu1 %v14842_v7 }
0x1476   : > { %11689 = vmatpush3.bf16.msra.mxu1 %v14857_v40  ;;  %v7711_v40 = vld [vmem:[%s14683_s14 + $0x20] sm:$0xff] }
0x1477   : > { %11690 = vmatprep.subr.bf16.mxu1 %v14842_v7 }
0x147a   : > { %11692 = vmatpush3.bf16.msra.mxu1 %v14858_v46  ;;  %v7712_v46 = vld [vmem:[%s14683_s14 + $0x28] sm:$0xff] }
0x147b   : > { %10701 = vmatprep.subr.mxu1 %v14843_v50 }
0x147e   : > { %10702 = vmatpush3.msk.msra.mxu1 %vm1007_vm2, %v14859_v58  ;;  %v11754_v58 = vpack.c.bf16 %v7712_v46, %v7711_v40  ;;  %v8713_v40 = vld [vmem:[%s14683_s14 + $0xd8] sm:$0xff] }
0x147f   : > { %11696 = vmatprep.subr.bf16.mxu1 %v14842_v7  ;;  %10704 = vmatmul.mubr.msk.f32.vlgmr.msra.gmra.mrb[90].mxu1 %vm1000_vm3, %v14200_v63 }
0x1480   : > { %11698 = vmatpush3.bf16.msra.mxu1 %v14860_v60  ;;  %10706 = vmatprep.mubr.msk.f32.mxu1 %vm12543_vm11, %v14843_v50  ;;  %v7713_v60 = vld [vmem:[%s14683_s14 + $0x30] sm:$0xff] }
0x1481   : > { %11699 = vmatprep.subr.bf16.mxu1 %v14842_v7 }
0x1483   : > { %10707 = vmatmul.mubr.msk.f32.gmra.mrb[92].mxu1 %vm1000_vm3, %v14202_v18 }
0x1484   : > { %11701 = vmatpush3.bf16.msra.mxu1 %v14861_v2  ;;  %10709 = vmatprep.mubr.msk.f32.mxu1 %vm12543_vm11, %v14843_v50  ;;  %v7714_v2 = vld [vmem:[%s14683_s14 + $0x38] sm:$0xff] }
0x1485   : > { %11702 = vmatprep.subr.bf16.mxu1 %v14842_v7 }
0x1487   : > { %10710 = vmatmul.mubr.msk.f32.gmra.mrb[94].mxu1 %vm1000_vm3, %v14204_v45 }
0x1488   : > { %11704 = vmatpush3.bf16.msra.mxu1 %v14862_v6  ;;  %10749 = vmatprep.mubr.msk.f32.mxu1 %vm12543_vm11, %v14843_v50  ;;  %v11757_v6 = vpack.c.bf16 %v7714_v2, %v7713_v60  ;;  %v8715_v60 = vld [vmem:[%s14683_s14 + $0xe8] sm:$0xff] }
0x1489   : > { %11705 = vmatprep.subr.bf16.mxu1 %v14842_v7 }
0x148c   : > { %11707 = vmatpush3.bf16.msra.mxu1 %v14863_v12  ;;  %v7715_v12 = vld [vmem:[%s14683_s14 + $0x40] sm:$0xff] }
0x148d   : > { %11708 = vmatprep.subr.bf16.mxu1 %v14842_v7 }
0x1490   : > { %11710 = vmatpush3.bf16.msra.mxu1 %v14864_v26  ;;  %v7716_v26 = vld [vmem:[%s14683_s14 + $0x48] sm:$0xff] }
0x1491   : > { %10747 = vmatprep.subr.mxu1 %v14843_v50 }
0x1494   : > { %10748 = vmatpush3.msk.msra.mxu1 %vm1007_vm2, %v14865_v28  ;;  %v11760_v28 = vpack.c.bf16 %v7716_v26, %v7715_v12  ;;  %v8717_v12 = vld [vmem:[%s14683_s14 + $0xf8] sm:$0xff] }
0x1495   : > { %11714 = vmatprep.subr.bf16.mxu1 %v14842_v7  ;;  %10750 = vmatmul.mubr.msk.f32.vlgmr.msra.gmra.mrb[90].mxu1 %vm1000_vm3, %v14206_v25 }
0x1496   : > { %11716 = vmatpush3.bf16.msra.mxu1 %v14866_v11  ;;  %10752 = vmatprep.mubr.msk.f32.mxu1 %vm12543_vm11, %v14843_v50  ;;  %v7717_v11 = vld [vmem:[%s14683_s14 + $0x50] sm:$0x1] }
0x1497   : > { %11717 = vmatprep.subr.bf16.mxu1 %v14842_v7 }
0x1499   : > { %10753 = vmatmul.mubr.msk.f32.gmra.mrb[92].mxu1 %vm1000_vm3, %v14208_v34 }
0x149a   : > { %11719 = vmatpush3.bf16.msra.mxu1 %v14867_v37  ;;  %10755 = vmatprep.mubr.msk.f32.mxu1 %vm12543_vm11, %v14843_v50 }
0x149b   : > { %11720 = vmatprep.subr.bf16.mxu1 %v14842_v7 }
0x149d   : > { %10756 = vmatmul.mubr.msk.f32.gmra.mrb[94].mxu1 %vm1000_vm3, %v14210_v41 }
0x149e   : > { %11722 = vmatpush3.bf16.msra.mxu1 %v14868_v48  ;;  %10795 = vmatprep.mubr.msk.f32.mxu1 %vm12543_vm11, %v14843_v50 }
0x149f   : > { %11723 = vmatprep.subr.bf16.mxu1 %v14842_v7 }
0x14a2   : > { %11725 = vmatpush3.bf16.msra.mxu1 %v14869_v4 }
0x14a3   : > { %11726 = vmatprep.subr.bf16.mxu1 %v14842_v7 }
0x14a6   : > { %11728 = vmatpush3.bf16.msra.mxu1 %v14870_v27 }
0x14a7   : > { %10793 = vmatprep.subr.mxu1 %v14843_v50 }
0x14aa   : > { %10794 = vmatpush3.msk.msra.mxu1 %vm1007_vm2, %v14871_v29 }
0x14ab   : > { %11732 = vmatprep.subr.bf16.mxu1 %v14842_v7  ;;  %10796 = vmatmul.mubr.msk.f32.vlgmr.msra.gmra.mrb[90].mxu1 %vm1000_vm3, %v14212_v13 }
0x14ac   : > { %11734 = vmatpush3.bf16.msra.mxu1 %v14872_v32  ;;  %10798 = vmatprep.mubr.msk.f32.mxu1 %vm12543_vm11, %v14843_v50 }
0x14ad   : > { %11735 = vmatprep.subr.bf16.mxu1 %v14842_v7 }
0x14af   : > { %10799 = vmatmul.mubr.msk.f32.gmra.mrb[92].mxu1 %vm1000_vm3, %v14214_v19 }
0x14b0   : > { %11737 = vmatpush3.bf16.msra.mxu1 %v14873_v35  ;;  %10801 = vmatprep.mubr.msk.f32.mxu1 %vm12543_vm11, %v14843_v50 }
0x14b1   : > { %11738 = vmatprep.subr.bf16.mxu1 %v14842_v7 }
0x14b3   : > { %10802 = vmatmul.mubr.msk.f32.gmra.mrb[94].mxu1 %vm1000_vm3, %v14216_v21 }
0x14b4   : > { %11740 = vmatpush3.bf16.msra.mxu1 %v14874_v38  ;;  %10841 = vmatprep.mubr.msk.f32.mxu1 %vm12543_vm11, %v14843_v50 }
0x14b5   : > { %11741 = vmatprep.subr.bf16.mxu1 %v14842_v7 }
0x14b8   : > { %11743 = vmatpush3.bf16.msra.mxu1 %v14875_v42 }
0x14b9   : > { %11744 = vmatprep.subr.bf16.mxu1 %v14842_v7 }
0x14bc   : > { %11746 = vmatpush3.bf16.msra.mxu1 %v14876_v52 }
0x14bd   : > { %10839 = vmatprep.subr.mxu1 %v14843_v50 }
0x14c0   : > { %10840 = vmatpush3.msk.msra.mxu1 %vm1007_vm2, %v14877_v57 }
0x14c1   : > { %10842 = vmatmul.mubr.msk.f32.vlgmr.msra.gmra.mrb[90].mxu1 %vm1000_vm3, %v14219_v30 }
0x14c2   : > { %10844 = vmatprep.mubr.msk.f32.mxu1 %vm12543_vm11, %v14843_v50 }
0x14c5   : > { %10845 = vmatmul.mubr.msk.f32.gmra.mrb[92].mxu1 %vm1000_vm3, %v14226_v59 }
0x14c6   : > { %10847 = vmatprep.mubr.msk.f32.mxu1 %vm12543_vm11, %v14843_v50 }
0x14c9   : > { %10848 = vmatmul.mubr.msk.f32.gmra.mrb[94].mxu1 %vm1000_vm3, %v14233_v0  ;;  %v11748_v0 = vpack.c.bf16 %v7708_v36, %v7707_v3 }
0x14cb   : > { %11749 = vmatpush3.bf16.msra.mxu0 %v11748_v0  ;;  %v8710_v0 = vld [vmem:[%s14683_s14 + $0xc0] sm:$0xff] }
0x14cc   : > { %11750 = vmatprep.subr.bf16.mxu0 %v14842_v7  ;;  %v11781_v17 = vpack.c.bf16 %v8711_v5, %v8710_v0  ;;  %v8756_v0 = vld [vmem:[%s14683_s14 + $0x200] sm:$0xff] }
0x14cf   : > { %11752 = vmatpush3.bf16.msra.mxu0 %v11751_v31  ;;  %v8712_v31 = vld [vmem:[%s14683_s14 + $0xd0] sm:$0xff] }
0x14d0   : > { %11753 = vmatprep.subr.bf16.mxu0 %v14842_v7  ;;  %v11784_v46 = vpack.c.bf16 %v8713_v40, %v8712_v31  ;;  %v7706_v40 = vld [vmem:[%s14878_s6] sm:$0x1] }
0x14d3   : > { %11755 = vmatpush3.bf16.msra.mxu0 %v11754_v58  ;;  %v8714_v58 = vld [vmem:[%s14683_s14 + $0xe0] sm:$0xff] }
0x14d4   : > { %11756 = vmatprep.subr.bf16.mxu0 %v14842_v7  ;;  %v11787_v2 = vpack.c.bf16 %v8715_v60, %v8714_v58 }
0x14d7   : > { %11758 = vmatpush3.bf16.msra.mxu0 %v11757_v6  ;;  %v8716_v6 = vld [vmem:[%s14683_s14 + $0xf0] sm:$0xff] }
0x14d8   : > { %11759 = vmatprep.subr.bf16.mxu0 %v14842_v7  ;;  %v11790_v26 = vpack.c.bf16 %v8717_v12, %v8716_v6  ;;  %v8247_v6 = vld [vmem:[#allocation2] sm:$0x1] }
0x14db   : > { %11761 = vmatpush3.bf16.msra.mxu0 %v11760_v28  ;;  %v8721_v28 = vld [vmem:[%s14683_s14 + $0x108] sm:$0xff] }
0x14dc   : > { %10870 = vmatprep.subr.mxu0 %v14843_v50 }
0x14df   : > { %10871 = vmatpush3.msk.msra.mxu0 %vm1007_vm2, %v7717_v11  ;;  %v8722_v11 = vld [vmem:[%s14683_s14 + $0x110] sm:$0xff] }
0x14e0   : > { %11762 = vmatprep.subr.bf16.mxu0 %v14842_v7 }
0x1594   : > { %v7619_v49 = vpop.f32.mrb[90].mxu1 }
0x1595   : > { %v10843_v56 = vpop.f32.mrb[91].mxu1  ;;  %v7636_v44 = vsel %vm1000_vm3, %v7619_v49, 0.0 }
0x1596   : > { %7637 = vadd.xlane.f32.xlu1 %v7636_v44 }
0x1598   : > { %v7624_v62 = vpop.f32.mrb[92].mxu1 }
0x1599   : > { %v10846_v15 = vpop.f32.mrb[93].mxu1  ;;  %v7639_v10 = vsel %vm1000_vm3, %v7624_v62, 0.0 }
0x159a   : > { %7640 = vadd.xlane.f32.xlu0 %v7639_v10  ;;  %v7701_v10 = vlaneseq }
0x159c   : > { %v7629_v8 = vpop.f32.mrb[94].mxu1 }
0x159d   : > { %v10849_v23 = vpop.f32.mrb[95].mxu1  ;;  %v7642_v63 = vsel %vm1000_vm3, %v7629_v8, 0.0 }
0x159e   : > { %7643 = vadd.xlane.f32.xlu0 %v7642_v63 }
0x1623   : > { %v7638_v53 = vpop.xlane.xlu1 %7637 }
0x1624   : > { %v7645_v45 = vmul.f32 0.012345679, %v7638_v53 }
0x1627   : > { %v7641_v18 = vpop.xlane.xlu0 %7640 }
0x1628   : > { %v7646_v47 = vmul.f32 0.012345679, %v7641_v18 }
0x162a   : > { %v7648_v25 = vadd.f32 %v7646_v47, %v7645_v45 }
0x162b   : > { %v7644_v55 = vpop.xlane.xlu0 %7643 }
0x162c   : > { %v7647_v51 = vmul.f32 0.012345679, %v7644_v55 }
0x162e   : > { %v7649_v34 = vadd.f32 %v7648_v25, %v7647_v51  ;;  %v8695_v25 = vld [vmem:[%s14683_s14 + $0x58] sm:$0xff]  ;;  %v8696_v51 = vld [vmem:[%s14683_s14 + $0x60] sm:$0xff] }
0x1630   : > { %v7650_v43 = vrot.slane %v7649_v34, 4 }
0x1632   : > { %v7651_v41 = vadd.f32 %v7650_v43, %v7649_v34  ;;  %v11763_v43 = vpack.c.bf16 %v8696_v51, %v8695_v25  ;;  %v8740_v51 = vld [vmem:[%s14683_s14 + $0x190] sm:$0xff] }
0x1634   : > { %v7652_v9 = vrot.slane %v7651_v41, 2 }
0x1636   : > { %v7653_v13 = vadd.f32 %v7652_v9, %v7651_v41  ;;  %v12152_v41 = vld [vmem:[%s13002_s22] sm:$0x3f] }
0x1638   : > { %v7654_v16 = vrot.slane %v7653_v13, 1 }
0x163a   : > { %v7655_v19 = vadd.f32 %v7654_v16, %v7653_v13  ;;  %v8697_v13 = vld [vmem:[%s14683_s14 + $0x68] sm:$0xff]  ;;  %v8698_v16 = vld [vmem:[%s14683_s14 + $0x70] sm:$0xff] }
0x163c   : > { %v7656_v22 = vmul.f32 0.041666668, %v7655_v19  ;;  %v11766_v19 = vpack.c.bf16 %v8698_v16, %v8697_v13  ;;  %v8743_v13 = vld [vmem:[%s14683_s14 + $0x1a8] sm:$0xff] }
0x163e   : > { %v7658_v21 = vsub.f32 %v7624_v62, %v7656_v22  ;;  %v14381_v61 = vsub.f32 %v7619_v49, %v7656_v22  ;;  %v7659_v1 = vsub.f32 %v7629_v8, %v7656_v22  ;;  %v7702_v8 = vshrl.u32 %v7701_v10, 7  ;;  %v8699_v22 = vld [vmem:[%s14683_s14 + $0x78] sm:$0xff]  ;;  %v8735_v10 = vld [vmem:[%s14683_s14 + $0x168] sm:$0xff] }
0x1640   : > { %v7661_v39 = vmul.f32 %v7658_v21, %v7658_v21  ;;  %v7660_v30 = vmul.f32 %v14381_v61, %v14381_v61  ;;  %v7662_v14 = vmul.f32 %v7659_v1, %v7659_v1  ;;  %v7703_v47 = vsub.s32 0, %v7702_v8  ;;  %v8700_v21 = vld [vmem:[%s14683_s14 + $0x80] sm:$0xff]  ;;  %v8701_v1 = vld [vmem:[%s14683_s14 + $0x88] sm:$0xff]  ;;  %v8731_v8 = vld [vmem:[%s14683_s14 + $0x158] sm:$0x1] }
0x1642   : > { %v7666_v33 = vsel %vm1000_vm3, %v7661_v39, 0.0  ;;  %v7663_v54 = vsel %vm1000_vm3, %v7660_v30, 0.0  ;;  %v7669_v59 = vsel %vm1000_vm3, %v7662_v14, 0.0  ;;  %v8702_v39 = vld [vmem:[%s14683_s14 + $0x90] sm:$0xff] }
0x1643   : > { %7667 = vadd.xlane.f32.xlu0 %v7666_v33  ;;  %7664 = vadd.xlane.f32.xlu1 %v7663_v54  ;;  %v11772_v30 = vpack.c.bf16 %v8702_v39, %v8701_v1  ;;  %v8703_v33 = vld [vmem:[%s14683_s14 + $0x98] sm:$0xff]  ;;  %v8704_v54 = vld [vmem:[%s14683_s14 + $0xa0] sm:$0xff]  ;;  %v8749_v39 = vld [vmem:[%s14683_s14 + $0x1c8] sm:$0xff] }
0x1644   : > { %v11775_v14 = vpack.c.bf16 %v8704_v54, %v8703_v33  ;;  %v8751_v54 = vld [vmem:[%s14683_s14 + $0x1d8] sm:$0xff] }
0x1647   : > { %7670 = vadd.xlane.f32.xlu1 %v7669_v59  ;;  %v8708_v59 = vld [vmem:[%s14683_s14 + $0xb0] sm:$0xff] }
0x1658   : > { %7697 = vperm.xlu1 %12114, %v7694_v20   ;;  %v8709_v20 = vld [vmem:[%s14683_s14 + $0xb8] sm:$0xff] }
0x1659   : > { %7690 = vperm.xlu0 %12113, %v7687_v24   ;;  %v8705_v24 = vld [vmem:[%s14683_s14 + $0xa8] sm:$0x1]  ;;  %v11778_v3 = vpack.c.bf16 %v8709_v20, %v8708_v59 }
0x165a   : > { %v8753_v20 = vld [vmem:[%s14683_s14 + $0x1e8] sm:$0xff] }
0x16d0   : > { %v7668_v37 = vpop.xlane.xlu0 %7667  ;;  %v7665_v48 = vpop.xlane.xlu1 %7664 }
0x16d1   : > { %v7673_v4 = vmul.f32 0.012345679, %v7668_v37  ;;  %v7672_v27 = vmul.f32 0.012345679, %v7665_v48  ;;  %v8718_v37 = vld [vmem:[%s14683_s14 + $0x100] sm:$0x1]  ;;  %v11793_v48 = vpack.c.bf16 %v8722_v11, %v8721_v28 }
0x16d2   : > { %v8250_v28 = vld [vmem:[#allocation3] sm:$0x1] }
0x16d3   : > { %v7675_v32 = vadd.f32 %v7673_v4, %v7672_v27  ;;  %v8723_v27 = vld [vmem:[%s14683_s14 + $0x118] sm:$0xff] }
0x16d4   : > { %v7671_v29 = vpop.xlane.xlu1 %7670 }
0x16d5   : > { %v7674_v35 = vmul.f32 0.012345679, %v7671_v29  ;;  %v8724_v29 = vld [vmem:[%s14683_s14 + $0x120] sm:$0xff] }
0x16d7   : > { %v7676_v38 = vadd.f32 %v7675_v32, %v7674_v35  ;;  %v11796_v32 = vpack.c.bf16 %v8724_v29, %v8723_v27  ;;  %v8725_v35 = vld [vmem:[%s14683_s14 + $0x128] sm:$0xff] }
0x16d8   : > { %v7691_v53 = vpop.permute.xlu0 %7690  ;;  %v7698_v45 = vpop.permute.xlu1 %7697 }
0x16d9   : > { %v7677_v42 = vrot.slane %v7676_v38, 4 }
0x16db   : > { %v7678_v52 = vadd.f32 %v7677_v42, %v7676_v38  ;;  %v8726_v38 = vld [vmem:[%s14683_s14 + $0x130] sm:$0xff] }
0x16dc   : > { %v11799_v42 = vpack.c.bf16 %v8726_v38, %v8725_v35 }
0x16dd   : > { %v7679_v57 = vrot.slane %v7678_v52, 2 }
0x16df   : > { %v7680_v49 = vadd.f32 %v7679_v57, %v7678_v52  ;;  %v8727_v52 = vld [vmem:[%s14683_s14 + $0x138] sm:$0xff]  ;;  %v8728_v57 = vld [vmem:[%s14683_s14 + $0x140] sm:$0xff] }
0x16e1   : > { %v7681_v56 = vrot.slane %v7680_v49, 1 }
0x16e3   : > { %v7682_v44 = vadd.f32 %v7681_v56, %v7680_v49  ;;  %v11802_v49 = vpack.c.bf16 %v8728_v57, %v8727_v52  ;;  %v8729_v56 = vld [vmem:[%s14683_s14 + $0x148] sm:$0xff] }
0x16e5   : > { %v7683_v62 = vmul.f32 0.041666668, %v7682_v44  ;;  %v8730_v44 = vld [vmem:[%s14683_s14 + $0x150] sm:$0xff] }
0x16e7   : > { %v7684_v15 = vadd.f32 1e-05, %v7683_v62  ;;  %v11805_v62 = vpack.c.bf16 %v8730_v44, %v8729_v56 }
0x16e9   : > { %12141 = vrsqrt.f32 %v7684_v15  ;;  %v8734_v15 = vld [vmem:[%s14683_s14 + $0x160] sm:$0xff] }
0x16f3   : > { %v12142_v23 = vpop.eup %12141 }
0x16f4   : > { %v7686_v63 = vmul.f32 %v12142_v23, %v14381_v61  ;;  %v11769_v61 = vpack.c.bf16 %v8700_v21, %v8699_v22  ;;  %v11808_v23 = vpack.c.bf16 %v8735_v10, %v8734_v15  ;;  %v8748_v22 = vld [vmem:[%s14683_s14 + $0x1c0] sm:$0xff]  ;;  %v8744_v21 = vld [vmem:[%s14683_s14 + $0x1b0] sm:$0x1] }
0x16f6   : > { %v7693_v18 = vmul.f32 %v7691_v53, %v7686_v63  ;;  %v8736_v53 = vld [vmem:[%s14683_s14 + $0x170] sm:$0xff] }
0x16f8   : > { %v7700_v55 = vadd.f32 %v7698_v45, %v7693_v18  ;;  %v8737_v18 = vld [vmem:[%s14683_s14 + $0x178] sm:$0xff]  ;;  %v8738_v45 = vld [vmem:[%s14683_s14 + $0x180] sm:$0xff] }
0x16fa   : > { %v7704_v34 = vrot.slane %v7700_v55, %v7703_v47  ;;  %v11811_v47 = vpack.c.bf16 %v8737_v18, %v8736_v53  ;;  %v8739_v55 = vld [vmem:[%s14683_s14 + $0x188] sm:$0xff] }
0x16fb   : > { %v11814_v25 = vpack.c.bf16 %v8739_v55, %v8738_v45 }
0x16fc   : > { %v14439_v9 = vmul.f32 %v12152_v41, %v7704_v34  ;;  %v8741_v34 = vld [vmem:[%s14683_s14 + $0x198] sm:$0xff]  ;;  %v8742_v41 = vld [vmem:[%s14683_s14 + $0x1a0] sm:$0xff] }
0x16fd   : > { %v11820_v16 = vpack.c.bf16 %v8743_v13, %v8742_v41 }
0x16fe   : > { %10873 = vmatmul.mubr.msk.f32.vlgmr.msra.gmra.mrb[60].mxu0 %vm1000_vm3, %v14439_v9  ;;  %v7807_v36 = vrot.slane %v14439_v9, 1  ;;  %v7896_v4 = vrot.slane %v14439_v9, 2  ;;  %v7985_v63 = vrot.slane %v14439_v9, 3  ;;  %v8074_v1 = vrot.slane %v14439_v9, 4 }
0x16ff   : > { %11764 = vmatpush3.bf16.msra.mxu0 %v11763_v43  ;;  %10897 = vmatprep.mubr.msk.f32.mxu0 %vm12543_vm11, %v14843_v50  ;;  %v11817_v43 = vpack.c.bf16 %v8741_v34, %v8740_v51  ;;  %v8163_v31 = vrot.slane %v14439_v9, 5 }
0x1700   : > { %11765 = vmatprep.subr.bf16.mxu0 %v14842_v7 }
0x1703   : > { %11767 = vmatpush3.bf16.msra.mxu0 %v11766_v19  ;;  %v8747_v19 = vld [vmem:[%s14683_s14 + $0x1b8] sm:$0xff] }
0x1704   : > { %11768 = vmatprep.subr.bf16.mxu0 %v14842_v7 }
0x1707   : > { %11770 = vmatpush3.bf16.msra.mxu0 %v11769_v61  ;;  %v11823_v61 = vpack.c.bf16 %v8748_v22, %v8747_v19 }
0x1708   : > { %11771 = vmatprep.subr.bf16.mxu0 %v14842_v7 }
0x170b   : > { %11773 = vmatpush3.bf16.msra.mxu0 %v11772_v30  ;;  %v8750_v30 = vld [vmem:[%s14683_s14 + $0x1d0] sm:$0xff] }
0x170c   : > { %11774 = vmatprep.subr.bf16.mxu0 %v14842_v7  ;;  %v11826_v33 = vpack.c.bf16 %v8750_v30, %v8749_v39 }
0x170f   : > { %11776 = vmatpush3.bf16.msra.mxu0 %v11775_v14  ;;  %v8752_v14 = vld [vmem:[%s14683_s14 + $0x1e0] sm:$0xff] }
0x1710   : > { %10895 = vmatprep.subr.mxu0 %v14843_v50  ;;  %v11829_v59 = vpack.c.bf16 %v8752_v14, %v8751_v54 }
0x1713   : > { %10896 = vmatpush3.msk.msra.mxu0 %vm1007_vm2, %v8705_v24  ;;  %v8754_v24 = vld [vmem:[%s14683_s14 + $0x1f0] sm:$0xff] }
0x1714   : > { %10898 = vmatmul.mubr.msk.f32.vlgmr.msra.gmra.mrb[60].mxu0 %vm1000_vm3, %v7807_v36  ;;  %11777 = vmatprep.subr.bf16.mxu0 %v14842_v7  ;;  %v8755_v36 = vld [vmem:[%s14683_s14 + $0x1f8] sm:$0xff] }
0x1715   : > { %11779 = vmatpush3.bf16.msra.mxu0 %v11778_v3  ;;  %10922 = vmatprep.mubr.msk.f32.mxu0 %vm12543_vm11, %v14843_v50  ;;  %v11832_v3 = vpack.c.bf16 %v8754_v24, %v8753_v20  ;;  %v11835_v5 = vpack.c.bf16 %v8756_v0, %v8755_v36 }
0x1716   : > { %11780 = vmatprep.subr.bf16.mxu0 %v14842_v7 }
0x1719   : > { %11782 = vmatpush3.bf16.msra.mxu0 %v11781_v17  ;;  %v8757_v17 = vld [vmem:[%s14683_s14 + $0x208] sm:$0x1] }
0x171a   : > { %11783 = vmatprep.subr.bf16.mxu0 %v14842_v7 }
0x171d   : > { %11785 = vmatpush3.bf16.msra.mxu0 %v11784_v46 }
0x171e   : > { %11786 = vmatprep.subr.bf16.mxu0 %v14842_v7 }
0x1721   : > { %11788 = vmatpush3.bf16.msra.mxu0 %v11787_v2 }
0x1722   : > { %11789 = vmatprep.subr.bf16.mxu0 %v14842_v7 }
0x1725   : > { %11791 = vmatpush3.bf16.msra.mxu0 %v11790_v26 }
0x1726   : > { %10920 = vmatprep.subr.mxu0 %v14843_v50 }
0x1729   : > { %10921 = vmatpush3.msk.msra.mxu0 %vm1007_vm2, %v8718_v37  ;;  %v8252_v37 = vld [vmem:[#allocation4] sm:$0x1] }
0x172a   : > { %10923 = vmatmul.mubr.msk.f32.vlgmr.msra.gmra.mrb[60].mxu0 %vm1000_vm3, %v7896_v4  ;;  %11792 = vmatprep.subr.bf16.mxu0 %v14842_v7 }
0x172b   : > { %11794 = vmatpush3.bf16.msra.mxu0 %v11793_v48  ;;  %10947 = vmatprep.mubr.msk.f32.mxu0 %vm12543_vm11, %v14843_v50 }
0x172c   : > { %11795 = vmatprep.subr.bf16.mxu0 %v14842_v7 }
0x172f   : > { %11797 = vmatpush3.bf16.msra.mxu0 %v11796_v32 }
0x1730   : > { %11798 = vmatprep.subr.bf16.mxu0 %v14842_v7 }
0x1733   : > { %11800 = vmatpush3.bf16.msra.mxu0 %v11799_v42 }
0x1734   : > { %11801 = vmatprep.subr.bf16.mxu0 %v14842_v7 }
0x1737   : > { %11803 = vmatpush3.bf16.msra.mxu0 %v11802_v49 }
0x1738   : > { %11804 = vmatprep.subr.bf16.mxu0 %v14842_v7 }
0x173b   : > { %11806 = vmatpush3.bf16.msra.mxu0 %v11805_v62 }
0x173c   : > { %10945 = vmatprep.subr.mxu0 %v14843_v50 }
0x173f   : > { %10946 = vmatpush3.msk.msra.mxu0 %vm1007_vm2, %v8731_v8 }
0x1740   : > { %10948 = vmatmul.mubr.msk.f32.vlgmr.msra.gmra.mrb[60].mxu0 %vm1000_vm3, %v7985_v63  ;;  %11807 = vmatprep.subr.bf16.mxu0 %v14842_v7 }
0x1741   : > { %11809 = vmatpush3.bf16.msra.mxu0 %v11808_v23  ;;  %10972 = vmatprep.mubr.msk.f32.mxu0 %vm12543_vm11, %v14843_v50 }
0x1742   : > { %11810 = vmatprep.subr.bf16.mxu0 %v14842_v7 }
0x1745   : > { %11812 = vmatpush3.bf16.msra.mxu0 %v11811_v47 }
0x1746   : > { %11813 = vmatprep.subr.bf16.mxu0 %v14842_v7 }
0x1749   : > { %11815 = vmatpush3.bf16.msra.mxu0 %v11814_v25 }
0x174a   : > { %11816 = vmatprep.subr.bf16.mxu0 %v14842_v7 }
0x174d   : > { %11818 = vmatpush3.bf16.msra.mxu0 %v11817_v43 }
0x174e   : > { %11819 = vmatprep.subr.bf16.mxu0 %v14842_v7 }
0x1751   : > { %11821 = vmatpush3.bf16.msra.mxu0 %v11820_v16 }
0x1752   : > { %10970 = vmatprep.subr.mxu0 %v14843_v50 }
0x1755   : > { %10971 = vmatpush3.msk.msra.mxu0 %vm1007_vm2, %v8744_v21 }
0x1756   : > { %10973 = vmatmul.mubr.msk.f32.vlgmr.msra.gmra.mrb[60].mxu0 %vm1000_vm3, %v8074_v1  ;;  %11822 = vmatprep.subr.bf16.mxu0 %v14842_v7 }
0x1757   : > { %11824 = vmatpush3.bf16.msra.mxu0 %v11823_v61  ;;  %10997 = vmatprep.mubr.msk.f32.mxu0 %vm12543_vm11, %v14843_v50 }
0x1758   : > { %11825 = vmatprep.subr.bf16.mxu0 %v14842_v7 }
0x175b   : > { %11827 = vmatpush3.bf16.msra.mxu0 %v11826_v33 }
0x175c   : > { %11828 = vmatprep.subr.bf16.mxu0 %v14842_v7 }
0x175f   : > { %11830 = vmatpush3.bf16.msra.mxu0 %v11829_v59 }
0x1760   : > { %11831 = vmatprep.subr.bf16.mxu0 %v14842_v7 }
0x1763   : > { %11833 = vmatpush3.bf16.msra.mxu0 %v11832_v3 }
0x1764   : > { %11834 = vmatprep.subr.bf16.mxu0 %v14842_v7 }
0x1767   : > { %11836 = vmatpush3.bf16.msra.mxu0 %v11835_v5 }
0x1768   : > { %10995 = vmatprep.subr.mxu0 %v14843_v50  ;;  %v8241_v50 = vld [vmem:[%s14879_s4] sm:$0x1] }
0x176b   : > { %10996 = vmatpush3.msk.msra.mxu0 %vm1007_vm2, %v8757_v17 }
0x176c   : > { %10998 = vmatmul.mubr.msk.f32.vlgmr.msra.gmra.mrb[60].mxu0 %vm1000_vm3, %v8163_v31 }
0x183f   : > { %v8235_v46 = vpop.f32.mrb[60].mxu0 }
0x1840   : > { %v11839_v7 = vadd.f32 %v8235_v46, %v7706_v40  ;;  %v10999_v58 = vpop.f32.mrb[61].mxu0 }
0x1842   : > { %v8240_v60 = vmax.f32 %v11839_v7, 0.0 }
0x1844   : > { %v8242_v2 = vmul.f32 %v8241_v50, %v8240_v60 }
0x1846   : > { %v8244_v9 = vsel %vm8243_vm0, %v8242_v2, 0.0 }
0x1847   : > { %8245 = vadd.xlane.f32.xlu1 %v8244_v9 }
0x18d4   : > { %v8246_v12 = vpop.xlane.xlu1 %8245 }
0x18d5   : > { %v8248_v26 = vadd.f32 %v8247_v6, %v8246_v12 }
0x18d7   : > { %v8249_v11 = vmax.f32 %v8248_v26, 0.0 }
0x18d9   : > { %v8251_v48 = vmul.f32 %v8250_v28, %v8249_v11 }
0x18db   : > { %v8253_v4 = vadd.f32 %v8252_v37, %v8251_v48 }
0x18dd   : > { %8255 = vst.msk [vmem:[%s803_s3] sm:$0x1] %vm8254_vm1, %v8253_v4 }
0x18de PF: > { %s14881_s2 = sld [smem:[#allocation31_spill]] }
0x18e4   : > { %s43_s3 = sadd.s32 1, %s14881_s2  }
0x18e5   : > { %p40_p3 = scmp.ge.s32.totalorder %s43_s3, 4  }
0x18e7   :  { %42 = sbr.rel (!%p40_p3) target bundleno = 18 (0x12), region = 224 }
0x18ee   :  { %8273 = vsyncpa [#allocation6], 1 }
0x18ef   :  { %8275 = vsyncpa [#allocation6 + $0x1], 1 }
0x18f0   :  { %8276 = vsyncpa [#allocation8], 1 }
0x18f1   :  { %8277 = vsyncpa [#allocation11], 1 }
0x18f2   :  { %8278 = vsyncpa [#allocation14], 1 }
0x18f3   :  { %8279 = vsyncpa [#allocation17], 1 }
0x18f4   :  { %8280 = vsyncpa [#allocation20], 1 }
0x18f5   :  { %8281 = vsyncpa [#allocation23], 1 }

</bundles_post_ra>
